<compile_context>
chip_gen: v6e
topology: v6e:2x2x1
jax: 0.10.0
libtpu: 0.0.40
codegen_flags: <defaults>
</compile_context>

<pallas_src>
import jax
import jax.numpy as jnp
import numpy as np
from jax.experimental import pallas as pl
from jax.experimental.pallas import tpu as pltpu


def _make_kernel(seq_len, horizon, hidden, n, t_pad, h_pad):
    T = seq_len + horizon
    H = hidden
    G3 = 3 * H
    G4 = 4 * H
    N = n

    def sigm(z):
        # numerically stable sigmoid via a single EUP tanh
        return 0.5 * jnp.tanh(0.5 * z) + 0.5

    def softplus(z):
        # stable softplus = max(z,0) + log1p(exp(-|z|))  (matches F.softplus)
        return jnp.maximum(z, 0.0) + jnp.log1p(jnp.exp(-jnp.abs(z)))

    def kernel(pre0_ref, embw_ref, whh0_ref, w1_ref, b1_ref,
               whead_ref, bhead_ref, eps_ref,
               mu_out_ref, sig_out_ref, yp_out_ref):
        f32 = jnp.float32
        # hoisted broadcasts (done once, not per iteration)
        embw = jnp.broadcast_to(embw_ref[...], (N, G4))
        b1 = jnp.broadcast_to(b1_ref[...], (N, G4))
        bhead = jnp.broadcast_to(bhead_ref[...], (N, 2))
        whh0 = whh0_ref[...]
        w1 = w1_ref[...]
        whead = whead_ref[...]
        eps = eps_ref[...]                                    # (N, T)

        lane_t = jax.lax.broadcasted_iota(jnp.int32, (N, t_pad), 1)
        lane_h = jax.lax.broadcasted_iota(jnp.int32, (N, h_pad), 1)

        # zero-init LSTM state (PyTorch default when (h, c) is None)
        h0 = jnp.zeros((N, H), f32)
        c0 = jnp.zeros((N, H), f32)
        h1 = jnp.zeros((N, H), f32)
        c1 = jnp.zeros((N, H), f32)
        ynext = jnp.zeros((N, 1), f32)

        mu_acc = jnp.zeros((N, t_pad), f32)
        sig_acc = jnp.zeros((N, t_pad), f32)
        yp_acc = jnp.zeros((N, h_pad), f32)

        for s in range(T):              # fully unrolled: T is small and static
            # ---- LSTM layer 0 (input projections precomputed in wrapper) ----
            g0 = pre0_ref[s] + jnp.dot(h0, whh0, preferred_element_type=f32)
            if s >= seq_len:
                # sampled-y embedding contribution is a rank-1 update (no MXU)
                g0 = g0 + ynext * embw
            sfo0 = sigm(g0[:, :G3])      # gates i | f | o (contiguous columns)
            z0 = jnp.tanh(g0[:, G3:])    # gate g
            c0 = sfo0[:, H:2 * H] * c0 + sfo0[:, :H] * z0
            h0 = sfo0[:, 2 * H:G3] * jnp.tanh(c0)

            # ---- LSTM layer 1 (fused [Wih1; Whh1]) ----
            x1 = jnp.concatenate([h0, h1], axis=1)            # (N, 2H)
            g1 = jnp.dot(x1, w1, preferred_element_type=f32) + b1
            sfo1 = sigm(g1[:, :G3])
            z1 = jnp.tanh(g1[:, G3:])
            c1 = sfo1[:, H:2 * H] * c1 + sfo1[:, :H] * z1
            h1 = sfo1[:, 2 * H:G3] * jnp.tanh(c1)

            # ---- Gaussian likelihood head (mu & sigma fused in one matmul) --
            hs = jnp.maximum(h1, 0.0)
            head = jnp.dot(hs, whead, preferred_element_type=f32) + bhead
            mu = head[:, 0:1]
            sig = softplus(head[:, 1:2]) + 1e-6

            mu_acc = jnp.where(lane_t == s, mu, mu_acc)
            sig_acc = jnp.where(lane_t == s, sig, sig_acc)

            # Gaussian ancestral sampling: ynext ~ Normal(mu, sigma).
            # Only needed when the sample feeds step s+1 or the ypred output.
            # TODO(synk): torch gaussian_sample() uses PyTorch RNG with an
            #  extra sample_shape=mu.size(); here we consume precomputed
            #  standard-normal noise:  ynext = mu + sigma * eps.
            if s >= seq_len - 1:
                ynext = mu + sig * eps[:, s:s + 1]
            if seq_len - 1 <= s < T - 1:
                j = s - (seq_len - 1)
                yp_acc = jnp.where(lane_h == j, ynext, yp_acc)

        # single lane-dense stores at the end
        mu_out_ref[...] = mu_acc
        sig_out_ref[...] = sig_acc
        yp_out_ref[...] = yp_acc

    return kernel


def _gate_perm(w):
    """Permute PyTorch LSTM gate column blocks i|f|g|o -> i|f|o|g (last axis)."""
    i, f, g, o = jnp.split(w, 4, axis=-1)
    return jnp.concatenate([i, f, o, g], axis=-1)


@jax.jit
def deepar_forward(X, y, Xf, eps, params):
    """X: (N, seq_len, F), y: (N, seq_len), Xf: (N, horizon, F),
    eps: (N, seq_len+horizon) standard-normal noise for sampling.
    Returns (ypred (N, horizon), mu (N, T), sigma (N, T))."""
    N0, seq_len, F = X.shape
    horizon = Xf.shape[1]
    T = seq_len + horizon
    H = params["whh0"].shape[0]

    # ---- pad batch to a multiple of 8 sublanes ----
    N = max(8, ((N0 + 7) // 8) * 8)
    if N != N0:
        p = N - N0
        X = jnp.pad(X, ((0, p), (0, 0), (0, 0)))
        y = jnp.pad(y, ((0, p), (0, 0)))
        Xf = jnp.pad(Xf, ((0, p), (0, 0), (0, 0)))
        eps = jnp.pad(eps, ((0, p), (0, 0)))

    hp = jax.lax.Precision.HIGHEST

    # ---- gate-reordered / fused weights (wrapper-time packing) ----
    emb_w, emb_b = params["emb_w"], params["emb_b"]            # (1,E)
    wih0x = _gate_perm(params["wih0x"])                         # (F,4H)
    wih0y = _gate_perm(params["wih0y"])                         # (E,4H)
    whh0 = _gate_perm(params["whh0"])                           # (H,4H)
    b0 = _gate_perm(params["b0"])                               # (1,4H)
    w1 = _gate_perm(jnp.concatenate([params["wih1"], params["whh1"]], axis=0))
    b1 = _gate_perm(params["b1"])                               # (1,4H)
    whead = jnp.concatenate([params["wmu"], params["wsig"]], axis=1)   # (H,2)
    bhead = jnp.concatenate([params["bmu"], params["bsig"]], axis=1)   # (1,2)

    embw_g = jnp.dot(emb_w, wih0y, precision=hp)                # (1,4H)
    embb_g = jnp.dot(emb_b, wih0y, precision=hp)                # (1,4H)

    # ---- hoisted non-recurrent projections: one big matmul over all T ----
    xall = jnp.concatenate([X, Xf], axis=1)                     # (N,T,F)
    pre = jnp.einsum("ntf,fg->ntg", xall, wih0x, precision=hp) + b0
    yemb = y[..., None] * emb_w + emb_b                         # (N,seq,E)
    ypj = jnp.einsum("nte,eg->ntg", yemb, wih0y, precision=hp)  # (N,seq,4H)
    pre = pre.at[:, :seq_len].add(ypj)     # teacher-forced embedding folded in
    pre = pre.at[:, seq_len:].add(embb_g)  # bias part of sampled-y embedding
    pre0 = jnp.transpose(pre, (1, 0, 2))                        # (T,N,4H)

    t_pad = ((T + 127) // 128) * 128
    h_pad = ((horizon + 127) // 128) * 128

    kernel = _make_kernel(seq_len, horizon, H, N, t_pad, h_pad)
    vmem = pl.BlockSpec(memory_space=pltpu.MemorySpace.VMEM)
    args = (pre0, embw_g, whh0, w1, b1, whead, bhead, eps)

    mu_p, sig_p, yp_p = pl.pallas_call(
        kernel,
        out_shape=(jax.ShapeDtypeStruct((N, t_pad), jnp.float32),
                   jax.ShapeDtypeStruct((N, t_pad), jnp.float32),
                   jax.ShapeDtypeStruct((N, h_pad), jnp.float32)),
        in_specs=[vmem] * len(args),
        out_specs=(vmem, vmem, vmem),
    )(*args)

    ypred = yp_p[:N0, :horizon]
    mu = mu_p[:N0, :T]
    sigma = sig_p[:N0, :T]
    return ypred, mu, sigma


def _ref_forward_np(X, y, Xf, eps, params):
    """Pure numpy reference mirroring the torch forward (same noise),
    using the ORIGINAL (unpermuted, unfused) weights."""
    p = {k: np.asarray(v, np.float32) for k, v in params.items()}
    X, y, Xf, eps = map(np.asarray, (X, y, Xf, eps))
    N, seq_len, F = X.shape
    horizon = Xf.shape[1]
    T = seq_len + horizon
    H = p["whh0"].shape[0]

    def sg(z):
        return 1.0 / (1.0 + np.exp(-z))

    h = [np.zeros((N, H), np.float32) for _ in range(2)]
    c = [np.zeros((N, H), np.float32) for _ in range(2)]
    ynext = np.zeros((N, 1), np.float32)
    mus, sigs, yp = [], [], []
    for s in range(T):
        if s < seq_len:
            ynext = y[:, s:s + 1]
        yemb = ynext * p["emb_w"] + p["emb_b"]
        x = X[:, s, :] if s < seq_len else Xf[:, s - seq_len, :]
        g0 = x @ p["wih0x"] + yemb @ p["wih0y"] + h[0] @ p["whh0"] + p["b0"]
        i0, f0 = sg(g0[:, :H]), sg(g0[:, H:2 * H])
        z0, o0 = np.tanh(g0[:, 2 * H:3 * H]), sg(g0[:, 3 * H:])
        c[0] = f0 * c[0] + i0 * z0
        h[0] = o0 * np.tanh(c[0])
        g1 = h[0] @ p["wih1"] + h[1] @ p["whh1"] + p["b1"]
        i1, f1 = sg(g1[:, :H]), sg(g1[:, H:2 * H])
        z1, o1 = np.tanh(g1[:, 2 * H:3 * H]), sg(g1[:, 3 * H:])
        c[1] = f1 * c[1] + i1 * z1
        h[1] = o1 * np.tanh(c[1])
        hs = np.maximum(h[1], 0.0)
        mu = hs @ p["wmu"] + p["bmu"]
        sig = np.log(1.0 + np.exp(hs @ p["wsig"] + p["bsig"])) + 1e-6
        mus.append(mu)
        sigs.append(sig)
        ynext = mu + sig * eps[:, s:s + 1]
        if seq_len - 1 <= s < T - 1:
            yp.append(ynext)
    return (np.concatenate(yp, axis=1),
            np.concatenate(mus, axis=1),
            np.concatenate(sigs, axis=1))


if __name__ == "__main__":
    N, F, E, H = 4, 4, 8, 32          # num_ts, input_size, embedding, hidden
    seq_len, horizon = 8, 4
    T = seq_len + horizon

    key = jax.random.PRNGKey(0)
    keys = jax.random.split(key, 20)

    def unif(k, shape, fan_in):
        bound = 1.0 / np.sqrt(fan_in)
        return jax.random.uniform(k, shape, jnp.float32, -bound, bound)

    params = {
        "emb_w": unif(keys[0], (1, E), 1),          # Linear(1, E) weight^T
        "emb_b": unif(keys[1], (1, E), 1),
        "wih0x": unif(keys[2], (F, 4 * H), F + E),  # LSTM l0: x part of W_ih^T
        "wih0y": unif(keys[3], (E, 4 * H), F + E),  # LSTM l0: yembed part
        "whh0": unif(keys[4], (H, 4 * H), H),
        "b0":   unif(keys[5], (1, 4 * H), H),       # b_ih + b_hh, layer 0
        "wih1": unif(keys[6], (H, 4 * H), H),
        "whh1": unif(keys[7], (H, 4 * H), H),
        "b1":   unif(keys[8], (1, 4 * H), H),
        "wmu":  unif(keys[9], (H, 1), H),
        "bmu":  unif(keys[10], (1, 1), H),
        "wsig": unif(keys[11], (H, 1), H),
        "bsig": unif(keys[12], (1, 1), H),
    }

    X = jax.random.normal(keys[13], (N, seq_len, F), jnp.float32)
    y = jax.random.normal(keys[14], (N, seq_len), jnp.float32)
    Xf = jax.random.normal(keys[15], (N, horizon, F), jnp.float32)
    eps = jax.random.normal(keys[16], (N, T), jnp.float32)

    ypred, mu, sigma = jax.block_until_ready(
        deepar_forward(X, y, Xf, eps, params))

    assert ypred.shape == (N, horizon)
    assert mu.shape == (N, T)
    assert sigma.shape == (N, T)

    yp_ref, mu_ref, sig_ref = _ref_forward_np(X, y, Xf, eps, params)
    np.testing.assert_allclose(np.asarray(mu), mu_ref, rtol=2e-2, atol=2e-2)
    np.testing.assert_allclose(np.asarray(sigma), sig_ref, rtol=2e-2, atol=2e-2)
    np.testing.assert_allclose(np.asarray(ypred), yp_ref, rtol=2e-2, atol=2e-2)

    print("KERNEL_OK")
</pallas_src>

<mosaic_0001>
module attributes {stable_mosaic.version = 11 : i64} {
  func.func @kernel(%arg0: memref<12x8x128xf32, #tpu.memory_space<vmem>>, %arg1: memref<1x128xf32, #tpu.memory_space<vmem>>, %arg2: memref<32x128xf32, #tpu.memory_space<vmem>>, %arg3: memref<64x128xf32, #tpu.memory_space<vmem>>, %arg4: memref<1x128xf32, #tpu.memory_space<vmem>>, %arg5: memref<32x2xf32, #tpu.memory_space<vmem>>, %arg6: memref<1x2xf32, #tpu.memory_space<vmem>>, %arg7: memref<8x12xf32, #tpu.memory_space<vmem>>, %arg8: memref<8x128xf32, #tpu.memory_space<vmem>>, %arg9: memref<8x128xf32, #tpu.memory_space<vmem>>, %arg10: memref<8x128xf32, #tpu.memory_space<vmem>>) attributes {dimension_semantics = [], scalar_prefetch = 0 : i64, scratch_operands = 0 : i64, tpu.core_type = #tpu.core_type<tc>} {
    %c0 = arith.constant 0 : index
    %c0_0 = arith.constant 0 : index
    %0 = vector.load %arg1[%c0, %c0_0] : memref<1x128xf32, #tpu.memory_space<vmem>>, vector<1x128xf32>
    %1 = vector.shape_cast %0 : vector<1x128xf32> to vector<1x128xf32>
    %2 = vector.broadcast %1 : vector<1x128xf32> to vector<8x128xf32>
    %c0_1 = arith.constant 0 : index
    %c0_2 = arith.constant 0 : index
    %3 = vector.load %arg4[%c0_1, %c0_2] : memref<1x128xf32, #tpu.memory_space<vmem>>, vector<1x128xf32>
    %4 = vector.shape_cast %3 : vector<1x128xf32> to vector<1x128xf32>
    %5 = vector.broadcast %4 : vector<1x128xf32> to vector<8x128xf32>
    %c0_3 = arith.constant 0 : index
    %c0_4 = arith.constant 0 : index
    %6 = vector.load %arg6[%c0_3, %c0_4] : memref<1x2xf32, #tpu.memory_space<vmem>>, vector<1x2xf32>
    %7 = vector.shape_cast %6 : vector<1x2xf32> to vector<1x2xf32>
    %8 = vector.broadcast %7 : vector<1x2xf32> to vector<8x2xf32>
    %c0_5 = arith.constant 0 : index
    %c0_6 = arith.constant 0 : index
    %9 = vector.load %arg2[%c0_5, %c0_6] : memref<32x128xf32, #tpu.memory_space<vmem>>, vector<32x128xf32>
    %c0_7 = arith.constant 0 : index
    %c0_8 = arith.constant 0 : index
    %10 = vector.load %arg3[%c0_7, %c0_8] : memref<64x128xf32, #tpu.memory_space<vmem>>, vector<64x128xf32>
    %c0_9 = arith.constant 0 : index
    %c0_10 = arith.constant 0 : index
    %11 = vector.load %arg5[%c0_9, %c0_10] : memref<32x2xf32, #tpu.memory_space<vmem>>, vector<32x2xf32>
    %c0_11 = arith.constant 0 : index
    %c0_12 = arith.constant 0 : index
    %12 = vector.load %arg7[%c0_11, %c0_12] : memref<8x12xf32, #tpu.memory_space<vmem>>, vector<8x12xf32>
    %13 = tpu.iota {dimensions = array<i32: 1>} : vector<8x128xi32>
    %14 = tpu.iota {dimensions = array<i32: 1>} : vector<8x128xi32>
    %cst = arith.constant 0.000000e+00 : f32
    %15 = vector.broadcast %cst : f32 to vector<8x32xf32>
    %cst_13 = arith.constant 0.000000e+00 : f32
    %16 = vector.broadcast %cst_13 : f32 to vector<8x32xf32>
    %cst_14 = arith.constant 0.000000e+00 : f32
    %17 = vector.broadcast %cst_14 : f32 to vector<8x32xf32>
    %cst_15 = arith.constant 0.000000e+00 : f32
    %18 = vector.broadcast %cst_15 : f32 to vector<8x32xf32>
    %cst_16 = arith.constant 0.000000e+00 : f32
    %19 = vector.broadcast %cst_16 : f32 to vector<8x128xf32>
    %cst_17 = arith.constant 0.000000e+00 : f32
    %20 = vector.broadcast %cst_17 : f32 to vector<8x128xf32>
    %cst_18 = arith.constant 0.000000e+00 : f32
    %21 = vector.broadcast %cst_18 : f32 to vector<8x128xf32>
    %c0_19 = arith.constant 0 : index
    %c0_20 = arith.constant 0 : index
    %c0_21 = arith.constant 0 : index
    %22 = vector.load %arg0[%c0_19, %c0_20, %c0_21] : memref<12x8x128xf32, #tpu.memory_space<vmem>>, vector<1x8x128xf32>
    %23 = vector.shape_cast %22 : vector<1x8x128xf32> to vector<8x128xf32>
    %cst_22 = arith.constant dense<0.000000e+00> : vector<8x128xf32>
    %24 = tpu.matmul %15, %9, %cst_22 {dimension_numbers = #tpu.dot_dimension_numbers<[1], [0], [0], [1], [0, 0, 1, 1], [], []>} : vector<8x32xf32>, vector<32x128xf32>, vector<8x128xf32> -> vector<8x128xf32>
    %25 = arith.addf %23, %24 : vector<8x128xf32>
    %26 = vector.extract_strided_slice %25 {offsets = [0, 0], sizes = [8, 96], strides = [1, 1]} : vector<8x128xf32> to vector<8x96xf32>
    %cst_23 = arith.constant 5.000000e-01 : f32
    %27 = vector.broadcast %cst_23 : f32 to vector<8x96xf32>
    %28 = arith.mulf %27, %26 : vector<8x96xf32>
    %29 = math.tanh %28 : vector<8x96xf32>
    %cst_24 = arith.constant 5.000000e-01 : f32
    %30 = vector.broadcast %cst_24 : f32 to vector<8x96xf32>
    %31 = arith.mulf %30, %29 : vector<8x96xf32>
    %cst_25 = arith.constant 5.000000e-01 : f32
    %32 = vector.broadcast %cst_25 : f32 to vector<8x96xf32>
    %33 = arith.addf %31, %32 : vector<8x96xf32>
    %34 = vector.extract_strided_slice %25 {offsets = [0, 96], sizes = [8, 32], strides = [1, 1]} : vector<8x128xf32> to vector<8x32xf32>
    %35 = math.tanh %34 : vector<8x32xf32>
    %36 = vector.extract_strided_slice %33 {offsets = [0, 32], sizes = [8, 32], strides = [1, 1]} : vector<8x96xf32> to vector<8x32xf32>
    %37 = arith.mulf %36, %16 : vector<8x32xf32>
    %38 = vector.extract_strided_slice %33 {offsets = [0, 0], sizes = [8, 32], strides = [1, 1]} : vector<8x96xf32> to vector<8x32xf32>
    %39 = arith.mulf %38, %35 : vector<8x32xf32>
    %40 = arith.addf %37, %39 : vector<8x32xf32>
    %41 = vector.extract_strided_slice %33 {offsets = [0, 64], sizes = [8, 32], strides = [1, 1]} : vector<8x96xf32> to vector<8x32xf32>
    %42 = math.tanh %40 : vector<8x32xf32>
    %43 = arith.mulf %41, %42 : vector<8x32xf32>
    %44 = tpu.concatenate %43, %17 in 1 : vector<8x32xf32>, vector<8x32xf32> -> vector<8x64xf32>
    %cst_26 = arith.constant dense<0.000000e+00> : vector<8x128xf32>
    %45 = tpu.matmul %44, %10, %cst_26 {dimension_numbers = #tpu.dot_dimension_numbers<[1], [0], [0], [1], [0, 0, 1, 1], [], []>} : vector<8x64xf32>, vector<64x128xf32>, vector<8x128xf32> -> vector<8x128xf32>
    %46 = arith.addf %45, %5 : vector<8x128xf32>
    %47 = vector.extract_strided_slice %46 {offsets = [0, 0], sizes = [8, 96], strides = [1, 1]} : vector<8x128xf32> to vector<8x96xf32>
    %cst_27 = arith.constant 5.000000e-01 : f32
    %48 = vector.broadcast %cst_27 : f32 to vector<8x96xf32>
    %49 = arith.mulf %48, %47 : vector<8x96xf32>
    %50 = math.tanh %49 : vector<8x96xf32>
    %cst_28 = arith.constant 5.000000e-01 : f32
    %51 = vector.broadcast %cst_28 : f32 to vector<8x96xf32>
    %52 = arith.mulf %51, %50 : vector<8x96xf32>
    %cst_29 = arith.constant 5.000000e-01 : f32
    %53 = vector.broadcast %cst_29 : f32 to vector<8x96xf32>
    %54 = arith.addf %52, %53 : vector<8x96xf32>
    %55 = vector.extract_strided_slice %46 {offsets = [0, 96], sizes = [8, 32], strides = [1, 1]} : vector<8x128xf32> to vector<8x32xf32>
    %56 = math.tanh %55 : vector<8x32xf32>
    %57 = vector.extract_strided_slice %54 {offsets = [0, 32], sizes = [8, 32], strides = [1, 1]} : vector<8x96xf32> to vector<8x32xf32>
    %58 = arith.mulf %57, %18 : vector<8x32xf32>
    %59 = vector.extract_strided_slice %54 {offsets = [0, 0], sizes = [8, 32], strides = [1, 1]} : vector<8x96xf32> to vector<8x32xf32>
    %60 = arith.mulf %59, %56 : vector<8x32xf32>
    %61 = arith.addf %58, %60 : vector<8x32xf32>
    %62 = vector.extract_strided_slice %54 {offsets = [0, 64], sizes = [8, 32], strides = [1, 1]} : vector<8x96xf32> to vector<8x32xf32>
    %63 = math.tanh %61 : vector<8x32xf32>
    %64 = arith.mulf %62, %63 : vector<8x32xf32>
    %cst_30 = arith.constant 0.000000e+00 : f32
    %65 = vector.broadcast %cst_30 : f32 to vector<8x32xf32>
    %66 = arith.maximumf %64, %65 : vector<8x32xf32>
    %cst_31 = arith.constant dense<0.000000e+00> : vector<8x2xf32>
    %67 = tpu.matmul %66, %11, %cst_31 {dimension_numbers = #tpu.dot_dimension_numbers<[1], [0], [0], [1], [0, 0, 1, 1], [], []>} : vector<8x32xf32>, vector<32x2xf32>, vector<8x2xf32> -> vector<8x2xf32>
    %68 = arith.addf %67, %8 : vector<8x2xf32>
    %69 = vector.extract_strided_slice %68 {offsets = [0, 0], sizes = [8, 1], strides = [1, 1]} : vector<8x2xf32> to vector<8x1xf32>
    %70 = vector.extract_strided_slice %68 {offsets = [0, 1], sizes = [8, 1], strides = [1, 1]} : vector<8x2xf32> to vector<8x1xf32>
    %cst_32 = arith.constant 0.000000e+00 : f32
    %71 = vector.broadcast %cst_32 : f32 to vector<8x1xf32>
    %72 = arith.maximumf %70, %71 : vector<8x1xf32>
    %73 = math.absf %70 : vector<8x1xf32>
    %cst_33 = arith.constant 0.000000e+00 : f32
    %74 = vector.broadcast %cst_33 : f32 to vector<8x1xf32>
    %75 = arith.subf %74, %73 : vector<8x1xf32>
    %76 = math.exp %75 : vector<8x1xf32>
    %77 = math.log1p %76 : vector<8x1xf32>
    %78 = arith.addf %72, %77 : vector<8x1xf32>
    %cst_34 = arith.constant 9.99999997E-7 : f32
    %79 = vector.broadcast %cst_34 : f32 to vector<8x1xf32>
    %80 = arith.addf %78, %79 : vector<8x1xf32>
    %c0_i32 = arith.constant 0 : i32
    %81 = vector.broadcast %c0_i32 : i32 to vector<8x128xi32>
    %82 = arith.cmpi eq, %13, %81 : vector<8x128xi32>
    %83 = vector.shape_cast %69 : vector<8x1xf32> to vector<8x1xf32>
    %84 = vector.broadcast %83 : vector<8x1xf32> to vector<8x128xf32>
    %85 = arith.select %82, %84, %19 : vector<8x128xi1>, vector<8x128xf32>
    %c0_i32_35 = arith.constant 0 : i32
    %86 = vector.broadcast %c0_i32_35 : i32 to vector<8x128xi32>
    %87 = arith.cmpi eq, %13, %86 : vector<8x128xi32>
    %88 = vector.shape_cast %80 : vector<8x1xf32> to vector<8x1xf32>
    %89 = vector.broadcast %88 : vector<8x1xf32> to vector<8x128xf32>
    %90 = arith.select %87, %89, %20 : vector<8x128xi1>, vector<8x128xf32>
    %c1 = arith.constant 1 : index
    %c0_36 = arith.constant 0 : index
    %c0_37 = arith.constant 0 : index
    %91 = vector.load %arg0[%c1, %c0_36, %c0_37] : memref<12x8x128xf32, #tpu.memory_space<vmem>>, vector<1x8x128xf32>
    %92 = vector.shape_cast %91 : vector<1x8x128xf32> to vector<8x128xf32>
    %cst_38 = arith.constant dense<0.000000e+00> : vector<8x128xf32>
    %93 = tpu.matmul %43, %9, %cst_38 {dimension_numbers = #tpu.dot_dimension_numbers<[1], [0], [0], [1], [0, 0, 1, 1], [], []>} : vector<8x32xf32>, vector<32x128xf32>, vector<8x128xf32> -> vector<8x128xf32>
    %94 = arith.addf %92, %93 : vector<8x128xf32>
    %95 = vector.extract_strided_slice %94 {offsets = [0, 0], sizes = [8, 96], strides = [1, 1]} : vector<8x128xf32> to vector<8x96xf32>
    %cst_39 = arith.constant 5.000000e-01 : f32
    %96 = vector.broadcast %cst_39 : f32 to vector<8x96xf32>
    %97 = arith.mulf %96, %95 : vector<8x96xf32>
    %98 = math.tanh %97 : vector<8x96xf32>
    %cst_40 = arith.constant 5.000000e-01 : f32
    %99 = vector.broadcast %cst_40 : f32 to vector<8x96xf32>
    %100 = arith.mulf %99, %98 : vector<8x96xf32>
    %cst_41 = arith.constant 5.000000e-01 : f32
    %101 = vector.broadcast %cst_41 : f32 to vector<8x96xf32>
    %102 = arith.addf %100, %101 : vector<8x96xf32>
    %103 = vector.extract_strided_slice %94 {offsets = [0, 96], sizes = [8, 32], strides = [1, 1]} : vector<8x128xf32> to vector<8x32xf32>
    %104 = math.tanh %103 : vector<8x32xf32>
    %105 = vector.extract_strided_slice %102 {offsets = [0, 32], sizes = [8, 32], strides = [1, 1]} : vector<8x96xf32> to vector<8x32xf32>
    %106 = arith.mulf %105, %40 : vector<8x32xf32>
    %107 = vector.extract_strided_slice %102 {offsets = [0, 0], sizes = [8, 32], strides = [1, 1]} : vector<8x96xf32> to vector<8x32xf32>
    %108 = arith.mulf %107, %104 : vector<8x32xf32>
    %109 = arith.addf %106, %108 : vector<8x32xf32>
    %110 = vector.extract_strided_slice %102 {offsets = [0, 64], sizes = [8, 32], strides = [1, 1]} : vector<8x96xf32> to vector<8x32xf32>
    %111 = math.tanh %109 : vector<8x32xf32>
    %112 = arith.mulf %110, %111 : vector<8x32xf32>
    %113 = tpu.concatenate %112, %64 in 1 : vector<8x32xf32>, vector<8x32xf32> -> vector<8x64xf32>
    %cst_42 = arith.constant dense<0.000000e+00> : vector<8x128xf32>
    %114 = tpu.matmul %113, %10, %cst_42 {dimension_numbers = #tpu.dot_dimension_numbers<[1], [0], [0], [1], [0, 0, 1, 1], [], []>} : vector<8x64xf32>, vector<64x128xf32>, vector<8x128xf32> -> vector<8x128xf32>
    %115 = arith.addf %114, %5 : vector<8x128xf32>
    %116 = vector.extract_strided_slice %115 {offsets = [0, 0], sizes = [8, 96], strides = [1, 1]} : vector<8x128xf32> to vector<8x96xf32>
    %cst_43 = arith.constant 5.000000e-01 : f32
    %117 = vector.broadcast %cst_43 : f32 to vector<8x96xf32>
    %118 = arith.mulf %117, %116 : vector<8x96xf32>
    %119 = math.tanh %118 : vector<8x96xf32>
    %cst_44 = arith.constant 5.000000e-01 : f32
    %120 = vector.broadcast %cst_44 : f32 to vector<8x96xf32>
    %121 = arith.mulf %120, %119 : vector<8x96xf32>
    %cst_45 = arith.constant 5.000000e-01 : f32
    %122 = vector.broadcast %cst_45 : f32 to vector<8x96xf32>
    %123 = arith.addf %121, %122 : vector<8x96xf32>
    %124 = vector.extract_strided_slice %115 {offsets = [0, 96], sizes = [8, 32], strides = [1, 1]} : vector<8x128xf32> to vector<8x32xf32>
    %125 = math.tanh %124 : vector<8x32xf32>
    %126 = vector.extract_strided_slice %123 {offsets = [0, 32], sizes = [8, 32], strides = [1, 1]} : vector<8x96xf32> to vector<8x32xf32>
    %127 = arith.mulf %126, %61 : vector<8x32xf32>
    %128 = vector.extract_strided_slice %123 {offsets = [0, 0], sizes = [8, 32], strides = [1, 1]} : vector<8x96xf32> to vector<8x32xf32>
    %129 = arith.mulf %128, %125 : vector<8x32xf32>
    %130 = arith.addf %127, %129 : vector<8x32xf32>
    %131 = vector.extract_strided_slice %123 {offsets = [0, 64], sizes = [8, 32], strides = [1, 1]} : vector<8x96xf32> to vector<8x32xf32>
    %132 = math.tanh %130 : vector<8x32xf32>
    %133 = arith.mulf %131, %132 : vector<8x32xf32>
    %cst_46 = arith.constant 0.000000e+00 : f32
    %134 = vector.broadcast %cst_46 : f32 to vector<8x32xf32>
    %135 = arith.maximumf %133, %134 : vector<8x32xf32>
    %cst_47 = arith.constant dense<0.000000e+00> : vector<8x2xf32>
    %136 = tpu.matmul %135, %11, %cst_47 {dimension_numbers = #tpu.dot_dimension_numbers<[1], [0], [0], [1], [0, 0, 1, 1], [], []>} : vector<8x32xf32>, vector<32x2xf32>, vector<8x2xf32> -> vector<8x2xf32>
    %137 = arith.addf %136, %8 : vector<8x2xf32>
    %138 = vector.extract_strided_slice %137 {offsets = [0, 0], sizes = [8, 1], strides = [1, 1]} : vector<8x2xf32> to vector<8x1xf32>
    %139 = vector.extract_strided_slice %137 {offsets = [0, 1], sizes = [8, 1], strides = [1, 1]} : vector<8x2xf32> to vector<8x1xf32>
    %cst_48 = arith.constant 0.000000e+00 : f32
    %140 = vector.broadcast %cst_48 : f32 to vector<8x1xf32>
    %141 = arith.maximumf %139, %140 : vector<8x1xf32>
    %142 = math.absf %139 : vector<8x1xf32>
    %cst_49 = arith.constant 0.000000e+00 : f32
    %143 = vector.broadcast %cst_49 : f32 to vector<8x1xf32>
    %144 = arith.subf %143, %142 : vector<8x1xf32>
    %145 = math.exp %144 : vector<8x1xf32>
    %146 = math.log1p %145 : vector<8x1xf32>
    %147 = arith.addf %141, %146 : vector<8x1xf32>
    %cst_50 = arith.constant 9.99999997E-7 : f32
    %148 = vector.broadcast %cst_50 : f32 to vector<8x1xf32>
    %149 = arith.addf %147, %148 : vector<8x1xf32>
    %c1_i32 = arith.constant 1 : i32
    %150 = vector.broadcast %c1_i32 : i32 to vector<8x128xi32>
    %151 = arith.cmpi eq, %13, %150 : vector<8x128xi32>
    %152 = vector.shape_cast %138 : vector<8x1xf32> to vector<8x1xf32>
    %153 = vector.broadcast %152 : vector<8x1xf32> to vector<8x128xf32>
    %154 = arith.select %151, %153, %85 : vector<8x128xi1>, vector<8x128xf32>
    %c1_i32_51 = arith.constant 1 : i32
    %155 = vector.broadcast %c1_i32_51 : i32 to vector<8x128xi32>
    %156 = arith.cmpi eq, %13, %155 : vector<8x128xi32>
    %157 = vector.shape_cast %149 : vector<8x1xf32> to vector<8x1xf32>
    %158 = vector.broadcast %157 : vector<8x1xf32> to vector<8x128xf32>
    %159 = arith.select %156, %158, %90 : vector<8x128xi1>, vector<8x128xf32>
    %c2 = arith.constant 2 : index
    %c0_52 = arith.constant 0 : index
    %c0_53 = arith.constant 0 : index
    %160 = vector.load %arg0[%c2, %c0_52, %c0_53] : memref<12x8x128xf32, #tpu.memory_space<vmem>>, vector<1x8x128xf32>
    %161 = vector.shape_cast %160 : vector<1x8x128xf32> to vector<8x128xf32>
    %cst_54 = arith.constant dense<0.000000e+00> : vector<8x128xf32>
    %162 = tpu.matmul %112, %9, %cst_54 {dimension_numbers = #tpu.dot_dimension_numbers<[1], [0], [0], [1], [0, 0, 1, 1], [], []>} : vector<8x32xf32>, vector<32x128xf32>, vector<8x128xf32> -> vector<8x128xf32>
    %163 = arith.addf %161, %162 : vector<8x128xf32>
    %164 = vector.extract_strided_slice %163 {offsets = [0, 0], sizes = [8, 96], strides = [1, 1]} : vector<8x128xf32> to vector<8x96xf32>
    %cst_55 = arith.constant 5.000000e-01 : f32
    %165 = vector.broadcast %cst_55 : f32 to vector<8x96xf32>
    %166 = arith.mulf %165, %164 : vector<8x96xf32>
    %167 = math.tanh %166 : vector<8x96xf32>
    %cst_56 = arith.constant 5.000000e-01 : f32
    %168 = vector.broadcast %cst_56 : f32 to vector<8x96xf32>
    %169 = arith.mulf %168, %167 : vector<8x96xf32>
    %cst_57 = arith.constant 5.000000e-01 : f32
    %170 = vector.broadcast %cst_57 : f32 to vector<8x96xf32>
    %171 = arith.addf %169, %170 : vector<8x96xf32>
    %172 = vector.extract_strided_slice %163 {offsets = [0, 96], sizes = [8, 32], strides = [1, 1]} : vector<8x128xf32> to vector<8x32xf32>
    %173 = math.tanh %172 : vector<8x32xf32>
    %174 = vector.extract_strided_slice %171 {offsets = [0, 32], sizes = [8, 32], strides = [1, 1]} : vector<8x96xf32> to vector<8x32xf32>
    %175 = arith.mulf %174, %109 : vector<8x32xf32>
    %176 = vector.extract_strided_slice %171 {offsets = [0, 0], sizes = [8, 32], strides = [1, 1]} : vector<8x96xf32> to vector<8x32xf32>
    %177 = arith.mulf %176, %173 : vector<8x32xf32>
    %178 = arith.addf %175, %177 : vector<8x32xf32>
    %179 = vector.extract_strided_slice %171 {offsets = [0, 64], sizes = [8, 32], strides = [1, 1]} : vector<8x96xf32> to vector<8x32xf32>
    %180 = math.tanh %178 : vector<8x32xf32>
    %181 = arith.mulf %179, %180 : vector<8x32xf32>
    %182 = tpu.concatenate %181, %133 in 1 : vector<8x32xf32>, vector<8x32xf32> -> vector<8x64xf32>
    %cst_58 = arith.constant dense<0.000000e+00> : vector<8x128xf32>
    %183 = tpu.matmul %182, %10, %cst_58 {dimension_numbers = #tpu.dot_dimension_numbers<[1], [0], [0], [1], [0, 0, 1, 1], [], []>} : vector<8x64xf32>, vector<64x128xf32>, vector<8x128xf32> -> vector<8x128xf32>
    %184 = arith.addf %183, %5 : vector<8x128xf32>
    %185 = vector.extract_strided_slice %184 {offsets = [0, 0], sizes = [8, 96], strides = [1, 1]} : vector<8x128xf32> to vector<8x96xf32>
    %cst_59 = arith.constant 5.000000e-01 : f32
    %186 = vector.broadcast %cst_59 : f32 to vector<8x96xf32>
    %187 = arith.mulf %186, %185 : vector<8x96xf32>
    %188 = math.tanh %187 : vector<8x96xf32>
    %cst_60 = arith.constant 5.000000e-01 : f32
    %189 = vector.broadcast %cst_60 : f32 to vector<8x96xf32>
    %190 = arith.mulf %189, %188 : vector<8x96xf32>
    %cst_61 = arith.constant 5.000000e-01 : f32
    %191 = vector.broadcast %cst_61 : f32 to vector<8x96xf32>
    %192 = arith.addf %190, %191 : vector<8x96xf32>
    %193 = vector.extract_strided_slice %184 {offsets = [0, 96], sizes = [8, 32], strides = [1, 1]} : vector<8x128xf32> to vector<8x32xf32>
    %194 = math.tanh %193 : vector<8x32xf32>
    %195 = vector.extract_strided_slice %192 {offsets = [0, 32], sizes = [8, 32], strides = [1, 1]} : vector<8x96xf32> to vector<8x32xf32>
    %196 = arith.mulf %195, %130 : vector<8x32xf32>
    %197 = vector.extract_strided_slice %192 {offsets = [0, 0], sizes = [8, 32], strides = [1, 1]} : vector<8x96xf32> to vector<8x32xf32>
    %198 = arith.mulf %197, %194 : vector<8x32xf32>
    %199 = arith.addf %196, %198 : vector<8x32xf32>
    %200 = vector.extract_strided_slice %192 {offsets = [0, 64], sizes = [8, 32], strides = [1, 1]} : vector<8x96xf32> to vector<8x32xf32>
    %201 = math.tanh %199 : vector<8x32xf32>
    %202 = arith.mulf %200, %201 : vector<8x32xf32>
    %cst_62 = arith.constant 0.000000e+00 : f32
    %203 = vector.broadcast %cst_62 : f32 to vector<8x32xf32>
    %204 = arith.maximumf %202, %203 : vector<8x32xf32>
    %cst_63 = arith.constant dense<0.000000e+00> : vector<8x2xf32>
    %205 = tpu.matmul %204, %11, %cst_63 {dimension_numbers = #tpu.dot_dimension_numbers<[1], [0], [0], [1], [0, 0, 1, 1], [], []>} : vector<8x32xf32>, vector<32x2xf32>, vector<8x2xf32> -> vector<8x2xf32>
    %206 = arith.addf %205, %8 : vector<8x2xf32>
    %207 = vector.extract_strided_slice %206 {offsets = [0, 0], sizes = [8, 1], strides = [1, 1]} : vector<8x2xf32> to vector<8x1xf32>
    %208 = vector.extract_strided_slice %206 {offsets = [0, 1], sizes = [8, 1], strides = [1, 1]} : vector<8x2xf32> to vector<8x1xf32>
    %cst_64 = arith.constant 0.000000e+00 : f32
    %209 = vector.broadcast %cst_64 : f32 to vector<8x1xf32>
    %210 = arith.maximumf %208, %209 : vector<8x1xf32>
    %211 = math.absf %208 : vector<8x1xf32>
    %cst_65 = arith.constant 0.000000e+00 : f32
    %212 = vector.broadcast %cst_65 : f32 to vector<8x1xf32>
    %213 = arith.subf %212, %211 : vector<8x1xf32>
    %214 = math.exp %213 : vector<8x1xf32>
    %215 = math.log1p %214 : vector<8x1xf32>
    %216 = arith.addf %210, %215 : vector<8x1xf32>
    %cst_66 = arith.constant 9.99999997E-7 : f32
    %217 = vector.broadcast %cst_66 : f32 to vector<8x1xf32>
    %218 = arith.addf %216, %217 : vector<8x1xf32>
    %c2_i32 = arith.constant 2 : i32
    %219 = vector.broadcast %c2_i32 : i32 to vector<8x128xi32>
    %220 = arith.cmpi eq, %13, %219 : vector<8x128xi32>
    %221 = vector.shape_cast %207 : vector<8x1xf32> to vector<8x1xf32>
    %222 = vector.broadcast %221 : vector<8x1xf32> to vector<8x128xf32>
    %223 = arith.select %220, %222, %154 : vector<8x128xi1>, vector<8x128xf32>
    %c2_i32_67 = arith.constant 2 : i32
    %224 = vector.broadcast %c2_i32_67 : i32 to vector<8x128xi32>
    %225 = arith.cmpi eq, %13, %224 : vector<8x128xi32>
    %226 = vector.shape_cast %218 : vector<8x1xf32> to vector<8x1xf32>
    %227 = vector.broadcast %226 : vector<8x1xf32> to vector<8x128xf32>
    %228 = arith.select %225, %227, %159 : vector<8x128xi1>, vector<8x128xf32>
    %c3 = arith.constant 3 : index
    %c0_68 = arith.constant 0 : index
    %c0_69 = arith.constant 0 : index
    %229 = vector.load %arg0[%c3, %c0_68, %c0_69] : memref<12x8x128xf32, #tpu.memory_space<vmem>>, vector<1x8x128xf32>
    %230 = vector.shape_cast %229 : vector<1x8x128xf32> to vector<8x128xf32>
    %cst_70 = arith.constant dense<0.000000e+00> : vector<8x128xf32>
    %231 = tpu.matmul %181, %9, %cst_70 {dimension_numbers = #tpu.dot_dimension_numbers<[1], [0], [0], [1], [0, 0, 1, 1], [], []>} : vector<8x32xf32>, vector<32x128xf32>, vector<8x128xf32> -> vector<8x128xf32>
    %232 = arith.addf %230, %231 : vector<8x128xf32>
    %233 = vector.extract_strided_slice %232 {offsets = [0, 0], sizes = [8, 96], strides = [1, 1]} : vector<8x128xf32> to vector<8x96xf32>
    %cst_71 = arith.constant 5.000000e-01 : f32
    %234 = vector.broadcast %cst_71 : f32 to vector<8x96xf32>
    %235 = arith.mulf %234, %233 : vector<8x96xf32>
    %236 = math.tanh %235 : vector<8x96xf32>
    %cst_72 = arith.constant 5.000000e-01 : f32
    %237 = vector.broadcast %cst_72 : f32 to vector<8x96xf32>
    %238 = arith.mulf %237, %236 : vector<8x96xf32>
    %cst_73 = arith.constant 5.000000e-01 : f32
    %239 = vector.broadcast %cst_73 : f32 to vector<8x96xf32>
    %240 = arith.addf %238, %239 : vector<8x96xf32>
    %241 = vector.extract_strided_slice %232 {offsets = [0, 96], sizes = [8, 32], strides = [1, 1]} : vector<8x128xf32> to vector<8x32xf32>
    %242 = math.tanh %241 : vector<8x32xf32>
    %243 = vector.extract_strided_slice %240 {offsets = [0, 32], sizes = [8, 32], strides = [1, 1]} : vector<8x96xf32> to vector<8x32xf32>
    %244 = arith.mulf %243, %178 : vector<8x32xf32>
    %245 = vector.extract_strided_slice %240 {offsets = [0, 0], sizes = [8, 32], strides = [1, 1]} : vector<8x96xf32> to vector<8x32xf32>
    %246 = arith.mulf %245, %242 : vector<8x32xf32>
    %247 = arith.addf %244, %246 : vector<8x32xf32>
    %248 = vector.extract_strided_slice %240 {offsets = [0, 64], sizes = [8, 32], strides = [1, 1]} : vector<8x96xf32> to vector<8x32xf32>
    %249 = math.tanh %247 : vector<8x32xf32>
    %250 = arith.mulf %248, %249 : vector<8x32xf32>
    %251 = tpu.concatenate %250, %202 in 1 : vector<8x32xf32>, vector<8x32xf32> -> vector<8x64xf32>
    %cst_74 = arith.constant dense<0.000000e+00> : vector<8x128xf32>
    %252 = tpu.matmul %251, %10, %cst_74 {dimension_numbers = #tpu.dot_dimension_numbers<[1], [0], [0], [1], [0, 0, 1, 1], [], []>} : vector<8x64xf32>, vector<64x128xf32>, vector<8x128xf32> -> vector<8x128xf32>
    %253 = arith.addf %252, %5 : vector<8x128xf32>
    %254 = vector.extract_strided_slice %253 {offsets = [0, 0], sizes = [8, 96], strides = [1, 1]} : vector<8x128xf32> to vector<8x96xf32>
    %cst_75 = arith.constant 5.000000e-01 : f32
    %255 = vector.broadcast %cst_75 : f32 to vector<8x96xf32>
    %256 = arith.mulf %255, %254 : vector<8x96xf32>
    %257 = math.tanh %256 : vector<8x96xf32>
    %cst_76 = arith.constant 5.000000e-01 : f32
    %258 = vector.broadcast %cst_76 : f32 to vector<8x96xf32>
    %259 = arith.mulf %258, %257 : vector<8x96xf32>
    %cst_77 = arith.constant 5.000000e-01 : f32
    %260 = vector.broadcast %cst_77 : f32 to vector<8x96xf32>
    %261 = arith.addf %259, %260 : vector<8x96xf32>
    %262 = vector.extract_strided_slice %253 {offsets = [0, 96], sizes = [8, 32], strides = [1, 1]} : vector<8x128xf32> to vector<8x32xf32>
    %263 = math.tanh %262 : vector<8x32xf32>
    %264 = vector.extract_strided_slice %261 {offsets = [0, 32], sizes = [8, 32], strides = [1, 1]} : vector<8x96xf32> to vector<8x32xf32>
    %265 = arith.mulf %264, %199 : vector<8x32xf32>
    %266 = vector.extract_strided_slice %261 {offsets = [0, 0], sizes = [8, 32], strides = [1, 1]} : vector<8x96xf32> to vector<8x32xf32>
    %267 = arith.mulf %266, %263 : vector<8x32xf32>
    %268 = arith.addf %265, %267 : vector<8x32xf32>
    %269 = vector.extract_strided_slice %261 {offsets = [0, 64], sizes = [8, 32], strides = [1, 1]} : vector<8x96xf32> to vector<8x32xf32>
    %270 = math.tanh %268 : vector<8x32xf32>
    %271 = arith.mulf %269, %270 : vector<8x32xf32>
    %cst_78 = arith.constant 0.000000e+00 : f32
    %272 = vector.broadcast %cst_78 : f32 to vector<8x32xf32>
    %273 = arith.maximumf %271, %272 : vector<8x32xf32>
    %cst_79 = arith.constant dense<0.000000e+00> : vector<8x2xf32>
    %274 = tpu.matmul %273, %11, %cst_79 {dimension_numbers = #tpu.dot_dimension_numbers<[1], [0], [0], [1], [0, 0, 1, 1], [], []>} : vector<8x32xf32>, vector<32x2xf32>, vector<8x2xf32> -> vector<8x2xf32>
    %275 = arith.addf %274, %8 : vector<8x2xf32>
    %276 = vector.extract_strided_slice %275 {offsets = [0, 0], sizes = [8, 1], strides = [1, 1]} : vector<8x2xf32> to vector<8x1xf32>
    %277 = vector.extract_strided_slice %275 {offsets = [0, 1], sizes = [8, 1], strides = [1, 1]} : vector<8x2xf32> to vector<8x1xf32>
    %cst_80 = arith.constant 0.000000e+00 : f32
    %278 = vector.broadcast %cst_80 : f32 to vector<8x1xf32>
    %279 = arith.maximumf %277, %278 : vector<8x1xf32>
    %280 = math.absf %277 : vector<8x1xf32>
    %cst_81 = arith.constant 0.000000e+00 : f32
    %281 = vector.broadcast %cst_81 : f32 to vector<8x1xf32>
    %282 = arith.subf %281, %280 : vector<8x1xf32>
    %283 = math.exp %282 : vector<8x1xf32>
    %284 = math.log1p %283 : vector<8x1xf32>
    %285 = arith.addf %279, %284 : vector<8x1xf32>
    %cst_82 = arith.constant 9.99999997E-7 : f32
    %286 = vector.broadcast %cst_82 : f32 to vector<8x1xf32>
    %287 = arith.addf %285, %286 : vector<8x1xf32>
    %c3_i32 = arith.constant 3 : i32
    %288 = vector.broadcast %c3_i32 : i32 to vector<8x128xi32>
    %289 = arith.cmpi eq, %13, %288 : vector<8x128xi32>
    %290 = vector.shape_cast %276 : vector<8x1xf32> to vector<8x1xf32>
    %291 = vector.broadcast %290 : vector<8x1xf32> to vector<8x128xf32>
    %292 = arith.select %289, %291, %223 : vector<8x128xi1>, vector<8x128xf32>
    %c3_i32_83 = arith.constant 3 : i32
    %293 = vector.broadcast %c3_i32_83 : i32 to vector<8x128xi32>
    %294 = arith.cmpi eq, %13, %293 : vector<8x128xi32>
    %295 = vector.shape_cast %287 : vector<8x1xf32> to vector<8x1xf32>
    %296 = vector.broadcast %295 : vector<8x1xf32> to vector<8x128xf32>
    %297 = arith.select %294, %296, %228 : vector<8x128xi1>, vector<8x128xf32>
    %c4 = arith.constant 4 : index
    %c0_84 = arith.constant 0 : index
    %c0_85 = arith.constant 0 : index
    %298 = vector.load %arg0[%c4, %c0_84, %c0_85] : memref<12x8x128xf32, #tpu.memory_space<vmem>>, vector<1x8x128xf32>
    %299 = vector.shape_cast %298 : vector<1x8x128xf32> to vector<8x128xf32>
    %cst_86 = arith.constant dense<0.000000e+00> : vector<8x128xf32>
    %300 = tpu.matmul %250, %9, %cst_86 {dimension_numbers = #tpu.dot_dimension_numbers<[1], [0], [0], [1], [0, 0, 1, 1], [], []>} : vector<8x32xf32>, vector<32x128xf32>, vector<8x128xf32> -> vector<8x128xf32>
    %301 = arith.addf %299, %300 : vector<8x128xf32>
    %302 = vector.extract_strided_slice %301 {offsets = [0, 0], sizes = [8, 96], strides = [1, 1]} : vector<8x128xf32> to vector<8x96xf32>
    %cst_87 = arith.constant 5.000000e-01 : f32
    %303 = vector.broadcast %cst_87 : f32 to vector<8x96xf32>
    %304 = arith.mulf %303, %302 : vector<8x96xf32>
    %305 = math.tanh %304 : vector<8x96xf32>
    %cst_88 = arith.constant 5.000000e-01 : f32
    %306 = vector.broadcast %cst_88 : f32 to vector<8x96xf32>
    %307 = arith.mulf %306, %305 : vector<8x96xf32>
    %cst_89 = arith.constant 5.000000e-01 : f32
    %308 = vector.broadcast %cst_89 : f32 to vector<8x96xf32>
    %309 = arith.addf %307, %308 : vector<8x96xf32>
    %310 = vector.extract_strided_slice %301 {offsets = [0, 96], sizes = [8, 32], strides = [1, 1]} : vector<8x128xf32> to vector<8x32xf32>
    %311 = math.tanh %310 : vector<8x32xf32>
    %312 = vector.extract_strided_slice %309 {offsets = [0, 32], sizes = [8, 32], strides = [1, 1]} : vector<8x96xf32> to vector<8x32xf32>
    %313 = arith.mulf %312, %247 : vector<8x32xf32>
    %314 = vector.extract_strided_slice %309 {offsets = [0, 0], sizes = [8, 32], strides = [1, 1]} : vector<8x96xf32> to vector<8x32xf32>
    %315 = arith.mulf %314, %311 : vector<8x32xf32>
    %316 = arith.addf %313, %315 : vector<8x32xf32>
    %317 = vector.extract_strided_slice %309 {offsets = [0, 64], sizes = [8, 32], strides = [1, 1]} : vector<8x96xf32> to vector<8x32xf32>
    %318 = math.tanh %316 : vector<8x32xf32>
    %319 = arith.mulf %317, %318 : vector<8x32xf32>
    %320 = tpu.concatenate %319, %271 in 1 : vector<8x32xf32>, vector<8x32xf32> -> vector<8x64xf32>
    %cst_90 = arith.constant dense<0.000000e+00> : vector<8x128xf32>
    %321 = tpu.matmul %320, %10, %cst_90 {dimension_numbers = #tpu.dot_dimension_numbers<[1], [0], [0], [1], [0, 0, 1, 1], [], []>} : vector<8x64xf32>, vector<64x128xf32>, vector<8x128xf32> -> vector<8x128xf32>
    %322 = arith.addf %321, %5 : vector<8x128xf32>
    %323 = vector.extract_strided_slice %322 {offsets = [0, 0], sizes = [8, 96], strides = [1, 1]} : vector<8x128xf32> to vector<8x96xf32>
    %cst_91 = arith.constant 5.000000e-01 : f32
    %324 = vector.broadcast %cst_91 : f32 to vector<8x96xf32>
    %325 = arith.mulf %324, %323 : vector<8x96xf32>
    %326 = math.tanh %325 : vector<8x96xf32>
    %cst_92 = arith.constant 5.000000e-01 : f32
    %327 = vector.broadcast %cst_92 : f32 to vector<8x96xf32>
    %328 = arith.mulf %327, %326 : vector<8x96xf32>
    %cst_93 = arith.constant 5.000000e-01 : f32
    %329 = vector.broadcast %cst_93 : f32 to vector<8x96xf32>
    %330 = arith.addf %328, %329 : vector<8x96xf32>
    %331 = vector.extract_strided_slice %322 {offsets = [0, 96], sizes = [8, 32], strides = [1, 1]} : vector<8x128xf32> to vector<8x32xf32>
    %332 = math.tanh %331 : vector<8x32xf32>
    %333 = vector.extract_strided_slice %330 {offsets = [0, 32], sizes = [8, 32], strides = [1, 1]} : vector<8x96xf32> to vector<8x32xf32>
    %334 = arith.mulf %333, %268 : vector<8x32xf32>
    %335 = vector.extract_strided_slice %330 {offsets = [0, 0], sizes = [8, 32], strides = [1, 1]} : vector<8x96xf32> to vector<8x32xf32>
    %336 = arith.mulf %335, %332 : vector<8x32xf32>
    %337 = arith.addf %334, %336 : vector<8x32xf32>
    %338 = vector.extract_strided_slice %330 {offsets = [0, 64], sizes = [8, 32], strides = [1, 1]} : vector<8x96xf32> to vector<8x32xf32>
    %339 = math.tanh %337 : vector<8x32xf32>
    %340 = arith.mulf %338, %339 : vector<8x32xf32>
    %cst_94 = arith.constant 0.000000e+00 : f32
    %341 = vector.broadcast %cst_94 : f32 to vector<8x32xf32>
    %342 = arith.maximumf %340, %341 : vector<8x32xf32>
    %cst_95 = arith.constant dense<0.000000e+00> : vector<8x2xf32>
    %343 = tpu.matmul %342, %11, %cst_95 {dimension_numbers = #tpu.dot_dimension_numbers<[1], [0], [0], [1], [0, 0, 1, 1], [], []>} : vector<8x32xf32>, vector<32x2xf32>, vector<8x2xf32> -> vector<8x2xf32>
    %344 = arith.addf %343, %8 : vector<8x2xf32>
    %345 = vector.extract_strided_slice %344 {offsets = [0, 0], sizes = [8, 1], strides = [1, 1]} : vector<8x2xf32> to vector<8x1xf32>
    %346 = vector.extract_strided_slice %344 {offsets = [0, 1], sizes = [8, 1], strides = [1, 1]} : vector<8x2xf32> to vector<8x1xf32>
    %cst_96 = arith.constant 0.000000e+00 : f32
    %347 = vector.broadcast %cst_96 : f32 to vector<8x1xf32>
    %348 = arith.maximumf %346, %347 : vector<8x1xf32>
    %349 = math.absf %346 : vector<8x1xf32>
    %cst_97 = arith.constant 0.000000e+00 : f32
    %350 = vector.broadcast %cst_97 : f32 to vector<8x1xf32>
    %351 = arith.subf %350, %349 : vector<8x1xf32>
    %352 = math.exp %351 : vector<8x1xf32>
    %353 = math.log1p %352 : vector<8x1xf32>
    %354 = arith.addf %348, %353 : vector<8x1xf32>
    %cst_98 = arith.constant 9.99999997E-7 : f32
    %355 = vector.broadcast %cst_98 : f32 to vector<8x1xf32>
    %356 = arith.addf %354, %355 : vector<8x1xf32>
    %c4_i32 = arith.constant 4 : i32
    %357 = vector.broadcast %c4_i32 : i32 to vector<8x128xi32>
    %358 = arith.cmpi eq, %13, %357 : vector<8x128xi32>
    %359 = vector.shape_cast %345 : vector<8x1xf32> to vector<8x1xf32>
    %360 = vector.broadcast %359 : vector<8x1xf32> to vector<8x128xf32>
    %361 = arith.select %358, %360, %292 : vector<8x128xi1>, vector<8x128xf32>
    %c4_i32_99 = arith.constant 4 : i32
    %362 = vector.broadcast %c4_i32_99 : i32 to vector<8x128xi32>
    %363 = arith.cmpi eq, %13, %362 : vector<8x128xi32>
    %364 = vector.shape_cast %356 : vector<8x1xf32> to vector<8x1xf32>
    %365 = vector.broadcast %364 : vector<8x1xf32> to vector<8x128xf32>
    %366 = arith.select %363, %365, %297 : vector<8x128xi1>, vector<8x128xf32>
    %c5 = arith.constant 5 : index
    %c0_100 = arith.constant 0 : index
    %c0_101 = arith.constant 0 : index
    %367 = vector.load %arg0[%c5, %c0_100, %c0_101] : memref<12x8x128xf32, #tpu.memory_space<vmem>>, vector<1x8x128xf32>
    %368 = vector.shape_cast %367 : vector<1x8x128xf32> to vector<8x128xf32>
    %cst_102 = arith.constant dense<0.000000e+00> : vector<8x128xf32>
    %369 = tpu.matmul %319, %9, %cst_102 {dimension_numbers = #tpu.dot_dimension_numbers<[1], [0], [0], [1], [0, 0, 1, 1], [], []>} : vector<8x32xf32>, vector<32x128xf32>, vector<8x128xf32> -> vector<8x128xf32>
    %370 = arith.addf %368, %369 : vector<8x128xf32>
    %371 = vector.extract_strided_slice %370 {offsets = [0, 0], sizes = [8, 96], strides = [1, 1]} : vector<8x128xf32> to vector<8x96xf32>
    %cst_103 = arith.constant 5.000000e-01 : f32
    %372 = vector.broadcast %cst_103 : f32 to vector<8x96xf32>
    %373 = arith.mulf %372, %371 : vector<8x96xf32>
    %374 = math.tanh %373 : vector<8x96xf32>
    %cst_104 = arith.constant 5.000000e-01 : f32
    %375 = vector.broadcast %cst_104 : f32 to vector<8x96xf32>
    %376 = arith.mulf %375, %374 : vector<8x96xf32>
    %cst_105 = arith.constant 5.000000e-01 : f32
    %377 = vector.broadcast %cst_105 : f32 to vector<8x96xf32>
    %378 = arith.addf %376, %377 : vector<8x96xf32>
    %379 = vector.extract_strided_slice %370 {offsets = [0, 96], sizes = [8, 32], strides = [1, 1]} : vector<8x128xf32> to vector<8x32xf32>
    %380 = math.tanh %379 : vector<8x32xf32>
    %381 = vector.extract_strided_slice %378 {offsets = [0, 32], sizes = [8, 32], strides = [1, 1]} : vector<8x96xf32> to vector<8x32xf32>
    %382 = arith.mulf %381, %316 : vector<8x32xf32>
    %383 = vector.extract_strided_slice %378 {offsets = [0, 0], sizes = [8, 32], strides = [1, 1]} : vector<8x96xf32> to vector<8x32xf32>
    %384 = arith.mulf %383, %380 : vector<8x32xf32>
    %385 = arith.addf %382, %384 : vector<8x32xf32>
    %386 = vector.extract_strided_slice %378 {offsets = [0, 64], sizes = [8, 32], strides = [1, 1]} : vector<8x96xf32> to vector<8x32xf32>
    %387 = math.tanh %385 : vector<8x32xf32>
    %388 = arith.mulf %386, %387 : vector<8x32xf32>
    %389 = tpu.concatenate %388, %340 in 1 : vector<8x32xf32>, vector<8x32xf32> -> vector<8x64xf32>
    %cst_106 = arith.constant dense<0.000000e+00> : vector<8x128xf32>
    %390 = tpu.matmul %389, %10, %cst_106 {dimension_numbers = #tpu.dot_dimension_numbers<[1], [0], [0], [1], [0, 0, 1, 1], [], []>} : vector<8x64xf32>, vector<64x128xf32>, vector<8x128xf32> -> vector<8x128xf32>
    %391 = arith.addf %390, %5 : vector<8x128xf32>
    %392 = vector.extract_strided_slice %391 {offsets = [0, 0], sizes = [8, 96], strides = [1, 1]} : vector<8x128xf32> to vector<8x96xf32>
    %cst_107 = arith.constant 5.000000e-01 : f32
    %393 = vector.broadcast %cst_107 : f32 to vector<8x96xf32>
    %394 = arith.mulf %393, %392 : vector<8x96xf32>
    %395 = math.tanh %394 : vector<8x96xf32>
    %cst_108 = arith.constant 5.000000e-01 : f32
    %396 = vector.broadcast %cst_108 : f32 to vector<8x96xf32>
    %397 = arith.mulf %396, %395 : vector<8x96xf32>
    %cst_109 = arith.constant 5.000000e-01 : f32
    %398 = vector.broadcast %cst_109 : f32 to vector<8x96xf32>
    %399 = arith.addf %397, %398 : vector<8x96xf32>
    %400 = vector.extract_strided_slice %391 {offsets = [0, 96], sizes = [8, 32], strides = [1, 1]} : vector<8x128xf32> to vector<8x32xf32>
    %401 = math.tanh %400 : vector<8x32xf32>
    %402 = vector.extract_strided_slice %399 {offsets = [0, 32], sizes = [8, 32], strides = [1, 1]} : vector<8x96xf32> to vector<8x32xf32>
    %403 = arith.mulf %402, %337 : vector<8x32xf32>
    %404 = vector.extract_strided_slice %399 {offsets = [0, 0], sizes = [8, 32], strides = [1, 1]} : vector<8x96xf32> to vector<8x32xf32>
    %405 = arith.mulf %404, %401 : vector<8x32xf32>
    %406 = arith.addf %403, %405 : vector<8x32xf32>
    %407 = vector.extract_strided_slice %399 {offsets = [0, 64], sizes = [8, 32], strides = [1, 1]} : vector<8x96xf32> to vector<8x32xf32>
    %408 = math.tanh %406 : vector<8x32xf32>
    %409 = arith.mulf %407, %408 : vector<8x32xf32>
    %cst_110 = arith.constant 0.000000e+00 : f32
    %410 = vector.broadcast %cst_110 : f32 to vector<8x32xf32>
    %411 = arith.maximumf %409, %410 : vector<8x32xf32>
    %cst_111 = arith.constant dense<0.000000e+00> : vector<8x2xf32>
    %412 = tpu.matmul %411, %11, %cst_111 {dimension_numbers = #tpu.dot_dimension_numbers<[1], [0], [0], [1], [0, 0, 1, 1], [], []>} : vector<8x32xf32>, vector<32x2xf32>, vector<8x2xf32> -> vector<8x2xf32>
    %413 = arith.addf %412, %8 : vector<8x2xf32>
    %414 = vector.extract_strided_slice %413 {offsets = [0, 0], sizes = [8, 1], strides = [1, 1]} : vector<8x2xf32> to vector<8x1xf32>
    %415 = vector.extract_strided_slice %413 {offsets = [0, 1], sizes = [8, 1], strides = [1, 1]} : vector<8x2xf32> to vector<8x1xf32>
    %cst_112 = arith.constant 0.000000e+00 : f32
    %416 = vector.broadcast %cst_112 : f32 to vector<8x1xf32>
    %417 = arith.maximumf %415, %416 : vector<8x1xf32>
    %418 = math.absf %415 : vector<8x1xf32>
    %cst_113 = arith.constant 0.000000e+00 : f32
    %419 = vector.broadcast %cst_113 : f32 to vector<8x1xf32>
    %420 = arith.subf %419, %418 : vector<8x1xf32>
    %421 = math.exp %420 : vector<8x1xf32>
    %422 = math.log1p %421 : vector<8x1xf32>
    %423 = arith.addf %417, %422 : vector<8x1xf32>
    %cst_114 = arith.constant 9.99999997E-7 : f32
    %424 = vector.broadcast %cst_114 : f32 to vector<8x1xf32>
    %425 = arith.addf %423, %424 : vector<8x1xf32>
    %c5_i32 = arith.constant 5 : i32
    %426 = vector.broadcast %c5_i32 : i32 to vector<8x128xi32>
    %427 = arith.cmpi eq, %13, %426 : vector<8x128xi32>
    %428 = vector.shape_cast %414 : vector<8x1xf32> to vector<8x1xf32>
    %429 = vector.broadcast %428 : vector<8x1xf32> to vector<8x128xf32>
    %430 = arith.select %427, %429, %361 : vector<8x128xi1>, vector<8x128xf32>
    %c5_i32_115 = arith.constant 5 : i32
    %431 = vector.broadcast %c5_i32_115 : i32 to vector<8x128xi32>
    %432 = arith.cmpi eq, %13, %431 : vector<8x128xi32>
    %433 = vector.shape_cast %425 : vector<8x1xf32> to vector<8x1xf32>
    %434 = vector.broadcast %433 : vector<8x1xf32> to vector<8x128xf32>
    %435 = arith.select %432, %434, %366 : vector<8x128xi1>, vector<8x128xf32>
    %c6 = arith.constant 6 : index
    %c0_116 = arith.constant 0 : index
    %c0_117 = arith.constant 0 : index
    %436 = vector.load %arg0[%c6, %c0_116, %c0_117] : memref<12x8x128xf32, #tpu.memory_space<vmem>>, vector<1x8x128xf32>
    %437 = vector.shape_cast %436 : vector<1x8x128xf32> to vector<8x128xf32>
    %cst_118 = arith.constant dense<0.000000e+00> : vector<8x128xf32>
    %438 = tpu.matmul %388, %9, %cst_118 {dimension_numbers = #tpu.dot_dimension_numbers<[1], [0], [0], [1], [0, 0, 1, 1], [], []>} : vector<8x32xf32>, vector<32x128xf32>, vector<8x128xf32> -> vector<8x128xf32>
    %439 = arith.addf %437, %438 : vector<8x128xf32>
    %440 = vector.extract_strided_slice %439 {offsets = [0, 0], sizes = [8, 96], strides = [1, 1]} : vector<8x128xf32> to vector<8x96xf32>
    %cst_119 = arith.constant 5.000000e-01 : f32
    %441 = vector.broadcast %cst_119 : f32 to vector<8x96xf32>
    %442 = arith.mulf %441, %440 : vector<8x96xf32>
    %443 = math.tanh %442 : vector<8x96xf32>
    %cst_120 = arith.constant 5.000000e-01 : f32
    %444 = vector.broadcast %cst_120 : f32 to vector<8x96xf32>
    %445 = arith.mulf %444, %443 : vector<8x96xf32>
    %cst_121 = arith.constant 5.000000e-01 : f32
    %446 = vector.broadcast %cst_121 : f32 to vector<8x96xf32>
    %447 = arith.addf %445, %446 : vector<8x96xf32>
    %448 = vector.extract_strided_slice %439 {offsets = [0, 96], sizes = [8, 32], strides = [1, 1]} : vector<8x128xf32> to vector<8x32xf32>
    %449 = math.tanh %448 : vector<8x32xf32>
    %450 = vector.extract_strided_slice %447 {offsets = [0, 32], sizes = [8, 32], strides = [1, 1]} : vector<8x96xf32> to vector<8x32xf32>
    %451 = arith.mulf %450, %385 : vector<8x32xf32>
    %452 = vector.extract_strided_slice %447 {offsets = [0, 0], sizes = [8, 32], strides = [1, 1]} : vector<8x96xf32> to vector<8x32xf32>
    %453 = arith.mulf %452, %449 : vector<8x32xf32>
    %454 = arith.addf %451, %453 : vector<8x32xf32>
    %455 = vector.extract_strided_slice %447 {offsets = [0, 64], sizes = [8, 32], strides = [1, 1]} : vector<8x96xf32> to vector<8x32xf32>
    %456 = math.tanh %454 : vector<8x32xf32>
    %457 = arith.mulf %455, %456 : vector<8x32xf32>
    %458 = tpu.concatenate %457, %409 in 1 : vector<8x32xf32>, vector<8x32xf32> -> vector<8x64xf32>
    %cst_122 = arith.constant dense<0.000000e+00> : vector<8x128xf32>
    %459 = tpu.matmul %458, %10, %cst_122 {dimension_numbers = #tpu.dot_dimension_numbers<[1], [0], [0], [1], [0, 0, 1, 1], [], []>} : vector<8x64xf32>, vector<64x128xf32>, vector<8x128xf32> -> vector<8x128xf32>
    %460 = arith.addf %459, %5 : vector<8x128xf32>
    %461 = vector.extract_strided_slice %460 {offsets = [0, 0], sizes = [8, 96], strides = [1, 1]} : vector<8x128xf32> to vector<8x96xf32>
    %cst_123 = arith.constant 5.000000e-01 : f32
    %462 = vector.broadcast %cst_123 : f32 to vector<8x96xf32>
    %463 = arith.mulf %462, %461 : vector<8x96xf32>
    %464 = math.tanh %463 : vector<8x96xf32>
    %cst_124 = arith.constant 5.000000e-01 : f32
    %465 = vector.broadcast %cst_124 : f32 to vector<8x96xf32>
    %466 = arith.mulf %465, %464 : vector<8x96xf32>
    %cst_125 = arith.constant 5.000000e-01 : f32
    %467 = vector.broadcast %cst_125 : f32 to vector<8x96xf32>
    %468 = arith.addf %466, %467 : vector<8x96xf32>
    %469 = vector.extract_strided_slice %460 {offsets = [0, 96], sizes = [8, 32], strides = [1, 1]} : vector<8x128xf32> to vector<8x32xf32>
    %470 = math.tanh %469 : vector<8x32xf32>
    %471 = vector.extract_strided_slice %468 {offsets = [0, 32], sizes = [8, 32], strides = [1, 1]} : vector<8x96xf32> to vector<8x32xf32>
    %472 = arith.mulf %471, %406 : vector<8x32xf32>
    %473 = vector.extract_strided_slice %468 {offsets = [0, 0], sizes = [8, 32], strides = [1, 1]} : vector<8x96xf32> to vector<8x32xf32>
    %474 = arith.mulf %473, %470 : vector<8x32xf32>
    %475 = arith.addf %472, %474 : vector<8x32xf32>
    %476 = vector.extract_strided_slice %468 {offsets = [0, 64], sizes = [8, 32], strides = [1, 1]} : vector<8x96xf32> to vector<8x32xf32>
    %477 = math.tanh %475 : vector<8x32xf32>
    %478 = arith.mulf %476, %477 : vector<8x32xf32>
    %cst_126 = arith.constant 0.000000e+00 : f32
    %479 = vector.broadcast %cst_126 : f32 to vector<8x32xf32>
    %480 = arith.maximumf %478, %479 : vector<8x32xf32>
    %cst_127 = arith.constant dense<0.000000e+00> : vector<8x2xf32>
    %481 = tpu.matmul %480, %11, %cst_127 {dimension_numbers = #tpu.dot_dimension_numbers<[1], [0], [0], [1], [0, 0, 1, 1], [], []>} : vector<8x32xf32>, vector<32x2xf32>, vector<8x2xf32> -> vector<8x2xf32>
    %482 = arith.addf %481, %8 : vector<8x2xf32>
    %483 = vector.extract_strided_slice %482 {offsets = [0, 0], sizes = [8, 1], strides = [1, 1]} : vector<8x2xf32> to vector<8x1xf32>
    %484 = vector.extract_strided_slice %482 {offsets = [0, 1], sizes = [8, 1], strides = [1, 1]} : vector<8x2xf32> to vector<8x1xf32>
    %cst_128 = arith.constant 0.000000e+00 : f32
    %485 = vector.broadcast %cst_128 : f32 to vector<8x1xf32>
    %486 = arith.maximumf %484, %485 : vector<8x1xf32>
    %487 = math.absf %484 : vector<8x1xf32>
    %cst_129 = arith.constant 0.000000e+00 : f32
    %488 = vector.broadcast %cst_129 : f32 to vector<8x1xf32>
    %489 = arith.subf %488, %487 : vector<8x1xf32>
    %490 = math.exp %489 : vector<8x1xf32>
    %491 = math.log1p %490 : vector<8x1xf32>
    %492 = arith.addf %486, %491 : vector<8x1xf32>
    %cst_130 = arith.constant 9.99999997E-7 : f32
    %493 = vector.broadcast %cst_130 : f32 to vector<8x1xf32>
    %494 = arith.addf %492, %493 : vector<8x1xf32>
    %c6_i32 = arith.constant 6 : i32
    %495 = vector.broadcast %c6_i32 : i32 to vector<8x128xi32>
    %496 = arith.cmpi eq, %13, %495 : vector<8x128xi32>
    %497 = vector.shape_cast %483 : vector<8x1xf32> to vector<8x1xf32>
    %498 = vector.broadcast %497 : vector<8x1xf32> to vector<8x128xf32>
    %499 = arith.select %496, %498, %430 : vector<8x128xi1>, vector<8x128xf32>
    %c6_i32_131 = arith.constant 6 : i32
    %500 = vector.broadcast %c6_i32_131 : i32 to vector<8x128xi32>
    %501 = arith.cmpi eq, %13, %500 : vector<8x128xi32>
    %502 = vector.shape_cast %494 : vector<8x1xf32> to vector<8x1xf32>
    %503 = vector.broadcast %502 : vector<8x1xf32> to vector<8x128xf32>
    %504 = arith.select %501, %503, %435 : vector<8x128xi1>, vector<8x128xf32>
    %c7 = arith.constant 7 : index
    %c0_132 = arith.constant 0 : index
    %c0_133 = arith.constant 0 : index
    %505 = vector.load %arg0[%c7, %c0_132, %c0_133] : memref<12x8x128xf32, #tpu.memory_space<vmem>>, vector<1x8x128xf32>
    %506 = vector.shape_cast %505 : vector<1x8x128xf32> to vector<8x128xf32>
    %cst_134 = arith.constant dense<0.000000e+00> : vector<8x128xf32>
    %507 = tpu.matmul %457, %9, %cst_134 {dimension_numbers = #tpu.dot_dimension_numbers<[1], [0], [0], [1], [0, 0, 1, 1], [], []>} : vector<8x32xf32>, vector<32x128xf32>, vector<8x128xf32> -> vector<8x128xf32>
    %508 = arith.addf %506, %507 : vector<8x128xf32>
    %509 = vector.extract_strided_slice %508 {offsets = [0, 0], sizes = [8, 96], strides = [1, 1]} : vector<8x128xf32> to vector<8x96xf32>
    %cst_135 = arith.constant 5.000000e-01 : f32
    %510 = vector.broadcast %cst_135 : f32 to vector<8x96xf32>
    %511 = arith.mulf %510, %509 : vector<8x96xf32>
    %512 = math.tanh %511 : vector<8x96xf32>
    %cst_136 = arith.constant 5.000000e-01 : f32
    %513 = vector.broadcast %cst_136 : f32 to vector<8x96xf32>
    %514 = arith.mulf %513, %512 : vector<8x96xf32>
    %cst_137 = arith.constant 5.000000e-01 : f32
    %515 = vector.broadcast %cst_137 : f32 to vector<8x96xf32>
    %516 = arith.addf %514, %515 : vector<8x96xf32>
    %517 = vector.extract_strided_slice %508 {offsets = [0, 96], sizes = [8, 32], strides = [1, 1]} : vector<8x128xf32> to vector<8x32xf32>
    %518 = math.tanh %517 : vector<8x32xf32>
    %519 = vector.extract_strided_slice %516 {offsets = [0, 32], sizes = [8, 32], strides = [1, 1]} : vector<8x96xf32> to vector<8x32xf32>
    %520 = arith.mulf %519, %454 : vector<8x32xf32>
    %521 = vector.extract_strided_slice %516 {offsets = [0, 0], sizes = [8, 32], strides = [1, 1]} : vector<8x96xf32> to vector<8x32xf32>
    %522 = arith.mulf %521, %518 : vector<8x32xf32>
    %523 = arith.addf %520, %522 : vector<8x32xf32>
    %524 = vector.extract_strided_slice %516 {offsets = [0, 64], sizes = [8, 32], strides = [1, 1]} : vector<8x96xf32> to vector<8x32xf32>
    %525 = math.tanh %523 : vector<8x32xf32>
    %526 = arith.mulf %524, %525 : vector<8x32xf32>
    %527 = tpu.concatenate %526, %478 in 1 : vector<8x32xf32>, vector<8x32xf32> -> vector<8x64xf32>
    %cst_138 = arith.constant dense<0.000000e+00> : vector<8x128xf32>
    %528 = tpu.matmul %527, %10, %cst_138 {dimension_numbers = #tpu.dot_dimension_numbers<[1], [0], [0], [1], [0, 0, 1, 1], [], []>} : vector<8x64xf32>, vector<64x128xf32>, vector<8x128xf32> -> vector<8x128xf32>
    %529 = arith.addf %528, %5 : vector<8x128xf32>
    %530 = vector.extract_strided_slice %529 {offsets = [0, 0], sizes = [8, 96], strides = [1, 1]} : vector<8x128xf32> to vector<8x96xf32>
    %cst_139 = arith.constant 5.000000e-01 : f32
    %531 = vector.broadcast %cst_139 : f32 to vector<8x96xf32>
    %532 = arith.mulf %531, %530 : vector<8x96xf32>
    %533 = math.tanh %532 : vector<8x96xf32>
    %cst_140 = arith.constant 5.000000e-01 : f32
    %534 = vector.broadcast %cst_140 : f32 to vector<8x96xf32>
    %535 = arith.mulf %534, %533 : vector<8x96xf32>
    %cst_141 = arith.constant 5.000000e-01 : f32
    %536 = vector.broadcast %cst_141 : f32 to vector<8x96xf32>
    %537 = arith.addf %535, %536 : vector<8x96xf32>
    %538 = vector.extract_strided_slice %529 {offsets = [0, 96], sizes = [8, 32], strides = [1, 1]} : vector<8x128xf32> to vector<8x32xf32>
    %539 = math.tanh %538 : vector<8x32xf32>
    %540 = vector.extract_strided_slice %537 {offsets = [0, 32], sizes = [8, 32], strides = [1, 1]} : vector<8x96xf32> to vector<8x32xf32>
    %541 = arith.mulf %540, %475 : vector<8x32xf32>
    %542 = vector.extract_strided_slice %537 {offsets = [0, 0], sizes = [8, 32], strides = [1, 1]} : vector<8x96xf32> to vector<8x32xf32>
    %543 = arith.mulf %542, %539 : vector<8x32xf32>
    %544 = arith.addf %541, %543 : vector<8x32xf32>
    %545 = vector.extract_strided_slice %537 {offsets = [0, 64], sizes = [8, 32], strides = [1, 1]} : vector<8x96xf32> to vector<8x32xf32>
    %546 = math.tanh %544 : vector<8x32xf32>
    %547 = arith.mulf %545, %546 : vector<8x32xf32>
    %cst_142 = arith.constant 0.000000e+00 : f32
    %548 = vector.broadcast %cst_142 : f32 to vector<8x32xf32>
    %549 = arith.maximumf %547, %548 : vector<8x32xf32>
    %cst_143 = arith.constant dense<0.000000e+00> : vector<8x2xf32>
    %550 = tpu.matmul %549, %11, %cst_143 {dimension_numbers = #tpu.dot_dimension_numbers<[1], [0], [0], [1], [0, 0, 1, 1], [], []>} : vector<8x32xf32>, vector<32x2xf32>, vector<8x2xf32> -> vector<8x2xf32>
    %551 = arith.addf %550, %8 : vector<8x2xf32>
    %552 = vector.extract_strided_slice %551 {offsets = [0, 0], sizes = [8, 1], strides = [1, 1]} : vector<8x2xf32> to vector<8x1xf32>
    %553 = vector.extract_strided_slice %551 {offsets = [0, 1], sizes = [8, 1], strides = [1, 1]} : vector<8x2xf32> to vector<8x1xf32>
    %cst_144 = arith.constant 0.000000e+00 : f32
    %554 = vector.broadcast %cst_144 : f32 to vector<8x1xf32>
    %555 = arith.maximumf %553, %554 : vector<8x1xf32>
    %556 = math.absf %553 : vector<8x1xf32>
    %cst_145 = arith.constant 0.000000e+00 : f32
    %557 = vector.broadcast %cst_145 : f32 to vector<8x1xf32>
    %558 = arith.subf %557, %556 : vector<8x1xf32>
    %559 = math.exp %558 : vector<8x1xf32>
    %560 = math.log1p %559 : vector<8x1xf32>
    %561 = arith.addf %555, %560 : vector<8x1xf32>
    %cst_146 = arith.constant 9.99999997E-7 : f32
    %562 = vector.broadcast %cst_146 : f32 to vector<8x1xf32>
    %563 = arith.addf %561, %562 : vector<8x1xf32>
    %c7_i32 = arith.constant 7 : i32
    %564 = vector.broadcast %c7_i32 : i32 to vector<8x128xi32>
    %565 = arith.cmpi eq, %13, %564 : vector<8x128xi32>
    %566 = vector.shape_cast %552 : vector<8x1xf32> to vector<8x1xf32>
    %567 = vector.broadcast %566 : vector<8x1xf32> to vector<8x128xf32>
    %568 = arith.select %565, %567, %499 : vector<8x128xi1>, vector<8x128xf32>
    %c7_i32_147 = arith.constant 7 : i32
    %569 = vector.broadcast %c7_i32_147 : i32 to vector<8x128xi32>
    %570 = arith.cmpi eq, %13, %569 : vector<8x128xi32>
    %571 = vector.shape_cast %563 : vector<8x1xf32> to vector<8x1xf32>
    %572 = vector.broadcast %571 : vector<8x1xf32> to vector<8x128xf32>
    %573 = arith.select %570, %572, %504 : vector<8x128xi1>, vector<8x128xf32>
    %574 = vector.extract_strided_slice %12 {offsets = [0, 7], sizes = [8, 1], strides = [1, 1]} : vector<8x12xf32> to vector<8x1xf32>
    %575 = arith.mulf %563, %574 : vector<8x1xf32>
    %576 = arith.addf %552, %575 : vector<8x1xf32>
    %c0_i32_148 = arith.constant 0 : i32
    %577 = vector.broadcast %c0_i32_148 : i32 to vector<8x128xi32>
    %578 = arith.cmpi eq, %14, %577 : vector<8x128xi32>
    %579 = vector.shape_cast %576 : vector<8x1xf32> to vector<8x1xf32>
    %580 = vector.broadcast %579 : vector<8x1xf32> to vector<8x128xf32>
    %581 = arith.select %578, %580, %21 : vector<8x128xi1>, vector<8x128xf32>
    %c8 = arith.constant 8 : index
    %c0_149 = arith.constant 0 : index
    %c0_150 = arith.constant 0 : index
    %582 = vector.load %arg0[%c8, %c0_149, %c0_150] : memref<12x8x128xf32, #tpu.memory_space<vmem>>, vector<1x8x128xf32>
    %583 = vector.shape_cast %582 : vector<1x8x128xf32> to vector<8x128xf32>
    %cst_151 = arith.constant dense<0.000000e+00> : vector<8x128xf32>
    %584 = tpu.matmul %526, %9, %cst_151 {dimension_numbers = #tpu.dot_dimension_numbers<[1], [0], [0], [1], [0, 0, 1, 1], [], []>} : vector<8x32xf32>, vector<32x128xf32>, vector<8x128xf32> -> vector<8x128xf32>
    %585 = arith.addf %583, %584 : vector<8x128xf32>
    %586 = vector.broadcast %576 : vector<8x1xf32> to vector<8x128xf32>
    %587 = arith.mulf %586, %2 : vector<8x128xf32>
    %588 = arith.addf %585, %587 : vector<8x128xf32>
    %589 = vector.extract_strided_slice %588 {offsets = [0, 0], sizes = [8, 96], strides = [1, 1]} : vector<8x128xf32> to vector<8x96xf32>
    %cst_152 = arith.constant 5.000000e-01 : f32
    %590 = vector.broadcast %cst_152 : f32 to vector<8x96xf32>
    %591 = arith.mulf %590, %589 : vector<8x96xf32>
    %592 = math.tanh %591 : vector<8x96xf32>
    %cst_153 = arith.constant 5.000000e-01 : f32
    %593 = vector.broadcast %cst_153 : f32 to vector<8x96xf32>
    %594 = arith.mulf %593, %592 : vector<8x96xf32>
    %cst_154 = arith.constant 5.000000e-01 : f32
    %595 = vector.broadcast %cst_154 : f32 to vector<8x96xf32>
    %596 = arith.addf %594, %595 : vector<8x96xf32>
    %597 = vector.extract_strided_slice %588 {offsets = [0, 96], sizes = [8, 32], strides = [1, 1]} : vector<8x128xf32> to vector<8x32xf32>
    %598 = math.tanh %597 : vector<8x32xf32>
    %599 = vector.extract_strided_slice %596 {offsets = [0, 32], sizes = [8, 32], strides = [1, 1]} : vector<8x96xf32> to vector<8x32xf32>
    %600 = arith.mulf %599, %523 : vector<8x32xf32>
    %601 = vector.extract_strided_slice %596 {offsets = [0, 0], sizes = [8, 32], strides = [1, 1]} : vector<8x96xf32> to vector<8x32xf32>
    %602 = arith.mulf %601, %598 : vector<8x32xf32>
    %603 = arith.addf %600, %602 : vector<8x32xf32>
    %604 = vector.extract_strided_slice %596 {offsets = [0, 64], sizes = [8, 32], strides = [1, 1]} : vector<8x96xf32> to vector<8x32xf32>
    %605 = math.tanh %603 : vector<8x32xf32>
    %606 = arith.mulf %604, %605 : vector<8x32xf32>
    %607 = tpu.concatenate %606, %547 in 1 : vector<8x32xf32>, vector<8x32xf32> -> vector<8x64xf32>
    %cst_155 = arith.constant dense<0.000000e+00> : vector<8x128xf32>
    %608 = tpu.matmul %607, %10, %cst_155 {dimension_numbers = #tpu.dot_dimension_numbers<[1], [0], [0], [1], [0, 0, 1, 1], [], []>} : vector<8x64xf32>, vector<64x128xf32>, vector<8x128xf32> -> vector<8x128xf32>
    %609 = arith.addf %608, %5 : vector<8x128xf32>
    %610 = vector.extract_strided_slice %609 {offsets = [0, 0], sizes = [8, 96], strides = [1, 1]} : vector<8x128xf32> to vector<8x96xf32>
    %cst_156 = arith.constant 5.000000e-01 : f32
    %611 = vector.broadcast %cst_156 : f32 to vector<8x96xf32>
    %612 = arith.mulf %611, %610 : vector<8x96xf32>
    %613 = math.tanh %612 : vector<8x96xf32>
    %cst_157 = arith.constant 5.000000e-01 : f32
    %614 = vector.broadcast %cst_157 : f32 to vector<8x96xf32>
    %615 = arith.mulf %614, %613 : vector<8x96xf32>
    %cst_158 = arith.constant 5.000000e-01 : f32
    %616 = vector.broadcast %cst_158 : f32 to vector<8x96xf32>
    %617 = arith.addf %615, %616 : vector<8x96xf32>
    %618 = vector.extract_strided_slice %609 {offsets = [0, 96], sizes = [8, 32], strides = [1, 1]} : vector<8x128xf32> to vector<8x32xf32>
    %619 = math.tanh %618 : vector<8x32xf32>
    %620 = vector.extract_strided_slice %617 {offsets = [0, 32], sizes = [8, 32], strides = [1, 1]} : vector<8x96xf32> to vector<8x32xf32>
    %621 = arith.mulf %620, %544 : vector<8x32xf32>
    %622 = vector.extract_strided_slice %617 {offsets = [0, 0], sizes = [8, 32], strides = [1, 1]} : vector<8x96xf32> to vector<8x32xf32>
    %623 = arith.mulf %622, %619 : vector<8x32xf32>
    %624 = arith.addf %621, %623 : vector<8x32xf32>
    %625 = vector.extract_strided_slice %617 {offsets = [0, 64], sizes = [8, 32], strides = [1, 1]} : vector<8x96xf32> to vector<8x32xf32>
    %626 = math.tanh %624 : vector<8x32xf32>
    %627 = arith.mulf %625, %626 : vector<8x32xf32>
    %cst_159 = arith.constant 0.000000e+00 : f32
    %628 = vector.broadcast %cst_159 : f32 to vector<8x32xf32>
    %629 = arith.maximumf %627, %628 : vector<8x32xf32>
    %cst_160 = arith.constant dense<0.000000e+00> : vector<8x2xf32>
    %630 = tpu.matmul %629, %11, %cst_160 {dimension_numbers = #tpu.dot_dimension_numbers<[1], [0], [0], [1], [0, 0, 1, 1], [], []>} : vector<8x32xf32>, vector<32x2xf32>, vector<8x2xf32> -> vector<8x2xf32>
    %631 = arith.addf %630, %8 : vector<8x2xf32>
    %632 = vector.extract_strided_slice %631 {offsets = [0, 0], sizes = [8, 1], strides = [1, 1]} : vector<8x2xf32> to vector<8x1xf32>
    %633 = vector.extract_strided_slice %631 {offsets = [0, 1], sizes = [8, 1], strides = [1, 1]} : vector<8x2xf32> to vector<8x1xf32>
    %cst_161 = arith.constant 0.000000e+00 : f32
    %634 = vector.broadcast %cst_161 : f32 to vector<8x1xf32>
    %635 = arith.maximumf %633, %634 : vector<8x1xf32>
    %636 = math.absf %633 : vector<8x1xf32>
    %cst_162 = arith.constant 0.000000e+00 : f32
    %637 = vector.broadcast %cst_162 : f32 to vector<8x1xf32>
    %638 = arith.subf %637, %636 : vector<8x1xf32>
    %639 = math.exp %638 : vector<8x1xf32>
    %640 = math.log1p %639 : vector<8x1xf32>
    %641 = arith.addf %635, %640 : vector<8x1xf32>
    %cst_163 = arith.constant 9.99999997E-7 : f32
    %642 = vector.broadcast %cst_163 : f32 to vector<8x1xf32>
    %643 = arith.addf %641, %642 : vector<8x1xf32>
    %c8_i32 = arith.constant 8 : i32
    %644 = vector.broadcast %c8_i32 : i32 to vector<8x128xi32>
    %645 = arith.cmpi eq, %13, %644 : vector<8x128xi32>
    %646 = vector.shape_cast %632 : vector<8x1xf32> to vector<8x1xf32>
    %647 = vector.broadcast %646 : vector<8x1xf32> to vector<8x128xf32>
    %648 = arith.select %645, %647, %568 : vector<8x128xi1>, vector<8x128xf32>
    %c8_i32_164 = arith.constant 8 : i32
    %649 = vector.broadcast %c8_i32_164 : i32 to vector<8x128xi32>
    %650 = arith.cmpi eq, %13, %649 : vector<8x128xi32>
    %651 = vector.shape_cast %643 : vector<8x1xf32> to vector<8x1xf32>
    %652 = vector.broadcast %651 : vector<8x1xf32> to vector<8x128xf32>
    %653 = arith.select %650, %652, %573 : vector<8x128xi1>, vector<8x128xf32>
    %654 = vector.extract_strided_slice %12 {offsets = [0, 8], sizes = [8, 1], strides = [1, 1]} : vector<8x12xf32> to vector<8x1xf32>
    %655 = arith.mulf %643, %654 : vector<8x1xf32>
    %656 = arith.addf %632, %655 : vector<8x1xf32>
    %c1_i32_165 = arith.constant 1 : i32
    %657 = vector.broadcast %c1_i32_165 : i32 to vector<8x128xi32>
    %658 = arith.cmpi eq, %14, %657 : vector<8x128xi32>
    %659 = vector.shape_cast %656 : vector<8x1xf32> to vector<8x1xf32>
    %660 = vector.broadcast %659 : vector<8x1xf32> to vector<8x128xf32>
    %661 = arith.select %658, %660, %581 : vector<8x128xi1>, vector<8x128xf32>
    %c9 = arith.constant 9 : index
    %c0_166 = arith.constant 0 : index
    %c0_167 = arith.constant 0 : index
    %662 = vector.load %arg0[%c9, %c0_166, %c0_167] : memref<12x8x128xf32, #tpu.memory_space<vmem>>, vector<1x8x128xf32>
    %663 = vector.shape_cast %662 : vector<1x8x128xf32> to vector<8x128xf32>
    %cst_168 = arith.constant dense<0.000000e+00> : vector<8x128xf32>
    %664 = tpu.matmul %606, %9, %cst_168 {dimension_numbers = #tpu.dot_dimension_numbers<[1], [0], [0], [1], [0, 0, 1, 1], [], []>} : vector<8x32xf32>, vector<32x128xf32>, vector<8x128xf32> -> vector<8x128xf32>
    %665 = arith.addf %663, %664 : vector<8x128xf32>
    %666 = vector.broadcast %656 : vector<8x1xf32> to vector<8x128xf32>
    %667 = arith.mulf %666, %2 : vector<8x128xf32>
    %668 = arith.addf %665, %667 : vector<8x128xf32>
    %669 = vector.extract_strided_slice %668 {offsets = [0, 0], sizes = [8, 96], strides = [1, 1]} : vector<8x128xf32> to vector<8x96xf32>
    %cst_169 = arith.constant 5.000000e-01 : f32
    %670 = vector.broadcast %cst_169 : f32 to vector<8x96xf32>
    %671 = arith.mulf %670, %669 : vector<8x96xf32>
    %672 = math.tanh %671 : vector<8x96xf32>
    %cst_170 = arith.constant 5.000000e-01 : f32
    %673 = vector.broadcast %cst_170 : f32 to vector<8x96xf32>
    %674 = arith.mulf %673, %672 : vector<8x96xf32>
    %cst_171 = arith.constant 5.000000e-01 : f32
    %675 = vector.broadcast %cst_171 : f32 to vector<8x96xf32>
    %676 = arith.addf %674, %675 : vector<8x96xf32>
    %677 = vector.extract_strided_slice %668 {offsets = [0, 96], sizes = [8, 32], strides = [1, 1]} : vector<8x128xf32> to vector<8x32xf32>
    %678 = math.tanh %677 : vector<8x32xf32>
    %679 = vector.extract_strided_slice %676 {offsets = [0, 32], sizes = [8, 32], strides = [1, 1]} : vector<8x96xf32> to vector<8x32xf32>
    %680 = arith.mulf %679, %603 : vector<8x32xf32>
    %681 = vector.extract_strided_slice %676 {offsets = [0, 0], sizes = [8, 32], strides = [1, 1]} : vector<8x96xf32> to vector<8x32xf32>
    %682 = arith.mulf %681, %678 : vector<8x32xf32>
    %683 = arith.addf %680, %682 : vector<8x32xf32>
    %684 = vector.extract_strided_slice %676 {offsets = [0, 64], sizes = [8, 32], strides = [1, 1]} : vector<8x96xf32> to vector<8x32xf32>
    %685 = math.tanh %683 : vector<8x32xf32>
    %686 = arith.mulf %684, %685 : vector<8x32xf32>
    %687 = tpu.concatenate %686, %627 in 1 : vector<8x32xf32>, vector<8x32xf32> -> vector<8x64xf32>
    %cst_172 = arith.constant dense<0.000000e+00> : vector<8x128xf32>
    %688 = tpu.matmul %687, %10, %cst_172 {dimension_numbers = #tpu.dot_dimension_numbers<[1], [0], [0], [1], [0, 0, 1, 1], [], []>} : vector<8x64xf32>, vector<64x128xf32>, vector<8x128xf32> -> vector<8x128xf32>
    %689 = arith.addf %688, %5 : vector<8x128xf32>
    %690 = vector.extract_strided_slice %689 {offsets = [0, 0], sizes = [8, 96], strides = [1, 1]} : vector<8x128xf32> to vector<8x96xf32>
    %cst_173 = arith.constant 5.000000e-01 : f32
    %691 = vector.broadcast %cst_173 : f32 to vector<8x96xf32>
    %692 = arith.mulf %691, %690 : vector<8x96xf32>
    %693 = math.tanh %692 : vector<8x96xf32>
    %cst_174 = arith.constant 5.000000e-01 : f32
    %694 = vector.broadcast %cst_174 : f32 to vector<8x96xf32>
    %695 = arith.mulf %694, %693 : vector<8x96xf32>
    %cst_175 = arith.constant 5.000000e-01 : f32
    %696 = vector.broadcast %cst_175 : f32 to vector<8x96xf32>
    %697 = arith.addf %695, %696 : vector<8x96xf32>
    %698 = vector.extract_strided_slice %689 {offsets = [0, 96], sizes = [8, 32], strides = [1, 1]} : vector<8x128xf32> to vector<8x32xf32>
    %699 = math.tanh %698 : vector<8x32xf32>
    %700 = vector.extract_strided_slice %697 {offsets = [0, 32], sizes = [8, 32], strides = [1, 1]} : vector<8x96xf32> to vector<8x32xf32>
    %701 = arith.mulf %700, %624 : vector<8x32xf32>
    %702 = vector.extract_strided_slice %697 {offsets = [0, 0], sizes = [8, 32], strides = [1, 1]} : vector<8x96xf32> to vector<8x32xf32>
    %703 = arith.mulf %702, %699 : vector<8x32xf32>
    %704 = arith.addf %701, %703 : vector<8x32xf32>
    %705 = vector.extract_strided_slice %697 {offsets = [0, 64], sizes = [8, 32], strides = [1, 1]} : vector<8x96xf32> to vector<8x32xf32>
    %706 = math.tanh %704 : vector<8x32xf32>
    %707 = arith.mulf %705, %706 : vector<8x32xf32>
    %cst_176 = arith.constant 0.000000e+00 : f32
    %708 = vector.broadcast %cst_176 : f32 to vector<8x32xf32>
    %709 = arith.maximumf %707, %708 : vector<8x32xf32>
    %cst_177 = arith.constant dense<0.000000e+00> : vector<8x2xf32>
    %710 = tpu.matmul %709, %11, %cst_177 {dimension_numbers = #tpu.dot_dimension_numbers<[1], [0], [0], [1], [0, 0, 1, 1], [], []>} : vector<8x32xf32>, vector<32x2xf32>, vector<8x2xf32> -> vector<8x2xf32>
    %711 = arith.addf %710, %8 : vector<8x2xf32>
    %712 = vector.extract_strided_slice %711 {offsets = [0, 0], sizes = [8, 1], strides = [1, 1]} : vector<8x2xf32> to vector<8x1xf32>
    %713 = vector.extract_strided_slice %711 {offsets = [0, 1], sizes = [8, 1], strides = [1, 1]} : vector<8x2xf32> to vector<8x1xf32>
    %cst_178 = arith.constant 0.000000e+00 : f32
    %714 = vector.broadcast %cst_178 : f32 to vector<8x1xf32>
    %715 = arith.maximumf %713, %714 : vector<8x1xf32>
    %716 = math.absf %713 : vector<8x1xf32>
    %cst_179 = arith.constant 0.000000e+00 : f32
    %717 = vector.broadcast %cst_179 : f32 to vector<8x1xf32>
    %718 = arith.subf %717, %716 : vector<8x1xf32>
    %719 = math.exp %718 : vector<8x1xf32>
    %720 = math.log1p %719 : vector<8x1xf32>
    %721 = arith.addf %715, %720 : vector<8x1xf32>
    %cst_180 = arith.constant 9.99999997E-7 : f32
    %722 = vector.broadcast %cst_180 : f32 to vector<8x1xf32>
    %723 = arith.addf %721, %722 : vector<8x1xf32>
    %c9_i32 = arith.constant 9 : i32
    %724 = vector.broadcast %c9_i32 : i32 to vector<8x128xi32>
    %725 = arith.cmpi eq, %13, %724 : vector<8x128xi32>
    %726 = vector.shape_cast %712 : vector<8x1xf32> to vector<8x1xf32>
    %727 = vector.broadcast %726 : vector<8x1xf32> to vector<8x128xf32>
    %728 = arith.select %725, %727, %648 : vector<8x128xi1>, vector<8x128xf32>
    %c9_i32_181 = arith.constant 9 : i32
    %729 = vector.broadcast %c9_i32_181 : i32 to vector<8x128xi32>
    %730 = arith.cmpi eq, %13, %729 : vector<8x128xi32>
    %731 = vector.shape_cast %723 : vector<8x1xf32> to vector<8x1xf32>
    %732 = vector.broadcast %731 : vector<8x1xf32> to vector<8x128xf32>
    %733 = arith.select %730, %732, %653 : vector<8x128xi1>, vector<8x128xf32>
    %734 = vector.extract_strided_slice %12 {offsets = [0, 9], sizes = [8, 1], strides = [1, 1]} : vector<8x12xf32> to vector<8x1xf32>
    %735 = arith.mulf %723, %734 : vector<8x1xf32>
    %736 = arith.addf %712, %735 : vector<8x1xf32>
    %c2_i32_182 = arith.constant 2 : i32
    %737 = vector.broadcast %c2_i32_182 : i32 to vector<8x128xi32>
    %738 = arith.cmpi eq, %14, %737 : vector<8x128xi32>
    %739 = vector.shape_cast %736 : vector<8x1xf32> to vector<8x1xf32>
    %740 = vector.broadcast %739 : vector<8x1xf32> to vector<8x128xf32>
    %741 = arith.select %738, %740, %661 : vector<8x128xi1>, vector<8x128xf32>
    %c10 = arith.constant 10 : index
    %c0_183 = arith.constant 0 : index
    %c0_184 = arith.constant 0 : index
    %742 = vector.load %arg0[%c10, %c0_183, %c0_184] : memref<12x8x128xf32, #tpu.memory_space<vmem>>, vector<1x8x128xf32>
    %743 = vector.shape_cast %742 : vector<1x8x128xf32> to vector<8x128xf32>
    %cst_185 = arith.constant dense<0.000000e+00> : vector<8x128xf32>
    %744 = tpu.matmul %686, %9, %cst_185 {dimension_numbers = #tpu.dot_dimension_numbers<[1], [0], [0], [1], [0, 0, 1, 1], [], []>} : vector<8x32xf32>, vector<32x128xf32>, vector<8x128xf32> -> vector<8x128xf32>
    %745 = arith.addf %743, %744 : vector<8x128xf32>
    %746 = vector.broadcast %736 : vector<8x1xf32> to vector<8x128xf32>
    %747 = arith.mulf %746, %2 : vector<8x128xf32>
    %748 = arith.addf %745, %747 : vector<8x128xf32>
    %749 = vector.extract_strided_slice %748 {offsets = [0, 0], sizes = [8, 96], strides = [1, 1]} : vector<8x128xf32> to vector<8x96xf32>
    %cst_186 = arith.constant 5.000000e-01 : f32
    %750 = vector.broadcast %cst_186 : f32 to vector<8x96xf32>
    %751 = arith.mulf %750, %749 : vector<8x96xf32>
    %752 = math.tanh %751 : vector<8x96xf32>
    %cst_187 = arith.constant 5.000000e-01 : f32
    %753 = vector.broadcast %cst_187 : f32 to vector<8x96xf32>
    %754 = arith.mulf %753, %752 : vector<8x96xf32>
    %cst_188 = arith.constant 5.000000e-01 : f32
    %755 = vector.broadcast %cst_188 : f32 to vector<8x96xf32>
    %756 = arith.addf %754, %755 : vector<8x96xf32>
    %757 = vector.extract_strided_slice %748 {offsets = [0, 96], sizes = [8, 32], strides = [1, 1]} : vector<8x128xf32> to vector<8x32xf32>
    %758 = math.tanh %757 : vector<8x32xf32>
    %759 = vector.extract_strided_slice %756 {offsets = [0, 32], sizes = [8, 32], strides = [1, 1]} : vector<8x96xf32> to vector<8x32xf32>
    %760 = arith.mulf %759, %683 : vector<8x32xf32>
    %761 = vector.extract_strided_slice %756 {offsets = [0, 0], sizes = [8, 32], strides = [1, 1]} : vector<8x96xf32> to vector<8x32xf32>
    %762 = arith.mulf %761, %758 : vector<8x32xf32>
    %763 = arith.addf %760, %762 : vector<8x32xf32>
    %764 = vector.extract_strided_slice %756 {offsets = [0, 64], sizes = [8, 32], strides = [1, 1]} : vector<8x96xf32> to vector<8x32xf32>
    %765 = math.tanh %763 : vector<8x32xf32>
    %766 = arith.mulf %764, %765 : vector<8x32xf32>
    %767 = tpu.concatenate %766, %707 in 1 : vector<8x32xf32>, vector<8x32xf32> -> vector<8x64xf32>
    %cst_189 = arith.constant dense<0.000000e+00> : vector<8x128xf32>
    %768 = tpu.matmul %767, %10, %cst_189 {dimension_numbers = #tpu.dot_dimension_numbers<[1], [0], [0], [1], [0, 0, 1, 1], [], []>} : vector<8x64xf32>, vector<64x128xf32>, vector<8x128xf32> -> vector<8x128xf32>
    %769 = arith.addf %768, %5 : vector<8x128xf32>
    %770 = vector.extract_strided_slice %769 {offsets = [0, 0], sizes = [8, 96], strides = [1, 1]} : vector<8x128xf32> to vector<8x96xf32>
    %cst_190 = arith.constant 5.000000e-01 : f32
    %771 = vector.broadcast %cst_190 : f32 to vector<8x96xf32>
    %772 = arith.mulf %771, %770 : vector<8x96xf32>
    %773 = math.tanh %772 : vector<8x96xf32>
    %cst_191 = arith.constant 5.000000e-01 : f32
    %774 = vector.broadcast %cst_191 : f32 to vector<8x96xf32>
    %775 = arith.mulf %774, %773 : vector<8x96xf32>
    %cst_192 = arith.constant 5.000000e-01 : f32
    %776 = vector.broadcast %cst_192 : f32 to vector<8x96xf32>
    %777 = arith.addf %775, %776 : vector<8x96xf32>
    %778 = vector.extract_strided_slice %769 {offsets = [0, 96], sizes = [8, 32], strides = [1, 1]} : vector<8x128xf32> to vector<8x32xf32>
    %779 = math.tanh %778 : vector<8x32xf32>
    %780 = vector.extract_strided_slice %777 {offsets = [0, 32], sizes = [8, 32], strides = [1, 1]} : vector<8x96xf32> to vector<8x32xf32>
    %781 = arith.mulf %780, %704 : vector<8x32xf32>
    %782 = vector.extract_strided_slice %777 {offsets = [0, 0], sizes = [8, 32], strides = [1, 1]} : vector<8x96xf32> to vector<8x32xf32>
    %783 = arith.mulf %782, %779 : vector<8x32xf32>
    %784 = arith.addf %781, %783 : vector<8x32xf32>
    %785 = vector.extract_strided_slice %777 {offsets = [0, 64], sizes = [8, 32], strides = [1, 1]} : vector<8x96xf32> to vector<8x32xf32>
    %786 = math.tanh %784 : vector<8x32xf32>
    %787 = arith.mulf %785, %786 : vector<8x32xf32>
    %cst_193 = arith.constant 0.000000e+00 : f32
    %788 = vector.broadcast %cst_193 : f32 to vector<8x32xf32>
    %789 = arith.maximumf %787, %788 : vector<8x32xf32>
    %cst_194 = arith.constant dense<0.000000e+00> : vector<8x2xf32>
    %790 = tpu.matmul %789, %11, %cst_194 {dimension_numbers = #tpu.dot_dimension_numbers<[1], [0], [0], [1], [0, 0, 1, 1], [], []>} : vector<8x32xf32>, vector<32x2xf32>, vector<8x2xf32> -> vector<8x2xf32>
    %791 = arith.addf %790, %8 : vector<8x2xf32>
    %792 = vector.extract_strided_slice %791 {offsets = [0, 0], sizes = [8, 1], strides = [1, 1]} : vector<8x2xf32> to vector<8x1xf32>
    %793 = vector.extract_strided_slice %791 {offsets = [0, 1], sizes = [8, 1], strides = [1, 1]} : vector<8x2xf32> to vector<8x1xf32>
    %cst_195 = arith.constant 0.000000e+00 : f32
    %794 = vector.broadcast %cst_195 : f32 to vector<8x1xf32>
    %795 = arith.maximumf %793, %794 : vector<8x1xf32>
    %796 = math.absf %793 : vector<8x1xf32>
    %cst_196 = arith.constant 0.000000e+00 : f32
    %797 = vector.broadcast %cst_196 : f32 to vector<8x1xf32>
    %798 = arith.subf %797, %796 : vector<8x1xf32>
    %799 = math.exp %798 : vector<8x1xf32>
    %800 = math.log1p %799 : vector<8x1xf32>
    %801 = arith.addf %795, %800 : vector<8x1xf32>
    %cst_197 = arith.constant 9.99999997E-7 : f32
    %802 = vector.broadcast %cst_197 : f32 to vector<8x1xf32>
    %803 = arith.addf %801, %802 : vector<8x1xf32>
    %c10_i32 = arith.constant 10 : i32
    %804 = vector.broadcast %c10_i32 : i32 to vector<8x128xi32>
    %805 = arith.cmpi eq, %13, %804 : vector<8x128xi32>
    %806 = vector.shape_cast %792 : vector<8x1xf32> to vector<8x1xf32>
    %807 = vector.broadcast %806 : vector<8x1xf32> to vector<8x128xf32>
    %808 = arith.select %805, %807, %728 : vector<8x128xi1>, vector<8x128xf32>
    %c10_i32_198 = arith.constant 10 : i32
    %809 = vector.broadcast %c10_i32_198 : i32 to vector<8x128xi32>
    %810 = arith.cmpi eq, %13, %809 : vector<8x128xi32>
    %811 = vector.shape_cast %803 : vector<8x1xf32> to vector<8x1xf32>
    %812 = vector.broadcast %811 : vector<8x1xf32> to vector<8x128xf32>
    %813 = arith.select %810, %812, %733 : vector<8x128xi1>, vector<8x128xf32>
    %814 = vector.extract_strided_slice %12 {offsets = [0, 10], sizes = [8, 1], strides = [1, 1]} : vector<8x12xf32> to vector<8x1xf32>
    %815 = arith.mulf %803, %814 : vector<8x1xf32>
    %816 = arith.addf %792, %815 : vector<8x1xf32>
    %c3_i32_199 = arith.constant 3 : i32
    %817 = vector.broadcast %c3_i32_199 : i32 to vector<8x128xi32>
    %818 = arith.cmpi eq, %14, %817 : vector<8x128xi32>
    %819 = vector.shape_cast %816 : vector<8x1xf32> to vector<8x1xf32>
    %820 = vector.broadcast %819 : vector<8x1xf32> to vector<8x128xf32>
    %821 = arith.select %818, %820, %741 : vector<8x128xi1>, vector<8x128xf32>
    %c11 = arith.constant 11 : index
    %c0_200 = arith.constant 0 : index
    %c0_201 = arith.constant 0 : index
    %822 = vector.load %arg0[%c11, %c0_200, %c0_201] : memref<12x8x128xf32, #tpu.memory_space<vmem>>, vector<1x8x128xf32>
    %823 = vector.shape_cast %822 : vector<1x8x128xf32> to vector<8x128xf32>
    %cst_202 = arith.constant dense<0.000000e+00> : vector<8x128xf32>
    %824 = tpu.matmul %766, %9, %cst_202 {dimension_numbers = #tpu.dot_dimension_numbers<[1], [0], [0], [1], [0, 0, 1, 1], [], []>} : vector<8x32xf32>, vector<32x128xf32>, vector<8x128xf32> -> vector<8x128xf32>
    %825 = arith.addf %823, %824 : vector<8x128xf32>
    %826 = vector.broadcast %816 : vector<8x1xf32> to vector<8x128xf32>
    %827 = arith.mulf %826, %2 : vector<8x128xf32>
    %828 = arith.addf %825, %827 : vector<8x128xf32>
    %829 = vector.extract_strided_slice %828 {offsets = [0, 0], sizes = [8, 96], strides = [1, 1]} : vector<8x128xf32> to vector<8x96xf32>
    %cst_203 = arith.constant 5.000000e-01 : f32
    %830 = vector.broadcast %cst_203 : f32 to vector<8x96xf32>
    %831 = arith.mulf %830, %829 : vector<8x96xf32>
    %832 = math.tanh %831 : vector<8x96xf32>
    %cst_204 = arith.constant 5.000000e-01 : f32
    %833 = vector.broadcast %cst_204 : f32 to vector<8x96xf32>
    %834 = arith.mulf %833, %832 : vector<8x96xf32>
    %cst_205 = arith.constant 5.000000e-01 : f32
    %835 = vector.broadcast %cst_205 : f32 to vector<8x96xf32>
    %836 = arith.addf %834, %835 : vector<8x96xf32>
    %837 = vector.extract_strided_slice %828 {offsets = [0, 96], sizes = [8, 32], strides = [1, 1]} : vector<8x128xf32> to vector<8x32xf32>
    %838 = math.tanh %837 : vector<8x32xf32>
    %839 = vector.extract_strided_slice %836 {offsets = [0, 32], sizes = [8, 32], strides = [1, 1]} : vector<8x96xf32> to vector<8x32xf32>
    %840 = arith.mulf %839, %763 : vector<8x32xf32>
    %841 = vector.extract_strided_slice %836 {offsets = [0, 0], sizes = [8, 32], strides = [1, 1]} : vector<8x96xf32> to vector<8x32xf32>
    %842 = arith.mulf %841, %838 : vector<8x32xf32>
    %843 = arith.addf %840, %842 : vector<8x32xf32>
    %844 = vector.extract_strided_slice %836 {offsets = [0, 64], sizes = [8, 32], strides = [1, 1]} : vector<8x96xf32> to vector<8x32xf32>
    %845 = math.tanh %843 : vector<8x32xf32>
    %846 = arith.mulf %844, %845 : vector<8x32xf32>
    %847 = tpu.concatenate %846, %787 in 1 : vector<8x32xf32>, vector<8x32xf32> -> vector<8x64xf32>
    %cst_206 = arith.constant dense<0.000000e+00> : vector<8x128xf32>
    %848 = tpu.matmul %847, %10, %cst_206 {dimension_numbers = #tpu.dot_dimension_numbers<[1], [0], [0], [1], [0, 0, 1, 1], [], []>} : vector<8x64xf32>, vector<64x128xf32>, vector<8x128xf32> -> vector<8x128xf32>
    %849 = arith.addf %848, %5 : vector<8x128xf32>
    %850 = vector.extract_strided_slice %849 {offsets = [0, 0], sizes = [8, 96], strides = [1, 1]} : vector<8x128xf32> to vector<8x96xf32>
    %cst_207 = arith.constant 5.000000e-01 : f32
    %851 = vector.broadcast %cst_207 : f32 to vector<8x96xf32>
    %852 = arith.mulf %851, %850 : vector<8x96xf32>
    %853 = math.tanh %852 : vector<8x96xf32>
    %cst_208 = arith.constant 5.000000e-01 : f32
    %854 = vector.broadcast %cst_208 : f32 to vector<8x96xf32>
    %855 = arith.mulf %854, %853 : vector<8x96xf32>
    %cst_209 = arith.constant 5.000000e-01 : f32
    %856 = vector.broadcast %cst_209 : f32 to vector<8x96xf32>
    %857 = arith.addf %855, %856 : vector<8x96xf32>
    %858 = vector.extract_strided_slice %849 {offsets = [0, 96], sizes = [8, 32], strides = [1, 1]} : vector<8x128xf32> to vector<8x32xf32>
    %859 = math.tanh %858 : vector<8x32xf32>
    %860 = vector.extract_strided_slice %857 {offsets = [0, 32], sizes = [8, 32], strides = [1, 1]} : vector<8x96xf32> to vector<8x32xf32>
    %861 = arith.mulf %860, %784 : vector<8x32xf32>
    %862 = vector.extract_strided_slice %857 {offsets = [0, 0], sizes = [8, 32], strides = [1, 1]} : vector<8x96xf32> to vector<8x32xf32>
    %863 = arith.mulf %862, %859 : vector<8x32xf32>
    %864 = arith.addf %861, %863 : vector<8x32xf32>
    %865 = vector.extract_strided_slice %857 {offsets = [0, 64], sizes = [8, 32], strides = [1, 1]} : vector<8x96xf32> to vector<8x32xf32>
    %866 = math.tanh %864 : vector<8x32xf32>
    %867 = arith.mulf %865, %866 : vector<8x32xf32>
    %cst_210 = arith.constant 0.000000e+00 : f32
    %868 = vector.broadcast %cst_210 : f32 to vector<8x32xf32>
    %869 = arith.maximumf %867, %868 : vector<8x32xf32>
    %cst_211 = arith.constant dense<0.000000e+00> : vector<8x2xf32>
    %870 = tpu.matmul %869, %11, %cst_211 {dimension_numbers = #tpu.dot_dimension_numbers<[1], [0], [0], [1], [0, 0, 1, 1], [], []>} : vector<8x32xf32>, vector<32x2xf32>, vector<8x2xf32> -> vector<8x2xf32>
    %871 = arith.addf %870, %8 : vector<8x2xf32>
    %872 = vector.extract_strided_slice %871 {offsets = [0, 0], sizes = [8, 1], strides = [1, 1]} : vector<8x2xf32> to vector<8x1xf32>
    %873 = vector.extract_strided_slice %871 {offsets = [0, 1], sizes = [8, 1], strides = [1, 1]} : vector<8x2xf32> to vector<8x1xf32>
    %cst_212 = arith.constant 0.000000e+00 : f32
    %874 = vector.broadcast %cst_212 : f32 to vector<8x1xf32>
    %875 = arith.maximumf %873, %874 : vector<8x1xf32>
    %876 = math.absf %873 : vector<8x1xf32>
    %cst_213 = arith.constant 0.000000e+00 : f32
    %877 = vector.broadcast %cst_213 : f32 to vector<8x1xf32>
    %878 = arith.subf %877, %876 : vector<8x1xf32>
    %879 = math.exp %878 : vector<8x1xf32>
    %880 = math.log1p %879 : vector<8x1xf32>
    %881 = arith.addf %875, %880 : vector<8x1xf32>
    %cst_214 = arith.constant 9.99999997E-7 : f32
    %882 = vector.broadcast %cst_214 : f32 to vector<8x1xf32>
    %883 = arith.addf %881, %882 : vector<8x1xf32>
    %c11_i32 = arith.constant 11 : i32
    %884 = vector.broadcast %c11_i32 : i32 to vector<8x128xi32>
    %885 = arith.cmpi eq, %13, %884 : vector<8x128xi32>
    %886 = vector.shape_cast %872 : vector<8x1xf32> to vector<8x1xf32>
    %887 = vector.broadcast %886 : vector<8x1xf32> to vector<8x128xf32>
    %888 = arith.select %885, %887, %808 : vector<8x128xi1>, vector<8x128xf32>
    %c11_i32_215 = arith.constant 11 : i32
    %889 = vector.broadcast %c11_i32_215 : i32 to vector<8x128xi32>
    %890 = arith.cmpi eq, %13, %889 : vector<8x128xi32>
    %891 = vector.shape_cast %883 : vector<8x1xf32> to vector<8x1xf32>
    %892 = vector.broadcast %891 : vector<8x1xf32> to vector<8x128xf32>
    %893 = arith.select %890, %892, %813 : vector<8x128xi1>, vector<8x128xf32>
    %c0_216 = arith.constant 0 : index
    %c0_217 = arith.constant 0 : index
    %894 = vector.load %arg8[%c0_216, %c0_217] : memref<8x128xf32, #tpu.memory_space<vmem>>, vector<8x128xf32>
    tpu.vector_store %arg8[%c0_216, %c0_217], %888 {strides = array<i32>} : memref<8x128xf32, #tpu.memory_space<vmem>>, vector<8x128xf32>,
    %c0_218 = arith.constant 0 : index
    %c0_219 = arith.constant 0 : index
    %895 = vector.load %arg9[%c0_218, %c0_219] : memref<8x128xf32, #tpu.memory_space<vmem>>, vector<8x128xf32>
    tpu.vector_store %arg9[%c0_218, %c0_219], %893 {strides = array<i32>} : memref<8x128xf32, #tpu.memory_space<vmem>>, vector<8x128xf32>,
    %c0_220 = arith.constant 0 : index
    %c0_221 = arith.constant 0 : index
    %896 = vector.load %arg10[%c0_220, %c0_221] : memref<8x128xf32, #tpu.memory_space<vmem>>, vector<8x128xf32>
    tpu.vector_store %arg10[%c0_220, %c0_221], %821 {strides = array<i32>} : memref<8x128xf32, #tpu.memory_space<vmem>>, vector<8x128xf32>,
    return
  }
}

</mosaic_0001>

<bundles_post_ra>
// kernel: deepar_forward.1
= control target key start
LH: loop header
LB: loop body
LE: loop exit
PB: predicated region body
PF: predicated region fallthrough
CT: control target
= control target key end

     0   :  { %v4839_v0 = vmov 0.0   ;;  %vm4840_vm0 = vmmov 0   ;;  %s4841_s23 = smov 32   ;;  %s4842_s20 = smov 64   ;;  %vm73_vm1 = vcmask 261120   ;;  %vm175_vm2 = vcmask 523264   ;;  %s6115_s2 = inlined_call_operand.vmem [shape: f32[32,128], index: 2, kind: input, shape index: {}]   ;;  %s6116_s0 = inlined_call_operand.vmem [shape: f32[12,8,128], index: 0, kind: input, shape index: {}]   ;;  %s6117_s3 = inlined_call_operand.vmem [shape: f32[64,128], index: 3, kind: input, shape index: {}]   ;;  %s6118_s4 = inlined_call_operand.vmem [shape: f32[1,128], index: 4, kind: input, shape index: {}]   ;;  %s6119_s5 = inlined_call_operand.vmem [shape: f32[32,2], index: 5, kind: input, shape index: {}]   ;;  %s6120_s7 = inlined_call_operand.vmem [shape: f32[8,12], index: 7, kind: input, shape index: {}]   ;;  %s6121_s6 = inlined_call_operand.vmem [shape: f32[1,2], index: 6, kind: input, shape index: {}]   ;;  %s6122_s1 = inlined_call_operand.vmem [shape: f32[1,128], index: 1, kind: input, shape index: {}]   ;;  %s6123_s10 = inlined_call_operand.vmem [shape: f32[8,128], index: 10, kind: output, shape index: {2}]   ;;  %s6124_s8 = inlined_call_operand.vmem [shape: f32[8,128], index: 8, kind: output, shape index: {0}]   ;;  %s6125_s9 = inlined_call_operand.vmem [shape: f32[8,128], index: 9, kind: output, shape index: {1}]  }
   0x1   :  { %4103 = vmatprep.subr.mxu0 %v4839_v0  ;;  %v4910_v1 = vld [vmem:[%s6115_s2 + $0x18] sm:$0xff]  ;;  %v4915_v2 = vld [vmem:[%s6115_s2 + $0x10] sm:$0xff]  ;;  %4111 = vmatprep.mubr.msk.f32.mxu0 %vm4840_vm0, %v4839_v0  ;;  %v4925_v3 = vld [vmem:[%s6115_s2 + $0x8] sm:$0xff]  ;;  %s4843_s14 = smov 96   ;;  %s4844_s30 = smov 122  }
   0x2   :  { %4104 = vmatpush3.msra.mxu0 %v4910_v1  ;;  %4114 = vmatprep.subr.mxu1 %v4839_v0  ;;  %v4934_v4 = vld [vmem:[%s6115_s2] sm:$0xff]  ;;  %v4954_v19 = vld [vmem:[%s6117_s3 + $0x38] sm:$0xff]  ;;  %v4959_v20 = vld [vmem:[%s6117_s3 + $0x30] sm:$0xff]  ;;  %s4846_s12 = smov 127   ;;  %s4848_s21 = smov 120  }
   0x3   :  { %4105 = vmatprep.subr.mxu0 %v4839_v0  ;;  %4130 = vmatprep.mubr.msk.f32.mxu1 %vm4840_vm0, %v4839_v0  ;;  %v72_v5 = vld [vmem:[%s6116_s0] sm:$0xff]  ;;  %v4966_v21 = vld [vmem:[%s6117_s3 + $0x28] sm:$0xff]  ;;  %v4980_v23 = vld [vmem:[%s6117_s3 + $0x18] sm:$0xff] }
   0x4   :  { %4106 = vmatpush3.msra.mxu0 %v4915_v2  ;;  %4115 = vmatpush3.msra.mxu1 %v4954_v19  ;;  %v4973_v22 = vld [vmem:[%s6117_s3 + $0x20] sm:$0xff]  ;;  %v4987_v24 = vld [vmem:[%s6117_s3 + $0x10] sm:$0xff]  ;;  %v4995_v26 = vld [vmem:[%s6117_s3 + $0x8] sm:$0xff] }
   0x5   :  { %4107 = vmatprep.subr.mxu0 %v4839_v0  ;;  %4116 = vmatprep.subr.mxu1 %v4839_v0  ;;  %v5004_v27 = vld [vmem:[%s6117_s3] sm:$0xff]  ;;  %v5046_v46 = vld [vmem:[%s6119_s5 + $0x18] sm:$0xff]  ;;  %v5051_v47 = vld [vmem:[%s6119_s5 + $0x10] sm:$0xff] }
   0x6   :  { %4108 = vmatpush3.msra.mxu0 %v4925_v3  ;;  %4117 = vmatpush3.msra.mxu1 %v4959_v20  ;;  %v5035_v32 = vld [vmem:[%s6118_s4] ss:$0 sm:$0xff]  ;;  %v5058_v48 = vld [vmem:[%s6119_s5 + $0x8] sm:$0xff] }
   0x7   :  { %4109 = vmatprep.subr.mxu0 %v4839_v0  ;;  %4118 = vmatprep.subr.mxu1 %v4839_v0  ;;  %v5065_v49 = vld [vmem:[%s6119_s5] sm:$0xff]  ;;  %v3831_v57 = vld [vmem:[%s6116_s0 + $0x8] sm:$0xff] }
   0x8   :  { %4110 = vmatpush3.msra.mxu0 %v4934_v4  ;;  %4119 = vmatpush3.msra.mxu1 %v4966_v21 }
   0x9   :  { %4112 = vmatmul.mubr.f32.vlgmr.msra.gmra.mxu0 %v4839_v0  ;;  %4133 = vmatprep.subr.mxu0 %v4839_v0 }
   0xa   :  { %4141 = vmatprep.mubr.msk.f32.mxu0 %vm4840_vm0, %v4839_v0  ;;  %4120 = vmatprep.subr.mxu1 %v4839_v0 }
   0xb   :  { %4121 = vmatpush3.msra.mxu1 %v4973_v22  ;;  %4134 = vmatpush3.msra.mxu0 %v5046_v46 }
   0xc   :  { %4122 = vmatprep.subr.mxu1 %v4839_v0  ;;  %4135 = vmatprep.subr.mxu0 %v4839_v0 }
   0xd   :  { %4123 = vmatpush3.msra.mxu1 %v4980_v23  ;;  %4136 = vmatpush3.msra.mxu0 %v5051_v47 }
   0xe   :  { %4124 = vmatprep.subr.mxu1 %v4839_v0  ;;  %4137 = vmatprep.subr.mxu0 %v4839_v0 }
   0xf   :  { %4125 = vmatpush3.msra.mxu1 %v4987_v24  ;;  %4138 = vmatpush3.msra.mxu0 %v5058_v48 }
  0x10   :  { %4126 = vmatprep.subr.mxu1 %v4839_v0  ;;  %4139 = vmatprep.subr.mxu0 %v4839_v0 }
  0x11   :  { %4127 = vmatpush3.msra.mxu1 %v4995_v26  ;;  %4140 = vmatpush3.msra.mxu0 %v5065_v49 }
  0x12   :  { %4128 = vmatprep.subr.mxu1 %v4839_v0  ;;  %4144 = vmatprep.subr.mxu0 %v4839_v0 }
  0x13   :  { %4129 = vmatpush3.msra.mxu1 %v5004_v27 }
  0x14   :  { %4155 = vmatprep.subr.mxu1 %v4839_v0 }
  0xc9   :  { %v143_v6 = vpop.f32.mrf.mxu0 }
  0xca   :  { %v147_v7 = vadd.f32 %v143_v6, %v72_v5 }
  0xcb   :  { %v4113_v8 = vpop.f32.mrf.mxu0 }
  0xcc   :  { %4618 = vtanh.f32 %v147_v7  ;;  %v148_v10 = vmul.f32 0.5, %v147_v7 }
  0xce   :  { %4620 = vtanh.f32 %v148_v10 }
  0xd9   :  { %v4619_v9 = vpop.eup %4618 }
  0xda   :  { %155 = vrot.lane.b32.xlu0 %v4619_v9, %s4841_s23 }
  0xdb   :  { %v4621_v11 = vpop.eup %4620 }
  0xdc   :  { %v150_v12 = vmul.f32 0.5, %v4621_v11 }
  0xde   :  { %v151_v13 = vadd.f32 0.5, %v150_v12 }
  0xe0   :  { %v153_v16 = vmul.f32 0.0, %v151_v13 }
 0x14c   :  { %v156_v14 = vpop.permute.xlu0 %155 }
 0x14d   :  { %v158_v15 = vmul.f32 %v156_v14, %v151_v13 }
 0x14f   :  { %160 = vrot.lane.b32.xlu0 %v158_v15, %s4841_s23 }
 0x1c1   :  { %v161_v17 = vpop.permute.xlu0 %160 }
 0x1c2   :  { %v4948_v18 = vadd.f32 %v161_v17, %v153_v16 }
 0x1c4   :  { %4622 = vtanh.f32 %v4948_v18 }
 0x1d1   :  { %v4623_v25 = vpop.eup %4622 }
 0x1d2   :  { %166 = vrot.lane.b32.xlu1 %v4623_v25, %s4841_s23 }
 0x244   :  { %v167_v28 = vpop.permute.xlu1 %166 }
 0x245   :  { %v169_v29 = vmul.f32 %v167_v28, %v151_v13 }
 0x247   :  { %171 = vrot.lane.b32.xlu1 %v169_v29, %s4842_s20 }
 0x2b9   :  { %v5009_v30 = vpop.permute.xlu1 %171 }
 0x2ba   :  { %v174_v31 = vsel %vm73_vm1, %v5009_v30, 0.0 }
 0x2bb   :  { %4131 = vmatmul.mubr.msk.f32.vlgmr.msra.gmra.mxu1 %vm175_vm2, %v174_v31 }
 0x2bc   :  { %4156 = vmatpush3.msra.mxu1 %v4954_v19  ;;  %4171 = vmatprep.mubr.msk.f32.mxu1 %vm4840_vm0, %v4839_v0 }
 0x2bd   :  { %4157 = vmatprep.subr.mxu1 %v4839_v0 }
 0x2be   :  { %4158 = vmatpush3.msra.mxu1 %v4959_v20 }
 0x2bf   :  { %4159 = vmatprep.subr.mxu1 %v4839_v0 }
 0x2c0   :  { %4160 = vmatpush3.msra.mxu1 %v4966_v21 }
 0x2c1   :  { %4161 = vmatprep.subr.mxu1 %v4839_v0 }
 0x2c2   :  { %4162 = vmatpush3.msra.mxu1 %v4973_v22 }
 0x2c3   :  { %4163 = vmatprep.subr.mxu1 %v4839_v0 }
 0x2c4   :  { %4164 = vmatpush3.msra.mxu1 %v4980_v23 }
 0x2c5   :  { %4165 = vmatprep.subr.mxu1 %v4839_v0 }
 0x2c6   :  { %4166 = vmatpush3.msra.mxu1 %v4987_v24 }
 0x2c7   :  { %4167 = vmatprep.subr.mxu1 %v4839_v0 }
 0x2c8   :  { %4168 = vmatpush3.msra.mxu1 %v4995_v26 }
 0x2c9   :  { %4169 = vmatprep.subr.mxu1 %v4839_v0 }
 0x2ca   :  { %4170 = vmatpush3.msra.mxu1 %v5004_v27 }
 0x2cb   :  { %4196 = vmatprep.subr.mxu1 %v4839_v0 }
 0x37b   :  { %v245_v33 = vpop.f32.mrf.mxu1 }
 0x37c   :  { %v246_v34 = vadd.f32 %v5035_v32, %v245_v33 }
 0x37d   :  { %v4132_v35 = vpop.f32.mrf.mxu1 }
 0x37e   :  { %4624 = vtanh.f32 %v246_v34  ;;  %v249_v37 = vmul.f32 0.5, %v246_v34 }
 0x380   :  { %4626 = vtanh.f32 %v249_v37 }
 0x38b   :  { %v4625_v36 = vpop.eup %4624 }
 0x38c   :  { %256 = vrot.lane.b32.xlu0 %v4625_v36, %s4841_s23 }
 0x38d   :  { %v4627_v38 = vpop.eup %4626 }
 0x38e   :  { %v251_v39 = vmul.f32 0.5, %v4627_v38 }
 0x390   :  { %v252_v40 = vadd.f32 0.5, %v251_v39 }
 0x392   :  { %v254_v43 = vmul.f32 0.0, %v252_v40 }
 0x3fe   :  { %v257_v41 = vpop.permute.xlu0 %256 }
 0x3ff   :  { %v259_v42 = vmul.f32 %v257_v41, %v252_v40 }
 0x401   :  { %261 = vrot.lane.b32.xlu1 %v259_v42, %s4841_s23 }
 0x473   :  { %v262_v44 = vpop.permute.xlu1 %261 }
 0x474   :  { %v5040_v45 = vadd.f32 %v262_v44, %v254_v43 }
 0x476   :  { %4628 = vtanh.f32 %v5040_v45 }
 0x483   :  { %v4629_v50 = vpop.eup %4628 }
 0x484   :  { %267 = vrot.lane.b32.xlu0 %v4629_v50, %s4841_s23 }
 0x4f6   :  { %v268_v51 = vpop.permute.xlu0 %267 }
 0x4f7   :  { %v270_v52 = vmul.f32 %v268_v51, %v252_v40  ;;  %v3835_v51 = vld [vmem:[%s6116_s0 + $0x10] sm:$0xff] }
 0x4f9   :  { %v271_v53 = vmax.f32 %v270_v52, 0.0 }
 0x4fb   :  { %273 = vrot.lane.b32.xlu1 %v271_v53, %s4842_s20 }
 0x56d   :  { %v274_v54 = vpop.permute.xlu1 %273 }
 0x56e   :  { %4142 = vmatmul.mubr.msk.f32.vlgmr.msra.gmra.mxu0 %vm73_vm1, %v274_v54 }
 0x56f   :  { %4145 = vmatpush3.msra.mxu0 %v4910_v1  ;;  %4152 = vmatprep.mubr.msk.f32.mxu0 %vm4840_vm0, %v4839_v0 }
 0x570   :  { %4146 = vmatprep.subr.mxu0 %v4839_v0 }
 0x571   :  { %4147 = vmatpush3.msra.mxu0 %v4915_v2 }
 0x572   :  { %4148 = vmatprep.subr.mxu0 %v4839_v0 }
 0x573   :  { %4149 = vmatpush3.msra.mxu0 %v4925_v3 }
 0x574   :  { %4150 = vmatprep.subr.mxu0 %v4839_v0 }
 0x575   :  { %4151 = vmatpush3.msra.mxu0 %v4934_v4 }
 0x576   :  { %4153 = vmatmul.mubr.msk.f32.vlgmr.msra.gmra.mxu0 %vm73_vm1, %v5009_v30  ;;  %4174 = vmatprep.subr.mxu0 %v4839_v0 }
 0x577   :  { %4175 = vmatpush3.msra.mxu0 %v5046_v46  ;;  %4182 = vmatprep.mubr.msk.f32.mxu0 %vm4840_vm0, %v4839_v0 }
 0x578   :  { %4176 = vmatprep.subr.mxu0 %v4839_v0 }
 0x579   :  { %4177 = vmatpush3.msra.mxu0 %v5051_v47 }
 0x57a   :  { %4178 = vmatprep.subr.mxu0 %v4839_v0 }
 0x57b   :  { %4179 = vmatpush3.msra.mxu0 %v5058_v48 }
 0x57c   :  { %4180 = vmatprep.subr.mxu0 %v4839_v0 }
 0x57d   :  { %4181 = vmatpush3.msra.mxu0 %v5065_v49 }
 0x57e   :  { %4185 = vmatprep.subr.mxu0 %v4839_v0 }
 0x62e   :  { %v5096_v55 = vpop.f32.mrf.mxu0 }
 0x630   :  { %v4143_v56 = vpop.f32.mrf.mxu0 }
 0x636   :  { %v446_v58 = vpop.f32.mrf.mxu0 }
 0x637   :  { %v450_v59 = vadd.f32 %v3831_v57, %v446_v58 }
 0x638   :  { %v4154_v60 = vpop.f32.mrf.mxu0 }
 0x639   :  { %4630 = vtanh.f32 %v450_v59  ;;  %v451_v62 = vmul.f32 0.5, %v450_v59 }
 0x63b   :  { %4632 = vtanh.f32 %v451_v62 }
 0x646   :  { %v4631_v61 = vpop.eup %4630 }
 0x647   :  { %458 = vrot.lane.b32.xlu0 %v4631_v61, %s4841_s23 }
 0x648   :  { %v4633_v63 = vpop.eup %4632 }
 0x649   :  { %v453_v5 = vmul.f32 0.5, %v4633_v63 }
 0x64b   :  { %v454_v6 = vadd.f32 0.5, %v453_v5 }
 0x64d   :  { %v456_v9 = vmul.f32 %v454_v6, %v4948_v18 }
 0x6b9   :  { %v459_v7 = vpop.permute.xlu0 %458 }
 0x6ba   :  { %v461_v8 = vmul.f32 %v459_v7, %v454_v6 }
 0x6bc   :  { %463 = vrot.lane.b32.xlu1 %v461_v8, %s4841_s23 }
 0x72e   :  { %v464_v10 = vpop.permute.xlu1 %463 }
 0x72f   :  { %v5104_v11 = vadd.f32 %v464_v10, %v456_v9 }
 0x731   :  { %4634 = vtanh.f32 %v5104_v11 }
 0x73e   :  { %v4635_v12 = vpop.eup %4634 }
 0x73f   :  { %469 = vrot.lane.b32.xlu0 %v4635_v12, %s4841_s23 }
 0x743   :  { %478 = vrot.lane.b32.xlu0 %v270_v52, %s4843_s14 }
 0x7b1   :  { %v470_v13 = vpop.permute.xlu0 %469 }
 0x7b2   :  { %v472_v14 = vmul.f32 %v470_v13, %v454_v6 }
 0x7b4   :  { %474 = vrot.lane.b32.xlu1 %v472_v14, %s4842_s20 }
 0x7b5   :  { %v479_v15 = vpop.permute.xlu0 %478 }
 0x826   :  { %v475_v16 = vpop.permute.xlu1 %474 }
 0x827   :  { %v481_v17 = vsel %vm73_vm1, %v475_v16, %v479_v15 }
 0x828   :  { %4172 = vmatmul.mubr.msk.f32.vlgmr.msra.gmra.mxu1 %vm175_vm2, %v481_v17 }
 0x829   :  { %4197 = vmatpush3.msra.mxu1 %v4954_v19  ;;  %4212 = vmatprep.mubr.msk.f32.mxu1 %vm4840_vm0, %v4839_v0 }
 0x82a   :  { %4198 = vmatprep.subr.mxu1 %v4839_v0 }
 0x82b   :  { %4199 = vmatpush3.msra.mxu1 %v4959_v20 }
 0x82c   :  { %4200 = vmatprep.subr.mxu1 %v4839_v0 }
 0x82d   :  { %4201 = vmatpush3.msra.mxu1 %v4966_v21 }
 0x82e   :  { %4202 = vmatprep.subr.mxu1 %v4839_v0 }
 0x82f   :  { %4203 = vmatpush3.msra.mxu1 %v4973_v22 }
 0x830   :  { %4204 = vmatprep.subr.mxu1 %v4839_v0 }
 0x831   :  { %4205 = vmatpush3.msra.mxu1 %v4980_v23 }
 0x832   :  { %4206 = vmatprep.subr.mxu1 %v4839_v0 }
 0x833   :  { %4207 = vmatpush3.msra.mxu1 %v4987_v24 }
 0x834   :  { %4208 = vmatprep.subr.mxu1 %v4839_v0 }
 0x835   :  { %4209 = vmatpush3.msra.mxu1 %v4995_v26 }
 0x836   :  { %4210 = vmatprep.subr.mxu1 %v4839_v0 }
 0x837   :  { %4211 = vmatpush3.msra.mxu1 %v5004_v27 }
 0x838   :  { %4237 = vmatprep.subr.mxu1 %v4839_v0 }
 0x8e8   :  { %v551_v18 = vpop.f32.mrf.mxu1 }
 0x8e9   :  { %v552_v25 = vadd.f32 %v5035_v32, %v551_v18 }
 0x8ea   :  { %v4173_v28 = vpop.f32.mrf.mxu1 }
 0x8eb   :  { %4636 = vtanh.f32 %v552_v25  ;;  %v555_v30 = vmul.f32 0.5, %v552_v25 }
 0x8ed   :  { %4638 = vtanh.f32 %v555_v30 }
 0x8f8   :  { %v4637_v29 = vpop.eup %4636 }
 0x8f9   :  { %562 = vrot.lane.b32.xlu1 %v4637_v29, %s4841_s23 }
 0x8fa   :  { %v4639_v31 = vpop.eup %4638 }
 0x8fb   :  { %v557_v33 = vmul.f32 0.5, %v4639_v31 }
 0x8fd   :  { %v558_v34 = vadd.f32 0.5, %v557_v33 }
 0x8ff   :  { %v560_v37 = vmul.f32 %v558_v34, %v5040_v45 }
 0x96b   :  { %v563_v35 = vpop.permute.xlu1 %562 }
 0x96c   :  { %v565_v36 = vmul.f32 %v563_v35, %v558_v34 }
 0x96e   :  { %567 = vrot.lane.b32.xlu0 %v565_v36, %s4841_s23 }
 0x9e0   :  { %v568_v38 = vpop.permute.xlu0 %567 }
 0x9e1   :  { %v5134_v39 = vadd.f32 %v568_v38, %v560_v37 }
 0x9e3   :  { %4640 = vtanh.f32 %v5134_v39 }
 0x9f0   :  { %v4641_v40 = vpop.eup %4640 }
 0x9f1   :  { %573 = vrot.lane.b32.xlu1 %v4641_v40, %s4841_s23 }
 0xa63   :  { %v574_v41 = vpop.permute.xlu1 %573 }
 0xa64   :  { %v576_v42 = vmul.f32 %v574_v41, %v558_v34 }
 0xa66   :  { %v577_v43 = vmax.f32 %v576_v42, 0.0 }
 0xa68   :  { %579 = vrot.lane.b32.xlu0 %v577_v43, %s4842_s20 }
 0xada   :  { %v580_v44 = vpop.permute.xlu0 %579 }
 0xadb   :  { %4183 = vmatmul.mubr.msk.f32.vlgmr.msra.gmra.mxu0 %vm73_vm1, %v580_v44 }
 0xadc   :  { %4186 = vmatpush3.msra.mxu0 %v4910_v1  ;;  %4193 = vmatprep.mubr.msk.f32.mxu0 %vm4840_vm0, %v4839_v0 }
 0xadd   :  { %4187 = vmatprep.subr.mxu0 %v4839_v0 }
 0xade   :  { %4188 = vmatpush3.msra.mxu0 %v4915_v2 }
 0xadf   :  { %4189 = vmatprep.subr.mxu0 %v4839_v0 }
 0xae0   :  { %4190 = vmatpush3.msra.mxu0 %v4925_v3 }
 0xae1   :  { %4191 = vmatprep.subr.mxu0 %v4839_v0 }
 0xae2   :  { %4192 = vmatpush3.msra.mxu0 %v4934_v4 }
 0xae3   :  { %4194 = vmatmul.mubr.msk.f32.vlgmr.msra.gmra.mxu0 %vm73_vm1, %v475_v16  ;;  %4215 = vmatprep.subr.mxu0 %v4839_v0 }
 0xae4   :  { %4216 = vmatpush3.msra.mxu0 %v5046_v46  ;;  %4223 = vmatprep.mubr.msk.f32.mxu0 %vm4840_vm0, %v4839_v0 }
 0xae5   :  { %4217 = vmatprep.subr.mxu0 %v4839_v0 }
 0xae6   :  { %4218 = vmatpush3.msra.mxu0 %v5051_v47 }
 0xae7   :  { %4219 = vmatprep.subr.mxu0 %v4839_v0 }
 0xae8   :  { %4220 = vmatpush3.msra.mxu0 %v5058_v48 }
 0xae9   :  { %4221 = vmatprep.subr.mxu0 %v4839_v0 }
 0xaea   :  { %4222 = vmatpush3.msra.mxu0 %v5065_v49 }
 0xaeb   :  { %4226 = vmatprep.subr.mxu0 %v4839_v0 }
 0xb9b   :  { %v5161_v45 = vpop.f32.mrf.mxu0 }
 0xb9d   :  { %v4184_v50 = vpop.f32.mrf.mxu0 }
 0xba3   :  { %v752_v52 = vpop.f32.mrf.mxu0 }
 0xba4   :  { %v756_v53 = vadd.f32 %v3835_v51, %v752_v52 }
 0xba5   :  { %v4195_v54 = vpop.f32.mrf.mxu0 }
 0xba6   :  { %4642 = vtanh.f32 %v756_v53  ;;  %v757_v57 = vmul.f32 0.5, %v756_v53 }
 0xba8   :  { %4644 = vtanh.f32 %v757_v57 }
 0xbb3   :  { %v4643_v56 = vpop.eup %4642 }
 0xbb4   :  { %764 = vrot.lane.b32.xlu1 %v4643_v56, %s4841_s23 }
 0xbb5   :  { %v4645_v58 = vpop.eup %4644 }
 0xbb6   :  { %v759_v59 = vmul.f32 0.5, %v4645_v58 }
 0xbb8   :  { %v760_v60 = vadd.f32 0.5, %v759_v59 }
 0xbba   :  { %v762_v63 = vmul.f32 %v760_v60, %v5104_v11 }
 0xc26   :  { %v765_v61 = vpop.permute.xlu1 %764 }
 0xc27   :  { %v767_v62 = vmul.f32 %v765_v61, %v760_v60 }
 0xc29   :  { %769 = vrot.lane.b32.xlu0 %v767_v62, %s4841_s23 }
 0xc9b   :  { %v770_v5 = vpop.permute.xlu0 %769 }
 0xc9c   :  { %v5169_v6 = vadd.f32 %v770_v5, %v762_v63 }
 0xc9e   :  { %4646 = vtanh.f32 %v5169_v6 }
 0xcab   :  { %v4647_v7 = vpop.eup %4646 }
 0xcac   :  { %775 = vrot.lane.b32.xlu1 %v4647_v7, %s4841_s23 }
 0xcb0   :  { %784 = vrot.lane.b32.xlu1 %v576_v42, %s4843_s14  ;;  %v3839_v42 = vld [vmem:[%s6116_s0 + $0x18] sm:$0xff] }
 0xd1e   :  { %v776_v8 = vpop.permute.xlu1 %775 }
 0xd1f   :  { %v778_v9 = vmul.f32 %v776_v8, %v760_v60 }
 0xd21   :  { %780 = vrot.lane.b32.xlu0 %v778_v9, %s4842_s20 }
 0xd22   :  { %v785_v10 = vpop.permute.xlu1 %784 }
 0xd93   :  { %v781_v12 = vpop.permute.xlu0 %780 }
 0xd94   :  { %v787_v13 = vsel %vm73_vm1, %v781_v12, %v785_v10 }
 0xd95   :  { %4213 = vmatmul.mubr.msk.f32.vlgmr.msra.gmra.mxu1 %vm175_vm2, %v787_v13 }
 0xd96   :  { %4238 = vmatpush3.msra.mxu1 %v4954_v19  ;;  %4253 = vmatprep.mubr.msk.f32.mxu1 %vm4840_vm0, %v4839_v0 }
 0xd97   :  { %4239 = vmatprep.subr.mxu1 %v4839_v0 }
 0xd98   :  { %4240 = vmatpush3.msra.mxu1 %v4959_v20 }
 0xd99   :  { %4241 = vmatprep.subr.mxu1 %v4839_v0 }
 0xd9a   :  { %4242 = vmatpush3.msra.mxu1 %v4966_v21 }
 0xd9b   :  { %4243 = vmatprep.subr.mxu1 %v4839_v0 }
 0xd9c   :  { %4244 = vmatpush3.msra.mxu1 %v4973_v22 }
 0xd9d   :  { %4245 = vmatprep.subr.mxu1 %v4839_v0 }
 0xd9e   :  { %4246 = vmatpush3.msra.mxu1 %v4980_v23 }
 0xd9f   :  { %4247 = vmatprep.subr.mxu1 %v4839_v0 }
 0xda0   :  { %4248 = vmatpush3.msra.mxu1 %v4987_v24 }
 0xda1   :  { %4249 = vmatprep.subr.mxu1 %v4839_v0 }
 0xda2   :  { %4250 = vmatpush3.msra.mxu1 %v4995_v26 }
 0xda3   :  { %4251 = vmatprep.subr.mxu1 %v4839_v0 }
 0xda4   :  { %4252 = vmatpush3.msra.mxu1 %v5004_v27 }
 0xda5   :  { %4278 = vmatprep.subr.mxu1 %v4839_v0 }
 0xe55   :  { %v857_v11 = vpop.f32.mrf.mxu1 }
 0xe56   :  { %v858_v14 = vadd.f32 %v5035_v32, %v857_v11 }
 0xe57   :  { %v4214_v15 = vpop.f32.mrf.mxu1 }
 0xe58   :  { %4648 = vtanh.f32 %v858_v14  ;;  %v861_v17 = vmul.f32 0.5, %v858_v14 }
 0xe5a   :  { %4650 = vtanh.f32 %v861_v17 }
 0xe65   :  { %v4649_v16 = vpop.eup %4648 }
 0xe66   :  { %868 = vrot.lane.b32.xlu0 %v4649_v16, %s4841_s23 }
 0xe67   :  { %v4651_v18 = vpop.eup %4650 }
 0xe68   :  { %v863_v25 = vmul.f32 0.5, %v4651_v18 }
 0xe6a   :  { %v864_v28 = vadd.f32 0.5, %v863_v25 }
 0xe6c   :  { %v866_v31 = vmul.f32 %v864_v28, %v5134_v39 }
 0xed8   :  { %v869_v29 = vpop.permute.xlu0 %868 }
 0xed9   :  { %v871_v30 = vmul.f32 %v869_v29, %v864_v28 }
 0xedb   :  { %873 = vrot.lane.b32.xlu1 %v871_v30, %s4841_s23 }
 0xf4d   :  { %v874_v33 = vpop.permute.xlu1 %873 }
 0xf4e   :  { %v5199_v34 = vadd.f32 %v874_v33, %v866_v31 }
 0xf50   :  { %4652 = vtanh.f32 %v5199_v34 }
 0xf5d   :  { %v4653_v35 = vpop.eup %4652 }
 0xf5e   :  { %879 = vrot.lane.b32.xlu0 %v4653_v35, %s4841_s23 }
 0xfd0   :  { %v880_v36 = vpop.permute.xlu0 %879 }
 0xfd1   :  { %v882_v37 = vmul.f32 %v880_v36, %v864_v28 }
 0xfd3   :  { %v883_v38 = vmax.f32 %v882_v37, 0.0 }
 0xfd5   :  { %885 = vrot.lane.b32.xlu1 %v883_v38, %s4842_s20  ;;  %v3843_v38 = vld [vmem:[%s6116_s0 + $0x20] sm:$0xff] }
0x1047   :  { %v886_v40 = vpop.permute.xlu1 %885 }
0x1048   :  { %4224 = vmatmul.mubr.msk.f32.vlgmr.msra.gmra.mxu0 %vm73_vm1, %v886_v40 }
0x1049   :  { %4227 = vmatpush3.msra.mxu0 %v4910_v1  ;;  %4234 = vmatprep.mubr.msk.f32.mxu0 %vm4840_vm0, %v4839_v0 }
0x104a   :  { %4228 = vmatprep.subr.mxu0 %v4839_v0 }
0x104b   :  { %4229 = vmatpush3.msra.mxu0 %v4915_v2 }
0x104c   :  { %4230 = vmatprep.subr.mxu0 %v4839_v0 }
0x104d   :  { %4231 = vmatpush3.msra.mxu0 %v4925_v3 }
0x104e   :  { %4232 = vmatprep.subr.mxu0 %v4839_v0 }
0x104f   :  { %4233 = vmatpush3.msra.mxu0 %v4934_v4 }
0x1050   :  { %4235 = vmatmul.mubr.msk.f32.vlgmr.msra.gmra.mxu0 %vm73_vm1, %v781_v12  ;;  %4256 = vmatprep.subr.mxu0 %v4839_v0 }
0x1051   :  { %4257 = vmatpush3.msra.mxu0 %v5046_v46  ;;  %4264 = vmatprep.mubr.msk.f32.mxu0 %vm4840_vm0, %v4839_v0 }
0x1052   :  { %4258 = vmatprep.subr.mxu0 %v4839_v0 }
0x1053   :  { %4259 = vmatpush3.msra.mxu0 %v5051_v47 }
0x1054   :  { %4260 = vmatprep.subr.mxu0 %v4839_v0 }
0x1055   :  { %4261 = vmatpush3.msra.mxu0 %v5058_v48 }
0x1056   :  { %4262 = vmatprep.subr.mxu0 %v4839_v0 }
0x1057   :  { %4263 = vmatpush3.msra.mxu0 %v5065_v49 }
0x1058   :  { %4267 = vmatprep.subr.mxu0 %v4839_v0 }
0x1108   :  { %v5226_v39 = vpop.f32.mrf.mxu0 }
0x110a   :  { %v4225_v41 = vpop.f32.mrf.mxu0 }
0x1110   :  { %v1058_v43 = vpop.f32.mrf.mxu0 }
0x1111   :  { %v1062_v44 = vadd.f32 %v3839_v42, %v1058_v43 }
0x1112   :  { %v4236_v50 = vpop.f32.mrf.mxu0 }
0x1113   :  { %4654 = vtanh.f32 %v1062_v44  ;;  %v1063_v52 = vmul.f32 0.5, %v1062_v44 }
0x1115   :  { %4656 = vtanh.f32 %v1063_v52 }
0x1120   :  { %v4655_v51 = vpop.eup %4654 }
0x1121   :  { %1070 = vrot.lane.b32.xlu0 %v4655_v51, %s4841_s23 }
0x1122   :  { %v4657_v53 = vpop.eup %4656 }
0x1123   :  { %v1065_v54 = vmul.f32 0.5, %v4657_v53 }
0x1125   :  { %v1066_v56 = vadd.f32 0.5, %v1065_v54 }
0x1127   :  { %v1068_v59 = vmul.f32 %v1066_v56, %v5169_v6 }
0x1193   :  { %v1071_v57 = vpop.permute.xlu0 %1070 }
0x1194   :  { %v1073_v58 = vmul.f32 %v1071_v57, %v1066_v56 }
0x1196   :  { %1075 = vrot.lane.b32.xlu1 %v1073_v58, %s4841_s23 }
0x1208   :  { %v1076_v60 = vpop.permute.xlu1 %1075 }
0x1209   :  { %v5234_v61 = vadd.f32 %v1076_v60, %v1068_v59 }
0x120b   :  { %4658 = vtanh.f32 %v5234_v61 }
0x1218   :  { %v4659_v62 = vpop.eup %4658 }
0x1219   :  { %1081 = vrot.lane.b32.xlu0 %v4659_v62, %s4841_s23 }
0x121d   :  { %1090 = vrot.lane.b32.xlu0 %v882_v37, %s4843_s14 }
0x128b   :  { %v1082_v63 = vpop.permute.xlu0 %1081 }
0x128c   :  { %v1084_v5 = vmul.f32 %v1082_v63, %v1066_v56 }
0x128e   :  { %1086 = vrot.lane.b32.xlu1 %v1084_v5, %s4842_s20 }
0x128f   :  { %v1091_v7 = vpop.permute.xlu0 %1090 }
0x1300   :  { %v1087_v8 = vpop.permute.xlu1 %1086 }
0x1301   :  { %v1093_v9 = vsel %vm73_vm1, %v1087_v8, %v1091_v7 }
0x1302   :  { %4254 = vmatmul.mubr.msk.f32.vlgmr.msra.gmra.mxu1 %vm175_vm2, %v1093_v9 }
0x1303   :  { %4279 = vmatpush3.msra.mxu1 %v4954_v19  ;;  %4294 = vmatprep.mubr.msk.f32.mxu1 %vm4840_vm0, %v4839_v0 }
0x1304   :  { %4280 = vmatprep.subr.mxu1 %v4839_v0 }
0x1305   :  { %4281 = vmatpush3.msra.mxu1 %v4959_v20 }
0x1306   :  { %4282 = vmatprep.subr.mxu1 %v4839_v0 }
0x1307   :  { %4283 = vmatpush3.msra.mxu1 %v4966_v21 }
0x1308   :  { %4284 = vmatprep.subr.mxu1 %v4839_v0 }
0x1309   :  { %4285 = vmatpush3.msra.mxu1 %v4973_v22 }
0x130a   :  { %4286 = vmatprep.subr.mxu1 %v4839_v0 }
0x130b   :  { %4287 = vmatpush3.msra.mxu1 %v4980_v23 }
0x130c   :  { %4288 = vmatprep.subr.mxu1 %v4839_v0 }
0x130d   :  { %4289 = vmatpush3.msra.mxu1 %v4987_v24 }
0x130e   :  { %4290 = vmatprep.subr.mxu1 %v4839_v0 }
0x130f   :  { %4291 = vmatpush3.msra.mxu1 %v4995_v26 }
0x1310   :  { %4292 = vmatprep.subr.mxu1 %v4839_v0 }
0x1311   :  { %4293 = vmatpush3.msra.mxu1 %v5004_v27 }
0x1312   :  { %4319 = vmatprep.subr.mxu1 %v4839_v0 }
0x13c2   :  { %v1163_v6 = vpop.f32.mrf.mxu1 }
0x13c3   :  { %v1164_v10 = vadd.f32 %v5035_v32, %v1163_v6 }
0x13c4   :  { %v4255_v12 = vpop.f32.mrf.mxu1 }
0x13c5   :  { %4660 = vtanh.f32 %v1164_v10  ;;  %v1167_v11 = vmul.f32 0.5, %v1164_v10 }
0x13c7   :  { %4662 = vtanh.f32 %v1167_v11 }
0x13d2   :  { %v4661_v13 = vpop.eup %4660 }
0x13d3   :  { %1174 = vrot.lane.b32.xlu1 %v4661_v13, %s4841_s23 }
0x13d4   :  { %v4663_v14 = vpop.eup %4662 }
0x13d5   :  { %v1169_v15 = vmul.f32 0.5, %v4663_v14 }
0x13d7   :  { %v1170_v16 = vadd.f32 0.5, %v1169_v15 }
0x13d9   :  { %v1172_v25 = vmul.f32 %v1170_v16, %v5199_v34 }
0x1445   :  { %v1175_v17 = vpop.permute.xlu1 %1174 }
0x1446   :  { %v1177_v18 = vmul.f32 %v1175_v17, %v1170_v16 }
0x1448   :  { %1179 = vrot.lane.b32.xlu0 %v1177_v18, %s4841_s23 }
0x14ba   :  { %v1180_v28 = vpop.permute.xlu0 %1179 }
0x14bb   :  { %v5264_v29 = vadd.f32 %v1180_v28, %v1172_v25 }
0x14bd   :  { %4664 = vtanh.f32 %v5264_v29 }
0x14ca   :  { %v4665_v30 = vpop.eup %4664 }
0x14cb   :  { %1185 = vrot.lane.b32.xlu1 %v4665_v30, %s4841_s23 }
0x153d   :  { %v1186_v31 = vpop.permute.xlu1 %1185 }
0x153e   :  { %v1188_v33 = vmul.f32 %v1186_v31, %v1170_v16 }
0x1540   :  { %v1189_v35 = vmax.f32 %v1188_v33, 0.0 }
0x1542   :  { %1191 = vrot.lane.b32.xlu0 %v1189_v35, %s4842_s20 }
0x15b4   :  { %v1192_v36 = vpop.permute.xlu0 %1191 }
0x15b5   :  { %4265 = vmatmul.mubr.msk.f32.vlgmr.msra.gmra.mxu0 %vm73_vm1, %v1192_v36 }
0x15b6   :  { %4268 = vmatpush3.msra.mxu0 %v4910_v1  ;;  %4275 = vmatprep.mubr.msk.f32.mxu0 %vm4840_vm0, %v4839_v0 }
0x15b7   :  { %4269 = vmatprep.subr.mxu0 %v4839_v0 }
0x15b8   :  { %4270 = vmatpush3.msra.mxu0 %v4915_v2 }
0x15b9   :  { %4271 = vmatprep.subr.mxu0 %v4839_v0 }
0x15ba   :  { %4272 = vmatpush3.msra.mxu0 %v4925_v3 }
0x15bb   :  { %4273 = vmatprep.subr.mxu0 %v4839_v0 }
0x15bc   :  { %4274 = vmatpush3.msra.mxu0 %v4934_v4 }
0x15bd   :  { %4276 = vmatmul.mubr.msk.f32.vlgmr.msra.gmra.mxu0 %vm73_vm1, %v1087_v8  ;;  %4297 = vmatprep.subr.mxu0 %v4839_v0 }
0x15be   :  { %4298 = vmatpush3.msra.mxu0 %v5046_v46  ;;  %4305 = vmatprep.mubr.msk.f32.mxu0 %vm4840_vm0, %v4839_v0 }
0x15bf   :  { %4299 = vmatprep.subr.mxu0 %v4839_v0 }
0x15c0   :  { %4300 = vmatpush3.msra.mxu0 %v5051_v47 }
0x15c1   :  { %4301 = vmatprep.subr.mxu0 %v4839_v0 }
0x15c2   :  { %4302 = vmatpush3.msra.mxu0 %v5058_v48 }
0x15c3   :  { %4303 = vmatprep.subr.mxu0 %v4839_v0 }
0x15c4   :  { %4304 = vmatpush3.msra.mxu0 %v5065_v49 }
0x15c5   :  { %4308 = vmatprep.subr.mxu0 %v4839_v0 }
0x1675   :  { %v5291_v34 = vpop.f32.mrf.mxu0 }
0x1677   :  { %v4266_v37 = vpop.f32.mrf.mxu0 }
0x167d   :  { %v1364_v40 = vpop.f32.mrf.mxu0 }
0x167e   :  { %v1368_v41 = vadd.f32 %v3843_v38, %v1364_v40 }
0x167f   :  { %v4277_v42 = vpop.f32.mrf.mxu0 }
0x1680   :  { %4666 = vtanh.f32 %v1368_v41  ;;  %v1369_v44 = vmul.f32 0.5, %v1368_v41 }
0x1682   :  { %4668 = vtanh.f32 %v1369_v44 }
0x168d   :  { %v4667_v43 = vpop.eup %4666 }
0x168e   :  { %1376 = vrot.lane.b32.xlu1 %v4667_v43, %s4841_s23 }
0x168f   :  { %v4669_v50 = vpop.eup %4668 }
0x1690   :  { %v1371_v51 = vmul.f32 0.5, %v4669_v50 }
0x1692   :  { %v1372_v52 = vadd.f32 0.5, %v1371_v51 }
0x1694   :  { %v1374_v56 = vmul.f32 %v1372_v52, %v5234_v61 }
0x1700   :  { %v1377_v53 = vpop.permute.xlu1 %1376 }
0x1701   :  { %v1379_v54 = vmul.f32 %v1377_v53, %v1372_v52  ;;  %v5387_v53 = vld [vmem:[%s6117_s3 + $0x30] sm:$0xff] }
0x1703   :  { %1381 = vrot.lane.b32.xlu0 %v1379_v54, %s4841_s23  ;;  %v5394_v54 = vld [vmem:[%s6117_s3 + $0x28] sm:$0xff] }
0x1775   :  { %v1382_v57 = vpop.permute.xlu0 %1381 }
0x1776   :  { %v5299_v58 = vadd.f32 %v1382_v57, %v1374_v56  ;;  %v5401_v56 = vld [vmem:[%s6117_s3 + $0x20] sm:$0xff]  ;;  %v5408_v57 = vld [vmem:[%s6117_s3 + $0x18] sm:$0xff] }
0x1778   :  { %4670 = vtanh.f32 %v5299_v58 }
0x1785   :  { %v4671_v59 = vpop.eup %4670 }
0x1786   :  { %1387 = vrot.lane.b32.xlu1 %v4671_v59, %s4841_s23 }
0x178a   :  { %1396 = vrot.lane.b32.xlu1 %v1188_v33, %s4843_s14 }
0x17f8   :  { %v1388_v60 = vpop.permute.xlu1 %1387 }
0x17f9   :  { %v1390_v62 = vmul.f32 %v1388_v60, %v1372_v52  ;;  %v5378_v52 = vld [vmem:[%s6117_s3 + $0x38] sm:$0xff] }
0x17fb   :  { %1392 = vrot.lane.b32.xlu0 %v1390_v62, %s4842_s20 }
0x17fc   :  { %v1397_v63 = vpop.permute.xlu1 %1396 }
0x186d   :  { %v1393_v5 = vpop.permute.xlu0 %1392 }
0x186e   :  { %v1399_v7 = vsel %vm73_vm1, %v1393_v5, %v1397_v63 }
0x186f   :  { %4295 = vmatmul.mubr.msk.f32.vlgmr.msra.gmra.mxu1 %vm175_vm2, %v1399_v7 }
0x1870   :  { %4320 = vmatpush3.msra.mxu1 %v4954_v19  ;;  %4335 = vmatprep.mubr.msk.f32.mxu1 %vm4840_vm0, %v4839_v0 }
0x1871   :  { %4321 = vmatprep.subr.mxu1 %v4839_v0 }
0x1872   :  { %4322 = vmatpush3.msra.mxu1 %v4959_v20 }
0x1873   :  { %4323 = vmatprep.subr.mxu1 %v4839_v0 }
0x1874   :  { %4324 = vmatpush3.msra.mxu1 %v4966_v21 }
0x1875   :  { %4325 = vmatprep.subr.mxu1 %v4839_v0 }
0x1876   :  { %4326 = vmatpush3.msra.mxu1 %v4973_v22 }
0x1877   :  { %4327 = vmatprep.subr.mxu1 %v4839_v0 }
0x1878   :  { %4328 = vmatpush3.msra.mxu1 %v4980_v23 }
0x1879   :  { %4329 = vmatprep.subr.mxu1 %v4839_v0 }
0x187a   :  { %4330 = vmatpush3.msra.mxu1 %v4987_v24 }
0x187b   :  { %4331 = vmatprep.subr.mxu1 %v4839_v0 }
0x187c   :  { %4332 = vmatpush3.msra.mxu1 %v4995_v26 }
0x187d   :  { %4333 = vmatprep.subr.mxu1 %v4839_v0 }
0x187e   :  { %4334 = vmatpush3.msra.mxu1 %v5004_v27 }
0x187f   :  { %4360 = vmatprep.subr.mxu1 %v4839_v0 }
0x192f   :  { %v1469_v19 = vpop.f32.mrf.mxu1 }
0x1930   :  { %v1470_v20 = vadd.f32 %v5035_v32, %v1469_v19 }
0x1931   :  { %v4296_v21 = vpop.f32.mrf.mxu1 }
0x1932   :  { %4672 = vtanh.f32 %v1470_v20  ;;  %v1473_v23 = vmul.f32 0.5, %v1470_v20 }
0x1934   :  { %4674 = vtanh.f32 %v1473_v23 }
0x193f   :  { %v4673_v22 = vpop.eup %4672 }
0x1940   :  { %1480 = vrot.lane.b32.xlu0 %v4673_v22, %s4841_s23 }
0x1941   :  { %v4675_v24 = vpop.eup %4674 }
0x1942   :  { %v1475_v61 = vmul.f32 0.5, %v4675_v24 }
0x1944   :  { %v1476_v8 = vadd.f32 0.5, %v1475_v61 }
0x1946   :  { %v1478_v10 = vmul.f32 %v1476_v8, %v5264_v29 }
0x19b2   :  { %v1481_v9 = vpop.permute.xlu0 %1480 }
0x19b3   :  { %v1483_v6 = vmul.f32 %v1481_v9, %v1476_v8 }
0x19b5   :  { %1485 = vrot.lane.b32.xlu1 %v1483_v6, %s4841_s23  ;;  %v5436_v6 = vld [vmem:[%s6115_s2 + $0x18] sm:$0xff] }
0x1a27   :  { %v1486_v12 = vpop.permute.xlu1 %1485 }
0x1a28   :  { %v5329_v13 = vadd.f32 %v1486_v12, %v1478_v10  ;;  %v5445_v10 = vld [vmem:[%s6115_s2 + $0x10] sm:$0xff]  ;;  %v5452_v12 = vld [vmem:[%s6115_s2 + $0x8] sm:$0xff] }
0x1a2a   :  { %4676 = vtanh.f32 %v5329_v13 }
0x1a37   :  { %v4677_v11 = vpop.eup %4676 }
0x1a38   :  { %1491 = vrot.lane.b32.xlu0 %v4677_v11, %s4841_s23 }
0x1aaa   :  { %v1492_v14 = vpop.permute.xlu0 %1491 }
0x1aab   :  { %v1494_v15 = vmul.f32 %v1492_v14, %v1476_v8  ;;  %v3851_v14 = vld [vmem:[%s6116_s0 + $0x30] sm:$0xff] }
0x1aad   :  { %v1495_v16 = vmax.f32 %v1494_v15, 0.0 }
0x1aaf   :  { %1497 = vrot.lane.b32.xlu1 %v1495_v16, %s4842_s20 }
0x1b21   :  { %v1498_v17 = vpop.permute.xlu1 %1497 }
0x1b22   :  { %4306 = vmatmul.mubr.msk.f32.vlgmr.msra.gmra.mxu0 %vm73_vm1, %v1498_v17 }
0x1b23   :  { %4309 = vmatpush3.msra.mxu0 %v4910_v1  ;;  %4316 = vmatprep.mubr.msk.f32.mxu0 %vm4840_vm0, %v4839_v0 }
0x1b24   :  { %4310 = vmatprep.subr.mxu0 %v4839_v0 }
0x1b25   :  { %4311 = vmatpush3.msra.mxu0 %v4915_v2 }
0x1b26   :  { %4312 = vmatprep.subr.mxu0 %v4839_v0 }
0x1b27   :  { %4313 = vmatpush3.msra.mxu0 %v4925_v3  ;;  %v3847_v3 = vld [vmem:[%s6116_s0 + $0x28] sm:$0xff] }
0x1b28   :  { %4314 = vmatprep.subr.mxu0 %v4839_v0 }
0x1b29   :  { %4315 = vmatpush3.msra.mxu0 %v4934_v4 }
0x1b2a   :  { %4317 = vmatmul.mubr.msk.f32.vlgmr.msra.gmra.mxu0 %vm73_vm1, %v1393_v5  ;;  %4338 = vmatprep.subr.mxu0 %v4839_v0 }
0x1b2b   :  { %4339 = vmatpush3.msra.mxu0 %v5046_v46  ;;  %4346 = vmatprep.mubr.msk.f32.mxu0 %vm4840_vm0, %v4839_v0 }
0x1b2c   :  { %4340 = vmatprep.subr.mxu0 %v4839_v0 }
0x1b2d   :  { %4341 = vmatpush3.msra.mxu0 %v5051_v47 }
0x1b2e   :  { %4342 = vmatprep.subr.mxu0 %v4839_v0 }
0x1b2f   :  { %4343 = vmatpush3.msra.mxu0 %v5058_v48 }
0x1b30   :  { %4344 = vmatprep.subr.mxu0 %v4839_v0 }
0x1b31   :  { %4345 = vmatpush3.msra.mxu0 %v5065_v49 }
0x1b32   :  { %4349 = vmatprep.subr.mxu0 %v4839_v0 }
0x1be2   :  { %v5356_v1 = vpop.f32.mrf.mxu0 }
0x1be4   :  { %v4307_v2 = vpop.f32.mrf.mxu0 }
0x1bea   :  { %v1670_v4 = vpop.f32.mrf.mxu0 }
0x1beb   :  { %v1674_v18 = vadd.f32 %v3847_v3, %v1670_v4 }
0x1bec   :  { %v4318_v25 = vpop.f32.mrf.mxu0 }
0x1bed   :  { %4678 = vtanh.f32 %v1674_v18  ;;  %v1675_v29 = vmul.f32 0.5, %v1674_v18 }
0x1bef   :  { %4680 = vtanh.f32 %v1675_v29 }
0x1bfa   :  { %v4679_v28 = vpop.eup %4678 }
0x1bfb   :  { %1682 = vrot.lane.b32.xlu0 %v4679_v28, %s4841_s23 }
0x1bfc   :  { %v4681_v30 = vpop.eup %4680 }
0x1bfd   :  { %v1677_v31 = vmul.f32 0.5, %v4681_v30 }
0x1bff   :  { %v1678_v33 = vadd.f32 0.5, %v1677_v31 }
0x1c01   :  { %v1680_v37 = vmul.f32 %v1678_v33, %v5299_v58  ;;  %v5415_v58 = vld [vmem:[%s6117_s3 + $0x10] sm:$0xff] }
0x1c6d   :  { %v1683_v35 = vpop.permute.xlu0 %1682 }
0x1c6e   :  { %v1685_v36 = vmul.f32 %v1683_v35, %v1678_v33 }
0x1c70   :  { %1687 = vrot.lane.b32.xlu1 %v1685_v36, %s4841_s23 }
0x1ce2   :  { %v1688_v38 = vpop.permute.xlu1 %1687 }
0x1ce3   :  { %v5364_v40 = vadd.f32 %v1688_v38, %v1680_v37  ;;  %v5508_v38 = vld [vmem:[%s6117_s3 + $0x8] sm:$0xff] }
0x1ce5   :  { %4682 = vtanh.f32 %v5364_v40 }
0x1cf2   :  { %v4683_v41 = vpop.eup %4682 }
0x1cf3   :  { %1693 = vrot.lane.b32.xlu0 %v4683_v41, %s4841_s23 }
0x1cf7   :  { %1702 = vrot.lane.b32.xlu0 %v1494_v15, %s4843_s14 }
0x1d65   :  { %v1694_v42 = vpop.permute.xlu0 %1693 }
0x1d66   :  { %v1696_v43 = vmul.f32 %v1694_v42, %v1678_v33  ;;  %v5522_v42 = vld [vmem:[%s6118_s4] ss:$0 sm:$0xff] }
0x1d68   :  { %1698 = vrot.lane.b32.xlu1 %v1696_v43, %s4842_s20 }
0x1d69   :  { %v1703_v44 = vpop.permute.xlu0 %1702 }
0x1dda   :  { %v5370_v50 = vpop.permute.xlu1 %1698 }
0x1ddb   :  { %v1705_v51 = vsel %vm73_vm1, %v5370_v50, %v1703_v44 }
0x1ddc   :  { %4336 = vmatmul.mubr.msk.f32.vlgmr.msra.gmra.mxu1 %vm175_vm2, %v1705_v51 }
0x1ddd   :  { %4361 = vmatpush3.msra.mxu1 %v5378_v52  ;;  %4376 = vmatprep.mubr.msk.f32.mxu1 %vm4840_vm0, %v4839_v0 }
0x1dde   :  { %4362 = vmatprep.subr.mxu1 %v4839_v0 }
0x1ddf   :  { %4363 = vmatpush3.msra.mxu1 %v5387_v53 }
0x1de0   :  { %4364 = vmatprep.subr.mxu1 %v4839_v0 }
0x1de1   :  { %4365 = vmatpush3.msra.mxu1 %v5394_v54 }
0x1de2   :  { %4366 = vmatprep.subr.mxu1 %v4839_v0 }
0x1de3   :  { %4367 = vmatpush3.msra.mxu1 %v5401_v56 }
0x1de4   :  { %4368 = vmatprep.subr.mxu1 %v4839_v0 }
0x1de5   :  { %4369 = vmatpush3.msra.mxu1 %v5408_v57 }
0x1de6   :  { %4370 = vmatprep.subr.mxu1 %v4839_v0 }
0x1de7   :  { %4371 = vmatpush3.msra.mxu1 %v5415_v58 }
0x1de8   :  { %4372 = vmatprep.subr.mxu1 %v4839_v0 }
0x1de9   :  { %4373 = vmatpush3.msra.mxu1 %v4995_v26 }
0x1dea   :  { %4374 = vmatprep.subr.mxu1 %v4839_v0 }
0x1deb   :  { %4375 = vmatpush3.msra.mxu1 %v5004_v27 }
0x1dec   :  { %4401 = vmatprep.subr.mxu1 %v4839_v0 }
0x1e9c   :  { %v1775_v59 = vpop.f32.mrf.mxu1 }
0x1e9d   :  { %v1776_v60 = vadd.f32 %v5035_v32, %v1775_v59 }
0x1e9e   :  { %v4337_v62 = vpop.f32.mrf.mxu1 }
0x1e9f   :  { %4684 = vtanh.f32 %v1776_v60  ;;  %v1779_v5 = vmul.f32 0.5, %v1776_v60 }
0x1ea1   :  { %4686 = vtanh.f32 %v1779_v5 }
0x1eac   :  { %v4685_v63 = vpop.eup %4684 }
0x1ead   :  { %1786 = vrot.lane.b32.xlu1 %v4685_v63, %s4841_s23 }
0x1eae   :  { %v4687_v7 = vpop.eup %4686 }
0x1eaf   :  { %v1781_v19 = vmul.f32 0.5, %v4687_v7 }
0x1eb1   :  { %v1782_v20 = vadd.f32 0.5, %v1781_v19 }
0x1eb3   :  { %v1784_v27 = vmul.f32 %v1782_v20, %v5329_v13  ;;  %v5459_v13 = vld [vmem:[%s6115_s2] sm:$0xff] }
0x1f1f   :  { %v1787_v26 = vpop.permute.xlu1 %1786 }
0x1f20   :  { %v1789_v21 = vmul.f32 %v1787_v26, %v1782_v20 }
0x1f22   :  { %1791 = vrot.lane.b32.xlu0 %v1789_v21, %s4841_s23 }
0x1f94   :  { %v1792_v22 = vpop.permute.xlu0 %1791 }
0x1f95   :  { %v5427_v23 = vadd.f32 %v1792_v22, %v1784_v27 }
0x1f97   :  { %4688 = vtanh.f32 %v5427_v23 }
0x1fa4   :  { %v4689_v32 = vpop.eup %4688 }
0x1fa5   :  { %1797 = vrot.lane.b32.xlu1 %v4689_v32, %s4841_s23 }
0x2017   :  { %v1798_v24 = vpop.permute.xlu1 %1797 }
0x2018   :  { %v1800_v61 = vmul.f32 %v1798_v24, %v1782_v20  ;;  %v5557_v24 = vld [vmem:[%s6119_s5 + $0x10] sm:$0xff] }
0x201a   :  { %v1801_v8 = vmax.f32 %v1800_v61, 0.0 }
0x201c   :  { %1803 = vrot.lane.b32.xlu0 %v1801_v8, %s4842_s20  ;;  %v5571_v8 = vld [vmem:[%s6119_s5] sm:$0xff] }
0x208e   :  { %v1804_v9 = vpop.permute.xlu0 %1803 }
0x208f   :  { %4347 = vmatmul.mubr.msk.f32.vlgmr.msra.gmra.mxu0 %vm73_vm1, %v1804_v9 }
0x2090   :  { %4350 = vmatpush3.msra.mxu0 %v5436_v6  ;;  %4357 = vmatprep.mubr.msk.f32.mxu0 %vm4840_vm0, %v4839_v0 }
0x2091   :  { %4351 = vmatprep.subr.mxu0 %v4839_v0 }
0x2092   :  { %4352 = vmatpush3.msra.mxu0 %v5445_v10 }
0x2093   :  { %4353 = vmatprep.subr.mxu0 %v4839_v0 }
0x2094   :  { %4354 = vmatpush3.msra.mxu0 %v5452_v12 }
0x2095   :  { %4355 = vmatprep.subr.mxu0 %v4839_v0 }
0x2096   :  { %4356 = vmatpush3.msra.mxu0 %v5459_v13 }
0x2097   :  { %4358 = vmatmul.mubr.msk.f32.vlgmr.msra.gmra.mxu0 %vm73_vm1, %v5370_v50  ;;  %4379 = vmatprep.subr.mxu0 %v4839_v0 }
0x2098   :  { %4380 = vmatpush3.msra.mxu0 %v5046_v46  ;;  %4387 = vmatprep.mubr.msk.f32.mxu0 %vm4840_vm0, %v4839_v0 }
0x2099   :  { %4381 = vmatprep.subr.mxu0 %v4839_v0 }
0x209a   :  { %4382 = vmatpush3.msra.mxu0 %v5051_v47 }
0x209b   :  { %4383 = vmatprep.subr.mxu0 %v4839_v0 }
0x209c   :  { %4384 = vmatpush3.msra.mxu0 %v5058_v48 }
0x209d   :  { %4385 = vmatprep.subr.mxu0 %v4839_v0 }
0x209e   :  { %4386 = vmatpush3.msra.mxu0 %v5065_v49 }
0x209f   :  { %4390 = vmatprep.subr.mxu0 %v4839_v0 }
0x214f   :  { %v5475_v11 = vpop.f32.mrf.mxu0 }
0x2151   :  { %v4348_v46 = vpop.f32.mrf.mxu0 }
0x2157   :  { %v1976_v15 = vpop.f32.mrf.mxu0 }
0x2158   :  { %v1980_v16 = vadd.f32 %v3851_v14, %v1976_v15  ;;  %v3855_v14 = vld [vmem:[%s6116_s0 + $0x38] sm:$0xff] }
0x2159   :  { %v4359_v47 = vpop.f32.mrf.mxu0 }
0x215a   :  { %4690 = vtanh.f32 %v1980_v16  ;;  %v1981_v48 = vmul.f32 0.5, %v1980_v16 }
0x215c   :  { %4692 = vtanh.f32 %v1981_v48 }
0x2167   :  { %v4691_v17 = vpop.eup %4690 }
0x2168   :  { %1988 = vrot.lane.b32.xlu1 %v4691_v17, %s4841_s23 }
0x2169   :  { %v4693_v2 = vpop.eup %4692 }
0x216a   :  { %v1983_v49 = vmul.f32 0.5, %v4693_v2 }
0x216c   :  { %v1984_v3 = vadd.f32 0.5, %v1983_v49 }
0x216e   :  { %v1986_v25 = vmul.f32 %v1984_v3, %v5364_v40  ;;  %v5515_v40 = vld [vmem:[%s6117_s3] sm:$0xff] }
0x21da   :  { %v1989_v4 = vpop.permute.xlu1 %1988 }
0x21db   :  { %v1991_v18 = vmul.f32 %v1989_v4, %v1984_v3 }
0x21dd   :  { %1993 = vrot.lane.b32.xlu0 %v1991_v18, %s4841_s23 }
0x224f   :  { %v1994_v28 = vpop.permute.xlu0 %1993 }
0x2250   :  { %v5483_v29 = vadd.f32 %v1994_v28, %v1986_v25 }
0x2252   :  { %4694 = vtanh.f32 %v5483_v29 }
0x225f   :  { %v4695_v30 = vpop.eup %4694 }
0x2260   :  { %1999 = vrot.lane.b32.xlu1 %v4695_v30, %s4841_s23 }
0x2264   :  { %2008 = vrot.lane.b32.xlu1 %v1800_v61, %s4843_s14  ;;  %v5564_v61 = vld [vmem:[%s6119_s5 + $0x8] sm:$0xff] }
0x22d2   :  { %v2000_v31 = vpop.permute.xlu1 %1999 }
0x22d3   :  { %v2002_v33 = vmul.f32 %v2000_v31, %v1984_v3 }
0x22d5   :  { %2004 = vrot.lane.b32.xlu0 %v2002_v33, %s4842_s20 }
0x22d6   :  { %v2009_v35 = vpop.permute.xlu1 %2008 }
0x2347   :  { %v2005_v36 = vpop.permute.xlu0 %2004 }
0x2348   :  { %v2011_v37 = vsel %vm73_vm1, %v2005_v36, %v2009_v35 }
0x2349   :  { %4377 = vmatmul.mubr.msk.f32.vlgmr.msra.gmra.mxu1 %vm175_vm2, %v2011_v37 }
0x234a   :  { %4402 = vmatpush3.msra.mxu1 %v5378_v52  ;;  %4417 = vmatprep.mubr.msk.f32.mxu1 %vm4840_vm0, %v4839_v0 }
0x234b   :  { %4403 = vmatprep.subr.mxu1 %v4839_v0 }
0x234c   :  { %4404 = vmatpush3.msra.mxu1 %v5387_v53 }
0x234d   :  { %4405 = vmatprep.subr.mxu1 %v4839_v0 }
0x234e   :  { %4406 = vmatpush3.msra.mxu1 %v5394_v54 }
0x234f   :  { %4407 = vmatprep.subr.mxu1 %v4839_v0 }
0x2350   :  { %4408 = vmatpush3.msra.mxu1 %v5401_v56 }
0x2351   :  { %4409 = vmatprep.subr.mxu1 %v4839_v0 }
0x2352   :  { %4410 = vmatpush3.msra.mxu1 %v5408_v57 }
0x2353   :  { %4411 = vmatprep.subr.mxu1 %v4839_v0 }
0x2354   :  { %4412 = vmatpush3.msra.mxu1 %v5415_v58 }
0x2355   :  { %4413 = vmatprep.subr.mxu1 %v4839_v0 }
0x2356   :  { %4414 = vmatpush3.msra.mxu1 %v5508_v38 }
0x2357   :  { %4415 = vmatprep.subr.mxu1 %v4839_v0 }
0x2358   :  { %4416 = vmatpush3.msra.mxu1 %v5515_v40 }
0x2359   :  { %4442 = vmatprep.subr.mxu1 %v4839_v0 }
0x2409   :  { %v2081_v41 = vpop.f32.mrf.mxu1 }
0x240a   :  { %v2082_v43 = vadd.f32 %v5522_v42, %v2081_v41 }
0x240b   :  { %v4378_v44 = vpop.f32.mrf.mxu1 }
0x240c   :  { %4696 = vtanh.f32 %v2082_v43  ;;  %v2085_v51 = vmul.f32 0.5, %v2082_v43 }
0x240e   :  { %4698 = vtanh.f32 %v2085_v51 }
0x2419   :  { %v4697_v50 = vpop.eup %4696 }
0x241a   :  { %2092 = vrot.lane.b32.xlu0 %v4697_v50, %s4841_s23 }
0x241b   :  { %v4699_v59 = vpop.eup %4698 }
0x241c   :  { %v2087_v60 = vmul.f32 0.5, %v4699_v59 }
0x241e   :  { %v2088_v62 = vadd.f32 0.5, %v2087_v60 }
0x2420   :  { %v2090_v7 = vmul.f32 %v2088_v62, %v5427_v23  ;;  %v5548_v23 = vld [vmem:[%s6119_s5 + $0x18] sm:$0xff] }
0x248c   :  { %v2093_v63 = vpop.permute.xlu0 %2092 }
0x248d   :  { %v2095_v5 = vmul.f32 %v2093_v63, %v2088_v62 }
0x248f   :  { %2097 = vrot.lane.b32.xlu1 %v2095_v5, %s4841_s23 }
0x2501   :  { %v2098_v19 = vpop.permute.xlu1 %2097 }
0x2502   :  { %v5528_v20 = vadd.f32 %v2098_v19, %v2090_v7 }
0x2504   :  { %4700 = vtanh.f32 %v5528_v20 }
0x2511   :  { %v4701_v26 = vpop.eup %4700 }
0x2512   :  { %2103 = vrot.lane.b32.xlu0 %v4701_v26, %s4841_s23 }
0x2584   :  { %v2104_v21 = vpop.permute.xlu0 %2103 }
0x2585   :  { %v2106_v27 = vmul.f32 %v2104_v21, %v2088_v62 }
0x2587   :  { %v2107_v22 = vmax.f32 %v2106_v27, 0.0 }
0x2589   :  { %2109 = vrot.lane.b32.xlu1 %v2107_v22, %s4842_s20 }
0x25fb   :  { %v2110_v32 = vpop.permute.xlu1 %2109 }
0x25fc   :  { %4388 = vmatmul.mubr.msk.f32.vlgmr.msra.gmra.mxu0 %vm73_vm1, %v2110_v32  ;;  %v5622_v32 = vld [vmem:[%s6120_s7] sm:$0xff] }
0x25fd   :  { %4391 = vmatpush3.msra.mxu0 %v5436_v6  ;;  %4398 = vmatprep.mubr.msk.f32.mxu0 %vm4840_vm0, %v4839_v0 }
0x25fe   :  { %4392 = vmatprep.subr.mxu0 %v4839_v0 }
0x25ff   :  { %4393 = vmatpush3.msra.mxu0 %v5445_v10 }
0x2600   :  { %4394 = vmatprep.subr.mxu0 %v4839_v0 }
0x2601   :  { %4395 = vmatpush3.msra.mxu0 %v5452_v12 }
0x2602   :  { %4396 = vmatprep.subr.mxu0 %v4839_v0 }
0x2603   :  { %4397 = vmatpush3.msra.mxu0 %v5459_v13 }
0x2604   :  { %4399 = vmatmul.mubr.msk.f32.vlgmr.msra.gmra.mxu0 %vm73_vm1, %v2005_v36  ;;  %4420 = vmatprep.subr.mxu0 %v4839_v0 }
0x2605   :  { %4421 = vmatpush3.msra.mxu0 %v5548_v23  ;;  %4428 = vmatprep.mubr.msk.f32.mxu0 %vm4840_vm0, %v4839_v0 }
0x2606   :  { %4422 = vmatprep.subr.mxu0 %v4839_v0 }
0x2607   :  { %4423 = vmatpush3.msra.mxu0 %v5557_v24 }
0x2608   :  { %4424 = vmatprep.subr.mxu0 %v4839_v0 }
0x2609   :  { %4425 = vmatpush3.msra.mxu0 %v5564_v61 }
0x260a   :  { %4426 = vmatprep.subr.mxu0 %v4839_v0 }
0x260b   :  { %4427 = vmatpush3.msra.mxu0 %v5571_v8 }
0x260c   :  { %4431 = vmatprep.subr.mxu0 %v4839_v0 }
0x26bc   :  { %v5575_v9 = vpop.f32.mrf.mxu0 }
0x26be   :  { %v4389_v46 = vpop.f32.mrf.mxu0 }
0x26c4   :  { %v2282_v15 = vpop.f32.mrf.mxu0 }
0x26c5   :  { %v2286_v16 = vadd.f32 %v3855_v14, %v2282_v15  ;;  %v5652_v14 = vld [vmem:[%s6121_s6] ss:$0 sm:$0xff] }
0x26c6   :  { %v4400_v47 = vpop.f32.mrf.mxu0 }
0x26c7   :  { %4702 = vtanh.f32 %v2286_v16  ;;  %v2287_v48 = vmul.f32 0.5, %v2286_v16 }
0x26c9   :  { %4704 = vtanh.f32 %v2287_v48 }
0x26d4   :  { %v4703_v17 = vpop.eup %4702 }
0x26d5   :  { %2294 = vrot.lane.b32.xlu0 %v4703_v17, %s4841_s23 }
0x26d6   :  { %v4705_v2 = vpop.eup %4704 }
0x26d7   :  { %v2289_v49 = vmul.f32 0.5, %v4705_v2 }
0x26d9   :  { %v2290_v3 = vadd.f32 0.5, %v2289_v49 }
0x26db   :  { %v2292_v25 = vmul.f32 %v2290_v3, %v5483_v29 }
0x2747   :  { %v2295_v4 = vpop.permute.xlu0 %2294 }
0x2748   :  { %v2297_v18 = vmul.f32 %v2295_v4, %v2290_v3 }
0x274a   :  { %2299 = vrot.lane.b32.xlu1 %v2297_v18, %s4841_s23 }
0x27bc   :  { %v2300_v28 = vpop.permute.xlu1 %2299 }
0x27bd   :  { %v5583_v30 = vadd.f32 %v2300_v28, %v2292_v25 }
0x27bf   :  { %4706 = vtanh.f32 %v5583_v30 }
0x27cc   :  { %v4707_v31 = vpop.eup %4706 }
0x27cd   :  { %2305 = vrot.lane.b32.xlu0 %v4707_v31, %s4841_s23 }
0x27d1   :  { %2314 = vrot.lane.b32.xlu0 %v2106_v27, %s4843_s14 }
0x283f   :  { %v2306_v33 = vpop.permute.xlu0 %2305 }
0x2840   :  { %v2308_v35 = vmul.f32 %v2306_v33, %v2290_v3  ;;  %v4845_v33 = vmov 0  }
0x2841   :  { %4607 = vset.pattern.permute.xlu1 %v4845_v33 }
0x2842   :  { %2310 = vrot.lane.b32.xlu1 %v2308_v35, %s4842_s20 }
0x2843   :  { %v2315_v36 = vpop.permute.xlu0 %2314 }
0x28b4   :  { %v2311_v37 = vpop.permute.xlu1 %2310 }
0x28b5   :  { %v2317_v41 = vsel %vm73_vm1, %v2311_v37, %v2315_v36 }
0x28b6   :  { %4418 = vmatmul.mubr.msk.f32.vlgmr.msra.gmra.mxu1 %vm175_vm2, %v2317_v41 }
0x28b7   :  { %4443 = vmatpush3.msra.mxu1 %v5378_v52  ;;  %4458 = vmatprep.mubr.msk.f32.mxu1 %vm4840_vm0, %v4839_v0 }
0x28b8   :  { %4444 = vmatprep.subr.mxu1 %v4839_v0 }
0x28b9   :  { %4445 = vmatpush3.msra.mxu1 %v5387_v53 }
0x28ba   :  { %4446 = vmatprep.subr.mxu1 %v4839_v0 }
0x28bb   :  { %4447 = vmatpush3.msra.mxu1 %v5394_v54 }
0x28bc   :  { %4448 = vmatprep.subr.mxu1 %v4839_v0 }
0x28bd   :  { %4449 = vmatpush3.msra.mxu1 %v5401_v56 }
0x28be   :  { %4450 = vmatprep.subr.mxu1 %v4839_v0 }
0x28bf   :  { %4451 = vmatpush3.msra.mxu1 %v5408_v57 }
0x28c0   :  { %4452 = vmatprep.subr.mxu1 %v4839_v0 }
0x28c1   :  { %4453 = vmatpush3.msra.mxu1 %v5415_v58 }
0x28c2   :  { %4454 = vmatprep.subr.mxu1 %v4839_v0 }
0x28c3   :  { %4455 = vmatpush3.msra.mxu1 %v5508_v38 }
0x28c4   :  { %4456 = vmatprep.subr.mxu1 %v4839_v0 }
0x28c5   :  { %4457 = vmatpush3.msra.mxu1 %v5515_v40 }
0x28c6   :  { %4483 = vmatprep.subr.mxu1 %v4839_v0 }
0x2976   :  { %v2387_v29 = vpop.f32.mrf.mxu1 }
0x2977   :  { %v2388_v43 = vadd.f32 %v5522_v42, %v2387_v29 }
0x2978   :  { %v4419_v44 = vpop.f32.mrf.mxu1 }
0x2979   :  { %4708 = vtanh.f32 %v2388_v43  ;;  %v2391_v51 = vmul.f32 0.5, %v2388_v43 }
0x297b   :  { %4710 = vtanh.f32 %v2391_v51 }
0x2986   :  { %v4709_v50 = vpop.eup %4708 }
0x2987   :  { %2398 = vrot.lane.b32.xlu1 %v4709_v50, %s4841_s23 }
0x2988   :  { %v4711_v59 = vpop.eup %4710 }
0x2989   :  { %v2393_v60 = vmul.f32 0.5, %v4711_v59 }
0x298b   :  { %v2394_v62 = vadd.f32 0.5, %v2393_v60 }
0x298d   :  { %v2396_v7 = vmul.f32 %v2394_v62, %v5528_v20 }
0x29f9   :  { %v2399_v63 = vpop.permute.xlu1 %2398 }
0x29fa   :  { %v2401_v5 = vmul.f32 %v2399_v63, %v2394_v62  ;;  %v5671_v63 = vld [vmem:[%s6122_s1] ss:$0 sm:$0xff]  ;;  %s4847_s1 = smov 121  }
0x29fc   :  { %2403 = vrot.lane.b32.xlu0 %v2401_v5, %s4841_s23 }
0x2a6e   :  { %v2404_v19 = vpop.permute.xlu0 %2403 }
0x2a6f   :  { %v5613_v26 = vadd.f32 %v2404_v19, %v2396_v7 }
0x2a71   :  { %4712 = vtanh.f32 %v5613_v26 }
0x2a7e   :  { %v4713_v21 = vpop.eup %4712 }
0x2a7f   :  { %2409 = vrot.lane.b32.xlu1 %v4713_v21, %s4841_s23 }
0x2a83   :  { %2519 = vrot.lane.b32.xlu1 %v5622_v32, %s4844_s30 }
0x2af1   :  { %v2410_v27 = vpop.permute.xlu1 %2409 }
0x2af2   :  { %v5617_v22 = vmul.f32 %v2410_v27, %v2394_v62  ;;  %v3859_v62 = vld [vmem:[%s6116_s0 + $0x40] sm:$0xff] }
0x2af4   :  { %v2413_v20 = vmax.f32 %v5617_v22, 0.0 }
0x2af5   :  { %v2520_v44 = vpop.permute.xlu1 %2519 }
0x2af6   :  { %2415 = vrot.lane.b32.xlu0 %v2413_v20, %s4842_s20 }
0x2b68   :  { %v2416_v46 = vpop.permute.xlu0 %2415 }
0x2b69   :  { %4429 = vmatmul.mubr.msk.f32.vlgmr.msra.gmra.mxu0 %vm73_vm1, %v2416_v46 }
0x2b6a   :  { %4432 = vmatpush3.msra.mxu0 %v5436_v6  ;;  %4439 = vmatprep.mubr.msk.f32.mxu0 %vm4840_vm0, %v4839_v0 }
0x2b6b   :  { %4433 = vmatprep.subr.mxu0 %v4839_v0 }
0x2b6c   :  { %4434 = vmatpush3.msra.mxu0 %v5445_v10 }
0x2b6d   :  { %4435 = vmatprep.subr.mxu0 %v4839_v0 }
0x2b6e   :  { %4436 = vmatpush3.msra.mxu0 %v5452_v12 }
0x2b6f   :  { %4437 = vmatprep.subr.mxu0 %v4839_v0 }
0x2b70   :  { %4438 = vmatpush3.msra.mxu0 %v5459_v13 }
0x2b71   :  { %4440 = vmatmul.mubr.msk.f32.vlgmr.msra.gmra.mxu0 %vm73_vm1, %v2311_v37  ;;  %4461 = vmatprep.subr.mxu0 %v4839_v0 }
0x2b72   :  { %4462 = vmatpush3.msra.mxu0 %v5548_v23  ;;  %4469 = vmatprep.mubr.msk.f32.mxu0 %vm4840_vm0, %v4839_v0 }
0x2b73   :  { %4463 = vmatprep.subr.mxu0 %v4839_v0 }
0x2b74   :  { %4464 = vmatpush3.msra.mxu0 %v5557_v24 }
0x2b75   :  { %4465 = vmatprep.subr.mxu0 %v4839_v0 }
0x2b76   :  { %4466 = vmatpush3.msra.mxu0 %v5564_v61 }
0x2b77   :  { %4467 = vmatprep.subr.mxu0 %v4839_v0 }
0x2b78   :  { %4468 = vmatpush3.msra.mxu0 %v5571_v8 }
0x2b79   :  { %4472 = vmatprep.subr.mxu0 %v4839_v0 }
0x2c29   :  { %v2485_v15 = vpop.f32.mrf.mxu0 }
0x2c2a   :  { %v5655_v16 = vadd.f32 %v5652_v14, %v2485_v15 }
0x2c2b   :  { %v4430_v47 = vpop.f32.mrf.mxu0 }
0x2c2c   :  { %v2490_v17 = vand.u32 2147483647, %v5655_v16  ;;  %v2489_v41 = vmax.f32 %v5655_v16, 0.0 }
0x2c2e   :  { %v2491_v48 = vsub.f32 0.0, %v2490_v17 }
0x2c30   :  { %v2492_v2 = vmul.f32 1.442695, %v2491_v48 }
0x2c31   :  { %v2604_v49 = vpop.f32.mrf.mxu0 }
0x2c32   :  { %4714 = vpow2.f32 %v2492_v2  ;;  %v2608_v7 = vadd.f32 %v3859_v62, %v2604_v49 }
0x2c33   :  { %v4441_v3 = vpop.f32.mrf.mxu0 }
0x2c3f   :  { %v4715_v4 = vpop.eup %4714 }
0x2c40   :  { %v2494_v18 = vadd.f32 1.0, %v4715_v4  ;;  %v2497_v25 = vmul.f32 -0.5, %v4715_v4  ;;  %v2500_v31 = vand.u32 2147483647, %v4715_v4 }
0x2c42   :  { %4716 = vlog2.f32 %v2494_v18  ;;  %v2498_v28 = vadd.f32 1.0, %v2497_v25  ;;  %vm2501_vm3 = vcmp.lt.f32.partialorder %v2500_v31, 0.0004427343 }
0x2c44   :  { %v2499_v37 = vmul.f32 %v4715_v4, %v2498_v28 }
0x2c4f   :  { %v4717_v35 = vpop.eup %4716 }
0x2c50   :  { %v2496_v36 = vmul.f32 0.6931472, %v4717_v35 }
0x2c52   :  { %v2502_v29 = vsel %vm2501_vm3, %v2499_v37, %v2496_v36 }
0x2c53   :  { %v2503_v43 = vadd.f32 %v2502_v29, %v2489_v41 }
0x2c55   :  { %v5660_v50 = vadd.f32 1e-06, %v2503_v43 }
0x2c57   :  { %v2522_v51 = vmul.f32 %v2520_v44, %v5660_v50 }
0x2c59   :  { %2524 = vrot.lane.b32.xlu0 %v2522_v51, %s4846_s12 }
0x2ccb   :  { %v2525_v59 = vpop.permute.xlu0 %2524 }
0x2ccc   :  { %v2527_v60 = vadd.f32 %v2525_v59, %v5655_v16 }
0x2cce   :  { %2530 = vperm.xlu1 %4607, %v2527_v60  }
0x2d49   :  { %v5673_v5 = vpop.permute.xlu1 %2530 }
0x2d4a   :  { %v2609_v19 = vmul.f32 %v5671_v63, %v5673_v5 }
0x2d4c   :  { %v2610_v21 = vadd.f32 %v2609_v19, %v2608_v7 }
0x2d4e   :  { %4718 = vtanh.f32 %v2610_v21  ;;  %v2611_v20 = vmul.f32 0.5, %v2610_v21 }
0x2d50   :  { %4720 = vtanh.f32 %v2611_v20 }
0x2d5b   :  { %v4719_v27 = vpop.eup %4718 }
0x2d5c   :  { %2618 = vrot.lane.b32.xlu0 %v4719_v27, %s4841_s23 }
0x2d5d   :  { %v4721_v46 = vpop.eup %4720 }
0x2d5e   :  { %v2613_v15 = vmul.f32 0.5, %v4721_v46 }
0x2d60   :  { %v2614_v47 = vadd.f32 0.5, %v2613_v15 }
0x2d62   :  { %v2616_v2 = vmul.f32 %v2614_v47, %v5583_v30 }
0x2dce   :  { %v2619_v17 = vpop.permute.xlu0 %2618 }
0x2dcf   :  { %v2621_v48 = vmul.f32 %v2619_v17, %v2614_v47 }
0x2dd1   :  { %2623 = vrot.lane.b32.xlu1 %v2621_v48, %s4841_s23 }
0x2e43   :  { %v2624_v49 = vpop.permute.xlu1 %2623 }
0x2e44   :  { %v5680_v3 = vadd.f32 %v2624_v49, %v2616_v2 }
0x2e46   :  { %4722 = vtanh.f32 %v5680_v3 }
0x2e53   :  { %v4723_v4 = vpop.eup %4722 }
0x2e54   :  { %2629 = vrot.lane.b32.xlu0 %v4723_v4, %s4841_s23 }
0x2e58   :  { %2638 = vrot.lane.b32.xlu0 %v5617_v22, %s4843_s14 }
0x2ec6   :  { %v2630_v18 = vpop.permute.xlu0 %2629 }
0x2ec7   :  { %v2632_v25 = vmul.f32 %v2630_v18, %v2614_v47 }
0x2ec9   :  { %2634 = vrot.lane.b32.xlu1 %v2632_v25, %s4842_s20 }
0x2eca   :  { %v2639_v28 = vpop.permute.xlu0 %2638 }
0x2f3b   :  { %v2635_v31 = vpop.permute.xlu1 %2634 }
0x2f3c   :  { %v2641_v35 = vsel %vm73_vm1, %v2635_v31, %v2639_v28 }
0x2f3d   :  { %4459 = vmatmul.mubr.msk.f32.vlgmr.msra.gmra.mxu1 %vm175_vm2, %v2641_v35 }
0x2f3e   :  { %4484 = vmatpush3.msra.mxu1 %v5378_v52  ;;  %4499 = vmatprep.mubr.msk.f32.mxu1 %vm4840_vm0, %v4839_v0 }
0x2f3f   :  { %4485 = vmatprep.subr.mxu1 %v4839_v0 }
0x2f40   :  { %4486 = vmatpush3.msra.mxu1 %v5387_v53 }
0x2f41   :  { %4487 = vmatprep.subr.mxu1 %v4839_v0 }
0x2f42   :  { %4488 = vmatpush3.msra.mxu1 %v5394_v54 }
0x2f43   :  { %4489 = vmatprep.subr.mxu1 %v4839_v0 }
0x2f44   :  { %4490 = vmatpush3.msra.mxu1 %v5401_v56 }
0x2f45   :  { %4491 = vmatprep.subr.mxu1 %v4839_v0 }
0x2f46   :  { %4492 = vmatpush3.msra.mxu1 %v5408_v57 }
0x2f47   :  { %4493 = vmatprep.subr.mxu1 %v4839_v0 }
0x2f48   :  { %4494 = vmatpush3.msra.mxu1 %v5415_v58 }
0x2f49   :  { %4495 = vmatprep.subr.mxu1 %v4839_v0 }
0x2f4a   :  { %4496 = vmatpush3.msra.mxu1 %v5508_v38 }
0x2f4b   :  { %4497 = vmatprep.subr.mxu1 %v4839_v0 }
0x2f4c   :  { %4498 = vmatpush3.msra.mxu1 %v5515_v40 }
0x2f4d   :  { %4524 = vmatprep.subr.mxu1 %v4839_v0 }
0x2ffd   :  { %v2711_v30 = vpop.f32.mrf.mxu1 }
0x2ffe   :  { %v2712_v22 = vadd.f32 %v5522_v42, %v2711_v30 }
0x2fff   :  { %v4460_v36 = vpop.f32.mrf.mxu1 }
0x3000   :  { %4724 = vtanh.f32 %v2712_v22  ;;  %v2715_v41 = vmul.f32 0.5, %v2712_v22 }
0x3002   :  { %4726 = vtanh.f32 %v2715_v41 }
0x300d   :  { %v4725_v37 = vpop.eup %4724 }
0x300e   :  { %2722 = vrot.lane.b32.xlu1 %v4725_v37, %s4841_s23 }
0x300f   :  { %v4727_v29 = vpop.eup %4726 }
0x3010   :  { %v2717_v43 = vmul.f32 0.5, %v4727_v29 }
0x3012   :  { %v2718_v44 = vadd.f32 0.5, %v2717_v43 }
0x3014   :  { %v2720_v60 = vmul.f32 %v2718_v44, %v5613_v26 }
0x3080   :  { %v2723_v51 = vpop.permute.xlu1 %2722 }
0x3081   :  { %v2725_v59 = vmul.f32 %v2723_v51, %v2718_v44 }
0x3083   :  { %2727 = vrot.lane.b32.xlu0 %v2725_v59, %s4841_s23 }
0x30f5   :  { %v2728_v62 = vpop.permute.xlu0 %2727 }
0x30f6   :  { %v5711_v7 = vadd.f32 %v2728_v62, %v2720_v60  ;;  %v3863_v62 = vld [vmem:[%s6116_s0 + $0x48] sm:$0xff] }
0x30f8   :  { %4728 = vtanh.f32 %v5711_v7 }
0x3105   :  { %v4729_v19 = vpop.eup %4728 }
0x3106   :  { %2733 = vrot.lane.b32.xlu1 %v4729_v19, %s4841_s23 }
0x310a   :  { %2842 = vrot.lane.b32.xlu1 %v5622_v32, %s4847_s1 }
0x3178   :  { %v2734_v21 = vpop.permute.xlu1 %2733 }
0x3179   :  { %v5715_v27 = vmul.f32 %v2734_v21, %v2718_v44 }
0x317b   :  { %v2737_v20 = vmax.f32 %v5715_v27, 0.0 }
0x317c   :  { %v2843_v43 = vpop.permute.xlu1 %2842 }
0x317d   :  { %2739 = vrot.lane.b32.xlu0 %v2737_v20, %s4842_s20 }
0x31ef   :  { %v2740_v46 = vpop.permute.xlu0 %2739 }
0x31f0   :  { %4470 = vmatmul.mubr.msk.f32.vlgmr.msra.gmra.mxu0 %vm73_vm1, %v2740_v46 }
0x31f1   :  { %4473 = vmatpush3.msra.mxu0 %v5436_v6  ;;  %4480 = vmatprep.mubr.msk.f32.mxu0 %vm4840_vm0, %v4839_v0 }
0x31f2   :  { %4474 = vmatprep.subr.mxu0 %v4839_v0 }
0x31f3   :  { %4475 = vmatpush3.msra.mxu0 %v5445_v10 }
0x31f4   :  { %4476 = vmatprep.subr.mxu0 %v4839_v0 }
0x31f5   :  { %4477 = vmatpush3.msra.mxu0 %v5452_v12 }
0x31f6   :  { %4478 = vmatprep.subr.mxu0 %v4839_v0 }
0x31f7   :  { %4479 = vmatpush3.msra.mxu0 %v5459_v13 }
0x31f8   :  { %4481 = vmatmul.mubr.msk.f32.vlgmr.msra.gmra.mxu0 %vm73_vm1, %v2635_v31  ;;  %4502 = vmatprep.subr.mxu0 %v4839_v0 }
0x31f9   :  { %4503 = vmatpush3.msra.mxu0 %v5548_v23  ;;  %4510 = vmatprep.mubr.msk.f32.mxu0 %vm4840_vm0, %v4839_v0 }
0x31fa   :  { %4504 = vmatprep.subr.mxu0 %v4839_v0 }
0x31fb   :  { %4505 = vmatpush3.msra.mxu0 %v5557_v24 }
0x31fc   :  { %4506 = vmatprep.subr.mxu0 %v4839_v0 }
0x31fd   :  { %4507 = vmatpush3.msra.mxu0 %v5564_v61 }
0x31fe   :  { %4508 = vmatprep.subr.mxu0 %v4839_v0 }
0x31ff   :  { %4509 = vmatpush3.msra.mxu0 %v5571_v8 }
0x3200   :  { %4513 = vmatprep.subr.mxu0 %v4839_v0 }
0x32b0   :  { %v2809_v26 = vpop.f32.mrf.mxu0 }
0x32b1   :  { %v5743_v15 = vadd.f32 %v5652_v14, %v2809_v26 }
0x32b2   :  { %v4471_v47 = vpop.f32.mrf.mxu0 }
0x32b3   :  { %v2814_v17 = vand.u32 2147483647, %v5743_v15  ;;  %v2813_v37 = vmax.f32 %v5743_v15, 0.0 }
0x32b5   :  { %v2815_v48 = vsub.f32 0.0, %v2814_v17 }
0x32b7   :  { %v2816_v2 = vmul.f32 1.442695, %v2815_v48 }
0x32b8   :  { %v2927_v49 = vpop.f32.mrf.mxu0 }
0x32b9   :  { %4730 = vpow2.f32 %v2816_v2  ;;  %v2931_v21 = vadd.f32 %v3863_v62, %v2927_v49 }
0x32ba   :  { %v4482_v4 = vpop.f32.mrf.mxu0 }
0x32c6   :  { %v4731_v18 = vpop.eup %4730 }
0x32c7   :  { %v2818_v25 = vadd.f32 1.0, %v4731_v18  ;;  %v2821_v28 = vmul.f32 -0.5, %v4731_v18  ;;  %v2824_v35 = vand.u32 2147483647, %v4731_v18 }
0x32c9   :  { %4732 = vlog2.f32 %v2818_v25  ;;  %v2822_v31 = vadd.f32 1.0, %v2821_v28  ;;  %vm2825_vm4 = vcmp.lt.f32.partialorder %v2824_v35, 0.0004427343 }
0x32cb   :  { %v2823_v36 = vmul.f32 %v4731_v18, %v2822_v31 }
0x32d6   :  { %v4733_v30 = vpop.eup %4732 }
0x32d7   :  { %v2820_v22 = vmul.f32 0.6931472, %v4733_v30 }
0x32d9   :  { %v2826_v41 = vsel %vm2825_vm4, %v2823_v36, %v2820_v22 }
0x32da   :  { %v2827_v29 = vadd.f32 %v2826_v41, %v2813_v37 }
0x32dc   :  { %v5747_v44 = vadd.f32 1e-06, %v2827_v29 }
0x32de   :  { %v2845_v51 = vmul.f32 %v2843_v43, %v5747_v44 }
0x32e0   :  { %2847 = vrot.lane.b32.xlu0 %v2845_v51, %s4846_s12 }
0x3352   :  { %v2848_v59 = vpop.permute.xlu0 %2847 }
0x3353   :  { %v2850_v60 = vadd.f32 %v2848_v59, %v5743_v15 }
0x3355   :  { %2853 = vperm.xlu1 %4607, %v2850_v60  }
0x33d0   :  { %v5755_v19 = vpop.permute.xlu1 %2853 }
0x33d1   :  { %v2932_v20 = vmul.f32 %v5671_v63, %v5755_v19 }
0x33d3   :  { %v2933_v46 = vadd.f32 %v2932_v20, %v2931_v21 }
0x33d5   :  { %4734 = vtanh.f32 %v2933_v46  ;;  %v2934_v47 = vmul.f32 0.5, %v2933_v46 }
0x33d7   :  { %4736 = vtanh.f32 %v2934_v47 }
0x33e2   :  { %v4735_v26 = vpop.eup %4734 }
0x33e3   :  { %2941 = vrot.lane.b32.xlu0 %v4735_v26, %s4841_s23 }
0x33e4   :  { %v4737_v17 = vpop.eup %4736 }
0x33e5   :  { %v2936_v48 = vmul.f32 0.5, %v4737_v17 }
0x33e7   :  { %v2937_v2 = vadd.f32 0.5, %v2936_v48 }
0x33e9   :  { %v2939_v25 = vmul.f32 %v2937_v2, %v5680_v3 }
0x3455   :  { %v2942_v4 = vpop.permute.xlu0 %2941 }
0x3456   :  { %v2944_v18 = vmul.f32 %v2942_v4, %v2937_v2 }
0x3458   :  { %2946 = vrot.lane.b32.xlu1 %v2944_v18, %s4841_s23 }
0x34ca   :  { %v2947_v49 = vpop.permute.xlu1 %2946 }
0x34cb   :  { %v5762_v28 = vadd.f32 %v2947_v49, %v2939_v25 }
0x34cd   :  { %4738 = vtanh.f32 %v5762_v28 }
0x34da   :  { %v4739_v31 = vpop.eup %4738 }
0x34db   :  { %2952 = vrot.lane.b32.xlu0 %v4739_v31, %s4841_s23 }
0x34df   :  { %2961 = vrot.lane.b32.xlu0 %v5715_v27, %s4843_s14 }
0x354d   :  { %v2953_v35 = vpop.permute.xlu0 %2952 }
0x354e   :  { %v2955_v30 = vmul.f32 %v2953_v35, %v2937_v2 }
0x3550   :  { %2957 = vrot.lane.b32.xlu1 %v2955_v30, %s4842_s20 }
0x3551   :  { %v2962_v22 = vpop.permute.xlu0 %2961 }
0x35c2   :  { %v2958_v36 = vpop.permute.xlu1 %2957 }
0x35c3   :  { %v2964_v37 = vsel %vm73_vm1, %v2958_v36, %v2962_v22 }
0x35c4   :  { %4500 = vmatmul.mubr.msk.f32.vlgmr.msra.gmra.mxu1 %vm175_vm2, %v2964_v37 }
0x35c5   :  { %4525 = vmatpush3.msra.mxu1 %v5378_v52  ;;  %4540 = vmatprep.mubr.msk.f32.mxu1 %vm4840_vm0, %v4839_v0 }
0x35c6   :  { %4526 = vmatprep.subr.mxu1 %v4839_v0 }
0x35c7   :  { %4527 = vmatpush3.msra.mxu1 %v5387_v53 }
0x35c8   :  { %4528 = vmatprep.subr.mxu1 %v4839_v0 }
0x35c9   :  { %4529 = vmatpush3.msra.mxu1 %v5394_v54 }
0x35ca   :  { %4530 = vmatprep.subr.mxu1 %v4839_v0 }
0x35cb   :  { %4531 = vmatpush3.msra.mxu1 %v5401_v56 }
0x35cc   :  { %4532 = vmatprep.subr.mxu1 %v4839_v0 }
0x35cd   :  { %4533 = vmatpush3.msra.mxu1 %v5408_v57 }
0x35ce   :  { %4534 = vmatprep.subr.mxu1 %v4839_v0 }
0x35cf   :  { %4535 = vmatpush3.msra.mxu1 %v5415_v58 }
0x35d0   :  { %4536 = vmatprep.subr.mxu1 %v4839_v0 }
0x35d1   :  { %4537 = vmatpush3.msra.mxu1 %v5508_v38 }
0x35d2   :  { %4538 = vmatprep.subr.mxu1 %v4839_v0 }
0x35d3   :  { %4539 = vmatpush3.msra.mxu1 %v5515_v40 }
0x35d4   :  { %4565 = vmatprep.subr.mxu1 %v4839_v0 }
0x3684   :  { %v3034_v52 = vpop.f32.mrf.mxu1 }
0x3685   :  { %v3035_v53 = vadd.f32 %v5522_v42, %v3034_v52 }
0x3686   :  { %v4501_v54 = vpop.f32.mrf.mxu1 }
0x3687   :  { %4740 = vtanh.f32 %v3035_v53  ;;  %v3038_v57 = vmul.f32 0.5, %v3035_v53 }
0x3689   :  { %4742 = vtanh.f32 %v3038_v57  ;;  %v3867_v57 = vld [vmem:[%s6116_s0 + $0x50] sm:$0xff] }
0x3694   :  { %v4741_v56 = vpop.eup %4740 }
0x3695   :  { %3045 = vrot.lane.b32.xlu1 %v4741_v56, %s4841_s23 }
0x3696   :  { %v4743_v58 = vpop.eup %4742 }
0x3697   :  { %v3040_v3 = vmul.f32 0.5, %v4743_v58 }
0x3699   :  { %v3041_v27 = vadd.f32 0.5, %v3040_v3 }
0x369b   :  { %v3043_v43 = vmul.f32 %v3041_v27, %v5711_v7 }
0x3707   :  { %v3046_v41 = vpop.permute.xlu1 %3045 }
0x3708   :  { %v3048_v29 = vmul.f32 %v3046_v41, %v3041_v27 }
0x370a   :  { %3050 = vrot.lane.b32.xlu0 %v3048_v29, %s4841_s23 }
0x377c   :  { %v3051_v51 = vpop.permute.xlu0 %3050 }
0x377d   :  { %v5793_v59 = vadd.f32 %v3051_v51, %v3043_v43 }
0x377f   :  { %4744 = vtanh.f32 %v5793_v59 }
0x378c   :  { %v4745_v60 = vpop.eup %4744 }
0x378d   :  { %3056 = vrot.lane.b32.xlu1 %v4745_v60, %s4841_s23 }
0x3791   :  { %3165 = vrot.lane.b32.xlu1 %v5622_v32, %s4848_s21 }
0x37ff   :  { %v3057_v62 = vpop.permute.xlu1 %3056 }
0x3800   :  { %v5797_v21 = vmul.f32 %v3057_v62, %v3041_v27 }
0x3802   :  { %v3060_v20 = vmax.f32 %v5797_v21, 0.0 }
0x3803   :  { %v3166_v37 = vpop.permute.xlu1 %3165 }
0x3804   :  { %3062 = vrot.lane.b32.xlu0 %v3060_v20, %s4842_s20 }
0x3876   :  { %v3063_v46 = vpop.permute.xlu0 %3062 }
0x3877   :  { %4511 = vmatmul.mubr.msk.f32.vlgmr.msra.gmra.mxu0 %vm73_vm1, %v3063_v46 }
0x3878   :  { %4514 = vmatpush3.msra.mxu0 %v5436_v6  ;;  %4521 = vmatprep.mubr.msk.f32.mxu0 %vm4840_vm0, %v4839_v0 }
0x3879   :  { %4515 = vmatprep.subr.mxu0 %v4839_v0 }
0x387a   :  { %4516 = vmatpush3.msra.mxu0 %v5445_v10 }
0x387b   :  { %4517 = vmatprep.subr.mxu0 %v4839_v0 }
0x387c   :  { %4518 = vmatpush3.msra.mxu0 %v5452_v12 }
0x387d   :  { %4519 = vmatprep.subr.mxu0 %v4839_v0 }
0x387e   :  { %4520 = vmatpush3.msra.mxu0 %v5459_v13 }
0x387f   :  { %4522 = vmatmul.mubr.msk.f32.vlgmr.msra.gmra.mxu0 %vm73_vm1, %v2958_v36  ;;  %4543 = vmatprep.subr.mxu0 %v4839_v0 }
0x3880   :  { %4544 = vmatpush3.msra.mxu0 %v5548_v23  ;;  %4551 = vmatprep.mubr.msk.f32.mxu0 %vm4840_vm0, %v4839_v0 }
0x3881   :  { %4545 = vmatprep.subr.mxu0 %v4839_v0 }
0x3882   :  { %4546 = vmatpush3.msra.mxu0 %v5557_v24 }
0x3883   :  { %4547 = vmatprep.subr.mxu0 %v4839_v0 }
0x3884   :  { %4548 = vmatpush3.msra.mxu0 %v5564_v61 }
0x3885   :  { %4549 = vmatprep.subr.mxu0 %v4839_v0 }
0x3886   :  { %4550 = vmatpush3.msra.mxu0 %v5571_v8 }
0x3887   :  { %4554 = vmatprep.subr.mxu0 %v4839_v0 }
0x3937   :  { %v3132_v6 = vpop.f32.mrf.mxu0 }
0x3938   :  { %v5825_v10 = vadd.f32 %v5652_v14, %v3132_v6 }
0x3939   :  { %v4512_v12 = vpop.f32.mrf.mxu0 }
0x393a   :  { %v3137_v13 = vand.u32 2147483647, %v5825_v10  ;;  %v3136_v30 = vmax.f32 %v5825_v10, 0.0 }
0x393c   :  { %v3138_v7 = vsub.f32 0.0, %v3137_v13 }
0x393e   :  { %v3139_v26 = vmul.f32 1.442695, %v3138_v7 }
0x393f   :  { %v3250_v47 = vpop.f32.mrf.mxu0 }
0x3940   :  { %4746 = vpow2.f32 %v3139_v26  ;;  %v3254_v3 = vadd.f32 %v3867_v57, %v3250_v47 }
0x3941   :  { %v4523_v17 = vpop.f32.mrf.mxu0 }
0x394d   :  { %v4747_v48 = vpop.eup %4746 }
0x394e   :  { %v3141_v2 = vadd.f32 1.0, %v4747_v48  ;;  %v3144_v4 = vmul.f32 -0.5, %v4747_v48  ;;  %v3147_v25 = vand.u32 2147483647, %v4747_v48 }
0x3950   :  { %4748 = vlog2.f32 %v3141_v2  ;;  %v3145_v18 = vadd.f32 1.0, %v3144_v4  ;;  %vm3148_vm5 = vcmp.lt.f32.partialorder %v3147_v25, 0.0004427343  ;;  %v4827_v2 = vld [vmem:[%s6117_s3 + $0x38] sm:$0xff]  ;;  %v4829_v4 = vld [vmem:[%s6117_s3 + $0x28] sm:$0xff] }
0x3951   :  { %v4831_v25 = vld [vmem:[%s6117_s3 + $0x18] sm:$0xff] }
0x3952   :  { %v3146_v35 = vmul.f32 %v4747_v48, %v3145_v18  ;;  %v4830_v18 = vld [vmem:[%s6117_s3 + $0x20] sm:$0xff] }
0x395d   :  { %v4749_v49 = vpop.eup %4748 }
0x395e   :  { %v3143_v31 = vmul.f32 0.6931472, %v4749_v49  ;;  %v4832_v49 = vld [vmem:[%s6117_s3 + $0x10] sm:$0xff] }
0x3960   :  { %v3149_v22 = vsel %vm3148_vm5, %v3146_v35, %v3143_v31 }
0x3961   :  { %v3150_v36 = vadd.f32 %v3149_v22, %v3136_v30 }
0x3963   :  { %v5829_v52 = vadd.f32 1e-06, %v3150_v36 }
0x3965   :  { %v3168_v53 = vmul.f32 %v3166_v37, %v5829_v52 }
0x3967   :  { %3170 = vrot.lane.b32.xlu0 %v3168_v53, %s4846_s12 }
0x39d9   :  { %v3171_v54 = vpop.permute.xlu0 %3170 }
0x39da   :  { %v3173_v56 = vadd.f32 %v3171_v54, %v5825_v10 }
0x39dc   :  { %3176 = vperm.xlu1 %4607, %v3173_v56  }
0x3a57   :  { %v5837_v58 = vpop.permute.xlu1 %3176 }
0x3a58   :  { %v3255_v27 = vmul.f32 %v5671_v63, %v5837_v58 }
0x3a5a   :  { %v3256_v41 = vadd.f32 %v3255_v27, %v3254_v3 }
0x3a5c   :  { %4750 = vtanh.f32 %v3256_v41  ;;  %v3257_v43 = vmul.f32 0.5, %v3256_v41 }
0x3a5e   :  { %4752 = vtanh.f32 %v3257_v43 }
0x3a69   :  { %v4751_v29 = vpop.eup %4750 }
0x3a6a   :  { %3264 = vrot.lane.b32.xlu0 %v4751_v29, %s4841_s23 }
0x3a6b   :  { %v4753_v51 = vpop.eup %4752 }
0x3a6c   :  { %v3259_v60 = vmul.f32 0.5, %v4753_v51  ;;  %v4835_v51 = vld [vmem:[%s6115_s2 + $0x8] sm:$0xff] }
0x3a6e   :  { %v3260_v62 = vadd.f32 0.5, %v3259_v60  ;;  %v4836_v60 = vld [vmem:[%s6115_s2] sm:$0xff] }
0x3a70   :  { %v3262_v6 = vmul.f32 %v3260_v62, %v5762_v28 }
0x3adc   :  { %v3265_v20 = vpop.permute.xlu0 %3264 }
0x3add   :  { %v3267_v46 = vmul.f32 %v3265_v20, %v3260_v62 }
0x3adf   :  { %3269 = vrot.lane.b32.xlu1 %v3267_v46, %s4841_s23 }
0x3b51   :  { %v3270_v12 = vpop.permute.xlu1 %3269 }
0x3b52   :  { %v5844_v13 = vadd.f32 %v3270_v12, %v3262_v6 }
0x3b54   :  { %4754 = vtanh.f32 %v5844_v13 }
0x3b61   :  { %v4755_v7 = vpop.eup %4754 }
0x3b62   :  { %3275 = vrot.lane.b32.xlu0 %v4755_v7, %s4841_s23 }
0x3b66   :  { %3284 = vrot.lane.b32.xlu0 %v5797_v21, %s4843_s14  ;;  %v4828_v21 = vld [vmem:[%s6117_s3 + $0x30] sm:$0xff]  ;;  %s4849_s3 = smov 119  }
0x3bd4   :  { %v3276_v26 = vpop.permute.xlu0 %3275 }
0x3bd5   :  { %v3278_v47 = vmul.f32 %v3276_v26, %v3260_v62 }
0x3bd7   :  { %3280 = vrot.lane.b32.xlu1 %v3278_v47, %s4842_s20 }
0x3bd8   :  { %v3285_v17 = vpop.permute.xlu0 %3284 }
0x3c49   :  { %v5851_v48 = vpop.permute.xlu1 %3280 }
0x3c4a   :  { %v3287_v28 = vsel %vm73_vm1, %v5851_v48, %v3285_v17 }
0x3c4b   :  { %4541 = vmatmul.mubr.msk.f32.vlgmr.msra.gmra.mxu1 %vm175_vm2, %v3287_v28 }
0x3c4c   :  { %4566 = vmatpush3.msra.mxu1 %v4827_v2  ;;  %4581 = vmatprep.mubr.msk.f32.mxu1 %vm4840_vm0, %v4839_v0 }
0x3c4d   :  { %4567 = vmatprep.subr.mxu1 %v4839_v0 }
0x3c4e   :  { %4568 = vmatpush3.msra.mxu1 %v4828_v21 }
0x3c4f   :  { %4569 = vmatprep.subr.mxu1 %v4839_v0 }
0x3c50   :  { %4570 = vmatpush3.msra.mxu1 %v4829_v4 }
0x3c51   :  { %4571 = vmatprep.subr.mxu1 %v4839_v0 }
0x3c52   :  { %4572 = vmatpush3.msra.mxu1 %v4830_v18 }
0x3c53   :  { %4573 = vmatprep.subr.mxu1 %v4839_v0 }
0x3c54   :  { %4574 = vmatpush3.msra.mxu1 %v4831_v25 }
0x3c55   :  { %4575 = vmatprep.subr.mxu1 %v4839_v0 }
0x3c56   :  { %4576 = vmatpush3.msra.mxu1 %v4832_v49 }
0x3c57   :  { %4577 = vmatprep.subr.mxu1 %v4839_v0 }
0x3c58   :  { %4578 = vmatpush3.msra.mxu1 %v5508_v38 }
0x3c59   :  { %4579 = vmatprep.subr.mxu1 %v4839_v0 }
0x3c5a   :  { %4580 = vmatpush3.msra.mxu1 %v5515_v40 }
0x3d0b   :  { %v3357_v31 = vpop.f32.mrf.mxu1 }
0x3d0c   :  { %v3358_v35 = vadd.f32 %v5522_v42, %v3357_v31 }
0x3d0d   :  { %v4542_v30 = vpop.f32.mrf.mxu1 }
0x3d0e   :  { %4756 = vtanh.f32 %v3358_v35  ;;  %v3361_v36 = vmul.f32 0.5, %v3358_v35  ;;  %v70_v30 = vlaneseq }
0x3d10   :  { %4758 = vtanh.f32 %v3361_v36 }
0x3d1b   :  { %v4757_v22 = vpop.eup %4756 }
0x3d1c   :  { %3368 = vrot.lane.b32.xlu1 %v4757_v22, %s4841_s23  ;;  %v5938_v22 = vand.u32 127, %v70_v30 }
0x3d1d   :  { %v4759_v37 = vpop.eup %4758 }
0x3d1e   :  { %v3363_v53 = vmul.f32 0.5, %v4759_v37  ;;  %vm363_vm7 = vcmp.eq.s32.totalorder %v5938_v22, 0  ;;  %vm669_vm8 = vcmp.eq.s32.totalorder %v5938_v22, 1  ;;  %vm975_vm9 = vcmp.eq.s32.totalorder %v5938_v22, 2  ;;  %v3871_v37 = vld [vmem:[%s6116_s0 + $0x58] sm:$0xff] }
0x3d1f   :  { %v2533_v36 = vsel %vm363_vm7, %v5673_v5, 0.0  ;;  %vm1281_vm10 = vcmp.eq.s32.totalorder %v5938_v22, 3  ;;  %vm1587_vm3 = vcmp.eq.s32.totalorder %v5938_v22, 4  ;;  %vm1893_vm4 = vcmp.eq.s32.totalorder %v5938_v22, 5 }
0x3d20   :  { %v3364_v54 = vadd.f32 0.5, %v3363_v53  ;;  %v2856_v53 = vsel %vm669_vm8, %v5755_v19, %v2533_v36  ;;  %v5989_v36 = vadd.f32 %v5652_v14, %v5356_v1  ;;  %vm2199_vm5 = vcmp.eq.s32.totalorder %v5938_v22, 6 }
0x3d22   :  { %v3366_v38 = vmul.f32 %v3364_v54, %v5793_v59  ;;  %v4833_v59 = vld [vmem:[%s6115_s2 + $0x18] sm:$0xff] }
0x3d8e   :  { %v3369_v56 = vpop.permute.xlu1 %3368 }
0x3d8f   :  { %v3371_v57 = vmul.f32 %v3369_v56, %v3364_v54 }
0x3d91   :  { %3373 = vrot.lane.b32.xlu0 %v3371_v57, %s4841_s23 }
0x3e03   :  { %v3374_v40 = vpop.permute.xlu0 %3373 }
0x3e04   :  { %v5889_v3 = vadd.f32 %v3374_v40, %v3366_v38 }
0x3e06   :  { %4760 = vtanh.f32 %v5889_v3 }
0x3e13   :  { %v4761_v42 = vpop.eup %4760 }
0x3e14   :  { %3379 = vrot.lane.b32.xlu1 %v4761_v42, %s4841_s23 }
0x3e18   :  { %3488 = vrot.lane.b32.xlu1 %v5622_v32, %s4849_s3  ;;  %v4834_v32 = vld [vmem:[%s6115_s2 + $0x10] sm:$0xff] }
0x3e86   :  { %v3380_v27 = vpop.permute.xlu1 %3379 }
0x3e87   :  { %v5893_v41 = vmul.f32 %v3380_v27, %v3364_v54  ;;  %v3179_v54 = vsel %vm975_vm9, %v5837_v58, %v2856_v53 }
0x3e89   :  { %v3383_v29 = vmax.f32 %v5893_v41, 0.0 }
0x3e8a   :  { %v3489_v18 = vpop.permute.xlu1 %3488 }
0x3e8b   :  { %3385 = vrot.lane.b32.xlu0 %v3383_v29, %s4842_s20 }
0x3efd   :  { %v3386_v43 = vpop.permute.xlu0 %3385 }
0x3efe   :  { %4552 = vmatmul.mubr.msk.f32.vlgmr.msra.gmra.mxu0 %vm73_vm1, %v3386_v43 }
0x3eff   :  { %4555 = vmatpush3.msra.mxu0 %v4833_v59  ;;  %4562 = vmatprep.mubr.msk.f32.mxu0 %vm4840_vm0, %v4839_v0 }
0x3f00   :  { %4556 = vmatprep.subr.mxu0 %v4839_v0 }
0x3f01   :  { %4557 = vmatpush3.msra.mxu0 %v4834_v32 }
0x3f02   :  { %4558 = vmatprep.subr.mxu0 %v4839_v0 }
0x3f03   :  { %4559 = vmatpush3.msra.mxu0 %v4835_v51 }
0x3f04   :  { %4560 = vmatprep.subr.mxu0 %v4839_v0 }
0x3f05   :  { %4561 = vmatpush3.msra.mxu0 %v4836_v60 }
0x3f06   :  { %4563 = vmatmul.mubr.msk.f32.vlgmr.msra.gmra.mxu0 %vm73_vm1, %v5851_v48  ;;  %4584 = vmatprep.subr.mxu0 %v4839_v0 }
0x3f07   :  { %4585 = vmatpush3.msra.mxu0 %v5548_v23  ;;  %4592 = vmatprep.mubr.msk.f32.mxu0 %vm4840_vm0, %v4839_v0 }
0x3f08   :  { %4586 = vmatprep.subr.mxu0 %v4839_v0 }
0x3f09   :  { %4587 = vmatpush3.msra.mxu0 %v5557_v24 }
0x3f0a   :  { %4588 = vmatprep.subr.mxu0 %v4839_v0 }
0x3f0b   :  { %4589 = vmatpush3.msra.mxu0 %v5564_v61 }
0x3f0c   :  { %4590 = vmatprep.subr.mxu0 %v4839_v0 }
0x3f0d   :  { %4591 = vmatpush3.msra.mxu0 %v5571_v8 }
0x3fbe   :  { %v3455_v62 = vpop.f32.mrf.mxu0 }
0x3fbf   :  { %v5929_v20 = vadd.f32 %v5652_v14, %v3455_v62 }
0x3fc0   :  { %v4553_v23 = vpop.f32.mrf.mxu0 }
0x3fc1   :  { %v3460_v46 = vand.u32 2147483647, %v5929_v20  ;;  %v3459_v2 = vmax.f32 %v5929_v20, 0.0 }
0x3fc3   :  { %v3461_v6 = vsub.f32 0.0, %v3460_v46 }
0x3fc5   :  { %v3462_v12 = vmul.f32 1.442695, %v3461_v6 }
0x3fc6   :  { %v3573_v7 = vpop.f32.mrf.mxu0 }
0x3fc7   :  { %4762 = vpow2.f32 %v3462_v12  ;;  %v3577_v57 = vadd.f32 %v3871_v37, %v3573_v7  ;;  %v4837_v7 = vld [vmem:[%s6118_s4] ss:$0 sm:$0xff]  ;;  %v1572_v37 = vand.u32 2147483647, %v5989_v36 }
0x3fc8   :  { %v4564_v24 = vpop.f32.mrf.mxu0 }
0x3fc9   :  { %v1573_v53 = vsub.f32 0.0, %v1572_v37 }
0x3fd4   :  { %v4763_v26 = vpop.eup %4762 }
0x3fd5   :  { %v3464_v47 = vadd.f32 1.0, %v4763_v26  ;;  %v3467_v61 = vmul.f32 -0.5, %v4763_v26  ;;  %v3470_v0 = vand.u32 2147483647, %v4763_v26 }
0x3fd7   :  { %4764 = vlog2.f32 %v3464_v47  ;;  %v3468_v17 = vadd.f32 1.0, %v3467_v61  ;;  %vm3471_vm6 = vcmp.lt.f32.partialorder %v3470_v0, 0.0004427343 }
0x3fd9   :  { %v3469_v28 = vmul.f32 %v4763_v26, %v3468_v17 }
0x3fe4   :  { %v4765_v48 = vpop.eup %4764 }
0x3fe5   :  { %v3466_v8 = vmul.f32 0.6931472, %v4765_v48 }
0x3fe7   :  { %v3472_v21 = vsel %vm3471_vm6, %v3469_v28, %v3466_v8  ;;  %v4850_v28 = vmov 1   ;;  %vm2505_vm6 = vcmp.eq.s32.totalorder %v5938_v22, 7 }
0x3fe8   :  { %v3473_v4 = vadd.f32 %v3472_v21, %v3459_v2  ;;  %4608 = vset.pattern.permute.xlu0 %v4850_v28  ;;  %v650_v2 = vadd.f32 %v5652_v14, %v5161_v45  ;;  %v5993_v45 = vadd.f32 %v5652_v14, %v5475_v11 }
0x3fea   :  { %v5933_v25 = vadd.f32 1e-06, %v3473_v4  ;;  %v654_v21 = vand.u32 2147483647, %v650_v2  ;;  %v5984_v4 = vadd.f32 %v5652_v14, %v5226_v39  ;;  %v1878_v39 = vand.u32 2147483647, %v5993_v45 }
0x3fec   :  { %v3491_v49 = vmul.f32 %v3489_v18, %v5933_v25  ;;  %v655_v18 = vsub.f32 0.0, %v654_v21 }
0x3fee   :  { %3493 = vrot.lane.b32.xlu0 %v3491_v49, %s4846_s12  ;;  %v960_v49 = vand.u32 2147483647, %v5984_v4 }
0x4060   :  { %v3494_v31 = vpop.permute.xlu0 %3493 }
0x4061   :  { %v3496_v35 = vadd.f32 %v3494_v31, %v5929_v20  ;;  %v656_v31 = vmul.f32 1.442695, %v655_v18 }
0x4063   :  { %3499 = vperm.xlu1 %4607, %v3496_v35   ;;  %v961_v35 = vsub.f32 0.0, %v960_v49 }
0x4065   :  { %v962_v30 = vmul.f32 1.442695, %v961_v35 }
0x40de   :  { %v3500_v56 = vpop.permute.xlu1 %3499 }
0x40df   :  { %v3502_v38 = vsel %vm1281_vm10, %v3500_v56, %v3179_v54  ;;  %v3578_v5 = vmul.f32 %v5671_v63, %v3500_v56  ;;  %v1879_v56 = vsub.f32 0.0, %v1878_v39 }
0x40e0   :  { %3813 = vst [vmem:[%s6123_s10] sm:$0xff] %v3502_v38 }
0x40e1   :  { %v3579_v40 = vadd.f32 %v3578_v5, %v3577_v57  ;;  %v1574_v57 = vmul.f32 1.442695, %v1573_v53 }
0x40e3   :  { %4766 = vtanh.f32 %v3579_v40  ;;  %v3580_v19 = vmul.f32 0.5, %v3579_v40  ;;  %v1880_v40 = vmul.f32 1.442695, %v1879_v56 }
0x40e5   :  { %4768 = vtanh.f32 %v3580_v19 }
0x40f0   :  { %v4767_v42 = vpop.eup %4766 }
0x40f1   :  { %3587 = vrot.lane.b32.xlu0 %v4767_v42, %s4841_s23 }
0x40f2   :  { %v4769_v27 = vpop.eup %4768 }
0x40f3   :  { %v3582_v58 = vmul.f32 0.5, %v4769_v27 }
0x40f5   :  { %v3583_v29 = vadd.f32 0.5, %v3582_v58 }
0x40f7   :  { %v3585_v63 = vmul.f32 %v3583_v29, %v5844_v13 }
0x4163   :  { %v3588_v43 = vpop.permute.xlu0 %3587 }
0x4164   :  { %v3590_v59 = vmul.f32 %v3588_v43, %v3583_v29 }
0x4166   :  { %3592 = vrot.lane.b32.xlu1 %v3590_v59, %s4841_s23 }
0x41d8   :  { %v3593_v32 = vpop.permute.xlu1 %3592 }
0x41d9   :  { %v3595_v51 = vadd.f32 %v3593_v32, %v3585_v63 }
0x41db   :  { %4770 = vtanh.f32 %v3595_v51 }
0x41e8   :  { %v4771_v60 = vpop.eup %4770 }
0x41e9   :  { %3598 = vrot.lane.b32.xlu0 %v4771_v60, %s4841_s23 }
0x41ed   :  { %3607 = vrot.lane.b32.xlu0 %v5893_v41, %s4843_s14 }
0x425b   :  { %v3599_v62 = vpop.permute.xlu0 %3598 }
0x425c   :  { %v3601_v23 = vmul.f32 %v3599_v62, %v3583_v29 }
0x425e   :  { %3603 = vrot.lane.b32.xlu1 %v3601_v23, %s4842_s20  ;;  %v6002_v23 = vadd.f32 %v5652_v14, %v5096_v55  ;;  %v959_v55 = vmax.f32 %v5984_v4, 0.0 }
0x425f   :  { %v3608_v46 = vpop.permute.xlu0 %3607 }
0x42d0   :  { %v3604_v6 = vpop.permute.xlu1 %3603 }
0x42d1   :  { %v3610_v12 = vsel %vm73_vm1, %v3604_v6, %v3608_v46 }
0x42d2   :  { %4582 = vmatmul.mubr.msk.f32.vlgmr.msra.gmra.mxu1 %vm175_vm2, %v3610_v12 }
0x4392   :  { %v3680_v13 = vpop.f32.mrf.mxu1 }
0x4393   :  { %v3681_v24 = vadd.f32 %v4837_v7, %v3680_v13 }
0x4394   :  { %v4583_v26 = vpop.f32.mrf.mxu1 }
0x4395   :  { %4772 = vtanh.f32 %v3681_v24  ;;  %v3684_v41 = vmul.f32 0.5, %v3681_v24  ;;  %v653_v26 = vmax.f32 %v650_v2, 0.0 }
0x4397   :  { %4774 = vtanh.f32 %v3684_v41 }
0x4398   :  { %4776 = vpow2.f32 %v656_v31 }
0x4399   :  { %4778 = vpow2.f32 %v962_v30 }
0x439a   :  { %4780 = vpow2.f32 %v1574_v57 }
0x43a2   :  { %v4773_v47 = vpop.eup %4772 }
0x43a3   :  { %3691 = vrot.lane.b32.xlu1 %v4773_v47, %s4841_s23 }
0x43a4   :  { %v4775_v61 = vpop.eup %4774 }
0x43a5   :  { %v3686_v17 = vmul.f32 0.5, %v4775_v61  ;;  %v4777_v54 = vpop.eup %4776 }
0x43a6   :  { %v658_v38 = vadd.f32 1.0, %v4777_v54  ;;  %v4779_v5 = vpop.eup %4778  ;;  %v661_v27 = vmul.f32 -0.5, %v4777_v54  ;;  %v664_v60 = vand.u32 2147483647, %v4777_v54 }
0x43a7   :  { %v5975_v0 = vadd.f32 0.5, %v3686_v17  ;;  %v964_v19 = vadd.f32 1.0, %v4779_v5  ;;  %v4781_v58 = vpop.eup %4780  ;;  %v967_v63 = vmul.f32 -0.5, %v4779_v5  ;;  %v970_v13 = vand.u32 2147483647, %v4779_v5 }
0x43a8   :  { %4782 = vlog2.f32 %v658_v38  ;;  %v662_v59 = vadd.f32 1.0, %v661_v27  ;;  %v1576_v32 = vadd.f32 1.0, %v4781_v58  ;;  %vm665_vm11 = vcmp.lt.f32.partialorder %v664_v60, 0.0004427343 }
0x43a9   :  { %v3689_v1 = vmul.f32 %v5975_v0, %v5889_v3  ;;  %4784 = vpow2.f32 %v1880_v40  ;;  %v968_v6 = vadd.f32 1.0, %v967_v63  ;;  %vm971_vm12 = vcmp.lt.f32.partialorder %v970_v13, 0.0004427343 }
0x43aa   :  { %v663_v46 = vmul.f32 %v4777_v54, %v662_v59  ;;  %v1582_v31 = vand.u32 2147483647, %v4781_v58  ;;  %v1571_v38 = vmax.f32 %v5989_v36, 0.0 }
0x43ab   :  { %v969_v47 = vmul.f32 %v4779_v5, %v968_v6 }
0x43ac   :  { %vm1583_vm13 = vcmp.lt.f32.partialorder %v1582_v31, 0.0004427343 }
0x43b5   :  { %v4783_v29 = vpop.eup %4782 }
0x43b6   :  { %v4785_v43 = vpop.eup %4784  ;;  %v660_v62 = vmul.f32 0.6931472, %v4783_v29 }
0x43b7   :  { %v1882_v12 = vadd.f32 1.0, %v4785_v43  ;;  %v1885_v49 = vmul.f32 -0.5, %v4785_v43  ;;  %v1888_v54 = vand.u32 2147483647, %v4785_v43 }
0x43b8   :  { %v666_v7 = vsel %vm665_vm11, %v663_v46, %v660_v62  ;;  %vm2829_vm11 = vcmp.eq.s32.totalorder %v5938_v22, 8 }
0x43b9   :  { %v667_v41 = vadd.f32 %v666_v7, %v653_v26  ;;  %v1886_v53 = vadd.f32 1.0, %v1885_v49  ;;  %vm1889_vm14 = vcmp.lt.f32.partialorder %v1888_v54, 0.0004427343 }
0x43bb   :  { %v668_v17 = vadd.f32 1e-06, %v667_v41  ;;  %v1887_v5 = vmul.f32 %v4785_v43, %v1886_v53 }
0x4415   :  { %v3692_v48 = vpop.permute.xlu1 %3691 }
0x4416   :  { %v3694_v8 = vmul.f32 %v3692_v48, %v5975_v0  ;;  %v1579_v48 = vmul.f32 -0.5, %v4781_v58 }
0x4418   :  { %3696 = vrot.lane.b32.xlu0 %v3694_v8, %s4841_s23  ;;  %v1580_v18 = vadd.f32 1.0, %v1579_v48 }
0x441a   :  { %v1581_v39 = vmul.f32 %v4781_v58, %v1580_v18 }
0x448a   :  { %v3697_v42 = vpop.permute.xlu0 %3696 }
0x448b   :  { %v3699_v11 = vadd.f32 %v3697_v42, %v3689_v1 }
0x448d   :  { %4786 = vtanh.f32 %v3699_v11 }
0x448e   :  { %4788 = vlog2.f32 %v964_v19 }
0x448f   :  { %4790 = vlog2.f32 %v1576_v32 }
0x4490   :  { %4792 = vlog2.f32 %v1882_v12 }
0x449a   :  { %v4787_v51 = vpop.eup %4786 }
0x449b   :  { %3702 = vrot.lane.b32.xlu1 %v4787_v51, %s4841_s23  ;;  %v4789_v3 = vpop.eup %4788 }
0x449c   :  { %v966_v24 = vmul.f32 0.6931472, %v4789_v3  ;;  %v4791_v8 = vpop.eup %4790 }
0x449d   :  { %v1578_v35 = vmul.f32 0.6931472, %v4791_v8  ;;  %v4793_v30 = vpop.eup %4792 }
0x449e   :  { %v972_v61 = vsel %vm971_vm12, %v969_v47, %v966_v24  ;;  %v1884_v57 = vmul.f32 0.6931472, %v4793_v30  ;;  %vm3152_vm12 = vcmp.eq.s32.totalorder %v5938_v22, 9 }
0x449f   :  { %366 = vperm.xlu1 %4607, %v6002_v23   ;;  %v973_v14 = vadd.f32 %v972_v61, %v959_v55  ;;  %v1584_v56 = vsel %vm1583_vm13, %v1581_v39, %v1578_v35  ;;  %vm3798_vm13 = vcmp.eq.s32.totalorder %v5938_v22, 11 }
0x44a0   :  { %v1585_v40 = vadd.f32 %v1584_v56, %v1571_v38  ;;  %v1890_v1 = vsel %vm1889_vm14, %v1887_v5, %v1884_v57  ;;  %vm3475_vm14 = vcmp.eq.s32.totalorder %v5938_v22, 10 }
0x44a1   :  { %v974_v21 = vadd.f32 1e-06, %v973_v14 }
0x44a2   :  { %v1586_v19 = vadd.f32 1e-06, %v1585_v40 }
0x44a3   :  { %672 = vperm.xlu1 %4607, %v650_v2   ;;  %v6010_v2 = vld [vmem:[%s6121_s6] ss:$0 sm:$0xff] }
0x44a4   :  { %v6014_v37 = vadd.f32 %v6010_v2, %v5291_v34  ;;  %v1877_v34 = vmax.f32 %v5993_v45, 0.0  ;;  %v6024_v27 = vadd.f32 %v6010_v2, %v5575_v9 }
0x44a6   :  { %v1891_v42 = vadd.f32 %v1890_v1, %v1877_v34  ;;  %v1266_v58 = vand.u32 2147483647, %v6014_v37  ;;  %v1265_v39 = vmax.f32 %v6014_v37, 0.0 }
0x44a7   :  { %4609 = vset.pattern.permute.xlu1 %v4850_v28 }
0x44a8   :  { %678 = vperm.xlu1 %4609, %v668_v17   ;;  %v1892_v11 = vadd.f32 1e-06, %v1891_v42  ;;  %v1267_v29 = vsub.f32 0.0, %v1266_v58  ;;  %v347_v17 = vmax.f32 %v6002_v23, 0.0 }
0x44ac   :  { %984 = vperm.xlu1 %4609, %v974_v21  }
0x44b0   :  { %4610 = vset.pattern.permute.xlu1 %v4845_v33 }
0x44b1   :  { %1284 = vperm.xlu1 %4610, %v6014_v37  }
0x44b5   :  { %1590 = vperm.xlu1 %4610, %v5989_v36   ;;  %v348_v36 = vand.u32 2147483647, %v6002_v23  ;;  %v2183_v23 = vmax.f32 %v6024_v27, 0.0 }
0x44b7   :  { %v349_v9 = vsub.f32 0.0, %v348_v36 }
0x44b9   :  { %4611 = vset.pattern.permute.xlu1 %v4850_v28 }
0x44ba   :  { %1596 = vperm.xlu1 %4611, %v1586_v19  }
0x44be   :  { %1902 = vperm.xlu1 %4611, %v1892_v11  }
0x44c2   :  { %4612 = vset.pattern.permute.xlu1 %v4845_v33 }
0x44c3   :  { %2202 = vperm.xlu1 %4612, %v6024_v27  }
0x44c7   :  { %2508 = vperm.xlu1 %4612, %v5655_v16   ;;  %v350_v16 = vmul.f32 1.442695, %v349_v9 }
0x44c9   :  { %4794 = vpow2.f32 %v350_v16 }
0x44cb   :  { %4613 = vset.pattern.permute.xlu1 %v4850_v28 }
0x44cc   :  { %2514 = vperm.xlu1 %4613, %v5660_v50   ;;  %v2184_v50 = vand.u32 2147483647, %v6024_v27 }
0x44ce   :  { %v2185_v43 = vsub.f32 0.0, %v2184_v50 }
0x44d0   :  { %2838 = vperm.xlu1 %4613, %v5747_v44   ;;  %v1268_v44 = vmul.f32 1.442695, %v1267_v29 }
0x44d2   :  { %4796 = vpow2.f32 %v1268_v44 }
0x44d4   :  { %4614 = vset.pattern.permute.xlu1 %v4845_v33 }
0x44d5   :  { %3155 = vperm.xlu1 %4614, %v5825_v10   ;;  %v2186_v10 = vmul.f32 1.442695, %v2185_v43 }
0x44d6   :  { %v4795_v59 = vpop.eup %4794 }
0x44d7   :  { %4798 = vpow2.f32 %v2186_v10  ;;  %v352_v63 = vadd.f32 1.0, %v4795_v59  ;;  %v358_v6 = vand.u32 2147483647, %v4795_v59 }
0x44d9   :  { %3478 = vperm.xlu1 %4614, %v5929_v20   ;;  %4800 = vlog2.f32 %v352_v63  ;;  %vm359_vm15 = vcmp.lt.f32.partialorder %v358_v6, 0.0004427343 }
0x44dd   :  { %4616 = vset.pattern.permute.xlu1 %v4850_v28 }
0x44de   :  { %3484 = vperm.xlu1 %4616, %v5933_v25   ;;  %v355_v25 = vmul.f32 -0.5, %v4795_v59 }
0x44df   :  { %v4797_v20 = vpop.eup %4796 }
0x44e0   :  { %v1270_v32 = vadd.f32 1.0, %v4797_v20  ;;  %v356_v3 = vadd.f32 1.0, %v355_v25  ;;  %v1273_v46 = vmul.f32 -0.5, %v4797_v20  ;;  %v1276_v47 = vand.u32 2147483647, %v4797_v20 }
0x44e2   :  { %4802 = vlog2.f32 %v1270_v32  ;;  %v357_v7 = vmul.f32 %v4795_v59, %v356_v3  ;;  %v1274_v24 = vadd.f32 1.0, %v1273_v46  ;;  %vm1277_vm0 = vcmp.lt.f32.partialorder %v1276_v47, 0.0004427343 }
0x44e4   :  { %v4799_v51 = vpop.eup %4798  ;;  %v1275_v8 = vmul.f32 %v4797_v20, %v1274_v24 }
0x44e5   :  { %v2188_v60 = vadd.f32 1.0, %v4799_v51  ;;  %v2191_v26 = vmul.f32 -0.5, %v4799_v51  ;;  %v2194_v49 = vand.u32 2147483647, %v4799_v51 }
0x44e6   :  { %v4801_v62 = vpop.eup %4800 }
0x44e7   :  { %4804 = vlog2.f32 %v2188_v60  ;;  %v354_v12 = vmul.f32 0.6931472, %v4801_v62  ;;  %v2192_v21 = vadd.f32 1.0, %v2191_v26  ;;  %vm2195_vm2 = vcmp.lt.f32.partialorder %v2194_v49, 0.0004427343 }
0x44e9   :  { %v360_v41 = vsel %vm359_vm15, %v357_v7, %v354_v12  ;;  %v2193_v53 = vmul.f32 %v4799_v51, %v2192_v21 }
0x44ea   :  { %v361_v18 = vadd.f32 %v360_v41, %v347_v17 }
0x44ec   :  { %v362_v56 = vadd.f32 1e-06, %v361_v18 }
0x44ef   :  { %v4803_v13 = vpop.eup %4802 }
0x44f0   :  { %v1272_v61 = vmul.f32 0.6931472, %v4803_v13 }
0x44f2   :  { %v1278_v35 = vsel %vm1277_vm0, %v1275_v8, %v1272_v61 }
0x44f3   :  { %v1279_v54 = vadd.f32 %v1278_v35, %v1265_v39 }
0x44f4   :  { %v4805_v14 = vpop.eup %4804 }
0x44f5   :  { %v2190_v30 = vmul.f32 0.6931472, %v4805_v14  ;;  %v1280_v38 = vadd.f32 1e-06, %v1279_v54 }
0x44f7   :  { %v2196_v57 = vsel %vm2195_vm2, %v2193_v53, %v2190_v30 }
0x450d   :  { %v3703_v55 = vpop.permute.xlu1 %3702 }
0x450e   :  { %v3705_v48 = vmul.f32 %v3703_v55, %v5975_v0  ;;  %v2197_v0 = vadd.f32 %v2196_v57, %v2183_v23 }
0x4510   :  { %v3706_v31 = vmax.f32 %v3705_v48, 0.0  ;;  %v2198_v5 = vadd.f32 1e-06, %v2197_v0 }
0x4512   :  { %3708 = vrot.lane.b32.xlu0 %v3706_v31, %s4842_s20 }
0x4516   :  { %372 = vperm.xlu0 %4608, %v362_v56  }
0x451a   :  { %1290 = vperm.xlu0 %4608, %v1280_v38   ;;  %v367_v50 = vpop.permute.xlu1 %366 }
0x451b   :  { %v369_v46 = vsel %vm363_vm7, %v367_v50, 0.0 }
0x451e   :  { %2208 = vperm.xlu0 %4608, %v2198_v5   ;;  %v673_v44 = vpop.permute.xlu1 %672 }
0x451f   :  { %v675_v6 = vsel %vm669_vm8, %v673_v44, %v369_v46 }
0x4522   :  { %3161 = vperm.xlu0 %4608, %v5829_v52  }
0x4523   :  { %v679_v43 = vpop.permute.xlu1 %678 }
0x4526   :  { %4615 = vset.pattern.permute.xlu0 %v4845_v33 }
0x4527   :  { %978 = vperm.xlu0 %4615, %v5984_v4  }
0x452b   :  { %1896 = vperm.xlu0 %4615, %v5993_v45  }
0x452f   :  { %2832 = vperm.xlu0 %4615, %v5743_v15  }
0x4584   :  { %v3709_v37 = vpop.permute.xlu0 %3708 }
0x4585   :  { %4593 = vmatmul.mubr.msk.f32.vlgmr.msra.gmra.mxu0 %vm73_vm1, %v3709_v37 }
0x4591   :  { %v373_v59 = vpop.permute.xlu0 %372 }
0x4592   :  { %v375_v30 = vsel %vm363_vm7, %v373_v59, 0.0 }
0x4593   :  { %v681_v39 = vsel %vm669_vm8, %v679_v43, %v375_v30 }
0x4595   :  { %v1291_v20 = vpop.permute.xlu0 %1290 }
0x4599   :  { %v2209_v51 = vpop.permute.xlu0 %2208 }
0x459d   :  { %v3162_v25 = vpop.permute.xlu0 %3161 }
0x45a2   :  { %v979_v3 = vpop.permute.xlu0 %978 }
0x45a3   :  { %v981_v13 = vsel %vm975_vm9, %v979_v3, %v675_v6 }
0x45a6   :  { %v1897_v26 = vpop.permute.xlu0 %1896 }
0x45aa   :  { %v2833_v14 = vpop.permute.xlu0 %2832 }
0x4645   :  { %v3778_v40 = vpop.f32.mrf.mxu0 }
0x4646   :  { %v3779_v1 = vadd.f32 %v6010_v2, %v3778_v40 }
0x4647   :  { %v4594_v34 = vpop.f32.mrf.mxu0 }
0x4648   :  { %v3783_v42 = vand.u32 2147483647, %v3779_v1  ;;  %3801 = vperm.xlu0 %4615, %v3779_v1   ;;  %v3782_v58 = vmax.f32 %v3779_v1, 0.0 }
0x464a   :  { %v3784_v19 = vsub.f32 0.0, %v3783_v42 }
0x464c   :  { %v3785_v11 = vmul.f32 1.442695, %v3784_v19  ;;  %4617 = vset.pattern.permute.xlu0 %v4850_v28  ;;  %v985_v28 = vpop.permute.xlu1 %984 }
0x464d   :  { %v987_v53 = vsel %vm975_vm9, %v985_v28, %v681_v39 }
0x464e   :  { %4806 = vpow2.f32 %v3785_v11  ;;  %v1293_v54 = vsel %vm1281_vm10, %v1291_v20, %v987_v53 }
0x4650   :  { %v1285_v10 = vpop.permute.xlu1 %1284 }
0x4651   :  { %v1287_v7 = vsel %vm1281_vm10, %v1285_v10, %v981_v13 }
0x4654   :  { %v1591_v63 = vpop.permute.xlu1 %1590 }
0x4655   :  { %v1593_v47 = vsel %vm1587_vm3, %v1591_v63, %v1287_v7 }
0x4656   :  { %v1899_v41 = vsel %vm1893_vm4, %v1897_v26, %v1593_v47 }
0x4658   :  { %v1597_v32 = vpop.permute.xlu1 %1596 }
0x4659   :  { %v1599_v56 = vsel %vm1587_vm3, %v1597_v32, %v1293_v54 }
0x465b   :  { %v4807_v33 = vpop.eup %4806 }
0x465c   :  { %v3787_v52 = vadd.f32 1.0, %v4807_v33  ;;  %v3790_v4 = vmul.f32 -0.5, %v4807_v33  ;;  %v3793_v15 = vand.u32 2147483647, %v4807_v33  ;;  %v1903_v60 = vpop.permute.xlu1 %1902 }
0x465d   :  { %v1905_v57 = vsel %vm1893_vm4, %v1903_v60, %v1599_v56 }
0x465e   :  { %4808 = vlog2.f32 %v3787_v52  ;;  %v3791_v45 = vadd.f32 1.0, %v3790_v4  ;;  %vm3794_vm1 = vcmp.lt.f32.partialorder %v3793_v15, 0.0004427343  ;;  %v2211_v23 = vsel %vm2199_vm5, %v2209_v51, %v1905_v57 }
0x4660   :  { %v3792_v9 = vmul.f32 %v4807_v33, %v3791_v45  ;;  %v2203_v62 = vpop.permute.xlu1 %2202 }
0x4661   :  { %v2205_v55 = vsel %vm2199_vm5, %v2203_v62, %v1899_v41 }
0x4664   :  { %v2509_v12 = vpop.permute.xlu1 %2508 }
0x4665   :  { %v2511_v17 = vsel %vm2505_vm6, %v2509_v12, %v2205_v55 }
0x4666   :  { %v2835_v8 = vsel %vm2829_vm11, %v2833_v14, %v2511_v17 }
0x4668   :  { %v2515_v24 = vpop.permute.xlu1 %2514 }
0x4669   :  { %v2517_v0 = vsel %vm2505_vm6, %v2515_v24, %v2211_v23 }
0x466b   :  { %v4809_v27 = vpop.eup %4808 }
0x466c   :  { %v3789_v36 = vmul.f32 0.6931472, %v4809_v27  ;;  %v2839_v61 = vpop.permute.xlu1 %2838 }
0x466d   :  { %v2841_v38 = vsel %vm2829_vm11, %v2839_v61, %v2517_v0 }
0x466e   :  { %v3795_v2 = vsel %vm3794_vm1, %v3792_v9, %v3789_v36  ;;  %v3164_v37 = vsel %vm3152_vm12, %v3162_v25, %v2841_v38 }
0x466f   :  { %v3796_v16 = vadd.f32 %v3795_v2, %v3782_v58 }
0x4670   :  { %v3156_v48 = vpop.permute.xlu1 %3155 }
0x4671   :  { %v3797_v29 = vadd.f32 1e-06, %v3796_v16  ;;  %v3158_v21 = vsel %vm3152_vm12, %v3156_v48, %v2835_v8 }
0x4673   :  { %3807 = vperm.xlu1 %4616, %v3797_v29  }
0x4674   :  { %v3479_v18 = vpop.permute.xlu1 %3478 }
0x4675   :  { %v3481_v31 = vsel %vm3475_vm14, %v3479_v18, %v3158_v21 }
0x4678   :  { %v3485_v5 = vpop.permute.xlu1 %3484 }
0x4679   :  { %v3487_v40 = vsel %vm3475_vm14, %v3485_v5, %v3164_v37 }
0x46c3   :  { %v3802_v49 = vpop.permute.xlu0 %3801 }
0x46c4   :  { %v3804_v35 = vsel %vm3798_vm13, %v3802_v49, %v3481_v31 }
0x46c5   :  { %3811 = vst [vmem:[%s6124_s8] sm:$0xff] %v3804_v35 }
0x46ee   :  { %v3808_v1 = vpop.permute.xlu1 %3807 }
0x46ef   :  { %v3810_v34 = vsel %vm3798_vm13, %v3808_v1, %v3487_v40 }
0x46f0   :  { %3812 = vst [vmem:[%s6125_s9] sm:$0xff] %v3810_v34 }

</bundles_post_ra>
